<compile_context>
chip_gen: v6e
topology: v6e:2x2x1
jax: 0.10.0
libtpu: 0.0.40
codegen_flags: <defaults>
</compile_context>

<pallas_src>
import functools

import jax
import jax.numpy as jnp
from jax.experimental import pallas as pl
from jax.experimental.pallas import tpu as pltpu


def _pick_vmem_limit_bytes():
    """Generation-aware scoped-VMEM limit (~75% of physical, capped at 100 MiB)."""
    try:
        cap = int(pltpu.get_tpu_info().vmem_capacity_bytes)
        return min(int(cap * 0.75), 100 * 1024 * 1024)
    except Exception:
        return 48 * 1024 * 1024  # conservative fallback (safe on v7x's 64 MiB)


_VMEM_LIMIT_BYTES = _pick_vmem_limit_bytes()


# -----------------------------------------------------------------------------
# Kernel: one full bidirectional GRU layer (both directions fused), optionally
# with a residual + LayerNorm epilogue (used for the last layer).
#
#   x_ref    : (T*Bp, Hin)      time-major rows (row t*Bp + b == x[t, b, :]),
#                               already in the matmul dtype
#   wih_ref  : (Hin, 6*Hd)      [fwd | bwd] input->gates weights (transposed)
#   whh_ref  : fused: (2*Hd, 6*Hd) block-diag [fwd | bwd] hidden->gates weights
#              else : (2, Hd, 3*Hd) per-direction weights
#   bias_ref : (1, 6*Hd)        b_ih (all gates) + b_hh (r,z) pre-folded, f32
#   bhhn_ref : (1, 2*Hd)        per-direction n-gate hidden bias (stays in loop)
#   [last layer only] xres_ref (T*Bp, H) f32, gamma_ref/beta_ref (1, H) f32
#   o_ref    : (T*Bp, 2*Hd)     GRU output (intermediate layers, bf16/f32)
#              or (T*Bp, H) f32 LayerNorm(output + residual) for the last layer
#   gx_ref   : (T*Bp, 6*Hd)     VMEM scratch, matmul dtype: hoisted projection
#   y_ref    : (T*Bp, 2*Hd) f32 VMEM staging for the per-step state stores
#
# Gate order matches PyTorch: [r | z | n].
# -----------------------------------------------------------------------------
def bigru_layer_kernel(x_ref, wih_ref, whh_ref, bias_ref, bhhn_ref, *rest,
                       batch, fuse_hh, fused_ln, ln_eps):
    if fused_ln:
        xres_ref, gamma_ref, beta_ref, o_ref, gx_ref, y_ref = rest
    else:
        o_ref, gx_ref, y_ref = rest

    TB = x_ref.shape[0]
    B = batch
    T = TB // B
    Hd = bhhn_ref.shape[1] // 2
    cdt = wih_ref.dtype                      # matmul operand dtype (f32 or bf16)

    # Hoisted input projection: one tall MXU matmul for both directions with all
    # loop-invariant biases folded in.  Stored in the compute dtype (bf16 on the
    # perf path) to halve the dominant VMEM scratch.
    gx_ref[...] = (
        jnp.dot(x_ref[...], wih_ref[...], preferred_element_type=jnp.float32)
        + bias_ref[...]
    ).astype(gx_ref.dtype)

    # Pre-broadcast the only in-loop bias once (broadcast_in_dim is not CSE'd).
    bhhn_f = jnp.broadcast_to(bhhn_ref[0:1, 0:Hd], (B, Hd))
    bhhn_b = jnp.broadcast_to(bhhn_ref[0:1, Hd:2 * Hd], (B, Hd))

    if fuse_hh:
        whh = whh_ref[...]                   # (2*Hd, 6*Hd) block-diagonal
    else:
        whh_f = whh_ref[0]                   # (Hd, 3*Hd)
        whh_b = whh_ref[1]

    def sigm(v):  # sigmoid via tanh identity: fewer EUP passes than exp+recip
        return 0.5 * (jnp.tanh(0.5 * v) + 1.0)

    def step(s, carry):
        h_f, h_b = carry                              # (B, Hd) f32, vreg-carried
        row_f = pl.multiple_of(s * B, B)              # fwd: timestep s
        row_b = pl.multiple_of((T - 1 - s) * B, B)    # bwd: timestep T-1-s
        gx_f = gx_ref[pl.ds(row_f, B), :].astype(jnp.float32)   # fwd uses [:, :3Hd]
        gx_b = gx_ref[pl.ds(row_b, B), :].astype(jnp.float32)   # bwd uses [:, 3Hd:]

        if fuse_hh:
            # One block-diagonal matmul per step instead of two.
            h_cat = jnp.concatenate([h_f, h_b], axis=1).astype(cdt)   # (B, 2*Hd)
            gh = jnp.dot(h_cat, whh, preferred_element_type=jnp.float32)
            gh_f = gh[:, 0:3 * Hd]
            gh_b = gh[:, 3 * Hd:6 * Hd]
        else:
            gh_f = jnp.dot(h_f.astype(cdt), whh_f, preferred_element_type=jnp.float32)
            gh_b = jnp.dot(h_b.astype(cdt), whh_b, preferred_element_type=jnp.float32)

        # forward-direction gates (all elementwise math stays f32)
        r_f = sigm(gx_f[:, 0:Hd] + gh_f[:, 0:Hd])
        z_f = sigm(gx_f[:, Hd:2 * Hd] + gh_f[:, Hd:2 * Hd])
        n_f = jnp.tanh(gx_f[:, 2 * Hd:3 * Hd] + r_f * (gh_f[:, 2 * Hd:3 * Hd] + bhhn_f))
        h_f = (1.0 - z_f) * n_f + z_f * h_f

        # backward-direction gates
        r_b = sigm(gx_b[:, 3 * Hd:4 * Hd] + gh_b[:, 0:Hd])
        z_b = sigm(gx_b[:, 4 * Hd:5 * Hd] + gh_b[:, Hd:2 * Hd])
        n_b = jnp.tanh(gx_b[:, 5 * Hd:6 * Hd] + r_b * (gh_b[:, 2 * Hd:3 * Hd] + bhhn_b))
        h_b = (1.0 - z_b) * n_b + z_b * h_b

        y_ref[pl.ds(row_f, B), pl.ds(0, Hd)] = h_f
        y_ref[pl.ds(row_b, B), pl.ds(Hd, Hd)] = h_b
        return (h_f, h_b)

    h0 = jnp.zeros((B, Hd), jnp.float32)

    # Shape-aware unroll: keep the unrolled window's live f32 working set
    # (carry + gh + gx slices + gate temps per step) well under the 64-vreg file.
    step_vregs = max(1, (26 * B * Hd * 4 + 4095) // 4096)
    budget = 40
    unroll = T if T * step_vregs <= budget else max(1, min(T, budget // step_vregs))
    jax.lax.fori_loop(0, T, step, (h0, h0), unroll=unroll)

    if fused_ln:
        # Residual + LayerNorm epilogue on the VMEM-resident GRU output:
        # saves a full (T*B, H) f32 HBM write + re-read vs. a separate kernel.
        s = y_ref[...] + xres_ref[...]
        mean = jnp.mean(s, axis=-1, keepdims=True)
        d = s - mean
        var = jnp.mean(d * d, axis=-1, keepdims=True)
        o_ref[...] = (d * jax.lax.rsqrt(var + ln_eps) * gamma_ref[...]
                      + beta_ref[...]).astype(o_ref.dtype)
    else:
        # Single dense, lane-aligned store of the whole layer output.
        o_ref[...] = y_ref[...].astype(o_ref.dtype)


def bigru_layer(x2d, wih, whh, bias, bhhn, *, batch, out_dtype,
                residual=None, gamma=None, beta=None):
    TBp, _ = x2d.shape
    Hd = bhhn.shape[1] // 2
    fuse_hh = (whh.ndim == 2)
    fused_ln = residual is not None
    vmem = pl.BlockSpec(memory_space=pltpu.MemorySpace.VMEM)
    kernel = functools.partial(bigru_layer_kernel, batch=batch, fuse_hh=fuse_hh,
                               fused_ln=fused_ln, ln_eps=1e-5)
    scratch = [pltpu.VMEM((TBp, 6 * Hd), wih.dtype),        # gx (compute dtype)
               pltpu.VMEM((TBp, 2 * Hd), jnp.float32)]      # f32 state staging
    cp = pltpu.CompilerParams(vmem_limit_bytes=_VMEM_LIMIT_BYTES)
    if fused_ln:
        H = residual.shape[1]
        return pl.pallas_call(
            kernel,
            out_shape=jax.ShapeDtypeStruct((TBp, H), jnp.float32),
            in_specs=[vmem] * 8,
            out_specs=vmem,
            scratch_shapes=scratch,
            compiler_params=cp,
        )(x2d, wih, whh, bias, bhhn, residual, gamma, beta)
    return pl.pallas_call(
        kernel,
        out_shape=jax.ShapeDtypeStruct((TBp, 2 * Hd), out_dtype),
        in_specs=[vmem] * 5,
        out_specs=vmem,
        scratch_shapes=scratch,
        compiler_params=cp,
    )(x2d, wih, whh, bias, bhhn)


# -----------------------------------------------------------------------------
# Weight pre-packing: done ONCE outside the jitted forward (no per-call concat /
# cast kernels; bf16 weight copies live persistently in HBM).
# -----------------------------------------------------------------------------
def pack_params(params, hidden_size, matmul_dtype=jnp.bfloat16):
    Hd = hidden_size // 2
    fuse_hh = (2 * Hd) <= 256   # block-diag h@W_hh only while it fits MXU depth
    layers = []
    for lp in params["gru"]:
        pf, pb = lp["fwd"], lp["bwd"]
        wih = jnp.concatenate([pf["wih_t"], pb["wih_t"]], axis=1).astype(matmul_dtype)
        if fuse_hh:
            whh = jnp.zeros((2 * Hd, 6 * Hd), jnp.float32)
            whh = whh.at[0:Hd, 0:3 * Hd].set(pf["whh_t"])
            whh = whh.at[Hd:2 * Hd, 3 * Hd:6 * Hd].set(pb["whh_t"])
            whh = whh.astype(matmul_dtype)
        else:
            whh = jnp.stack([pf["whh_t"], pb["whh_t"]], axis=0).astype(matmul_dtype)

        def fold(p):  # b_ih (all gates) + b_hh for r,z; the n-gate b_hh stays in-loop
            return p["bih"] + jnp.concatenate(
                [p["bhh"][:, :2 * Hd], jnp.zeros((1, Hd), jnp.float32)], axis=1)

        bias = jnp.concatenate([fold(pf), fold(pb)], axis=1)                        # (1, 6Hd)
        bhhn = jnp.concatenate([pf["bhh"][:, 2 * Hd:], pb["bhh"][:, 2 * Hd:]], axis=1)  # (1, 2Hd)
        layers.append({"wih": wih, "whh": whh, "bias": bias, "bhhn": bhhn})
    return {"layers": layers,
            "ln_gamma": params["ln_gamma"], "ln_beta": params["ln_beta"]}


# -----------------------------------------------------------------------------
# Full ResidualGRU forward (layout glue in plain JAX, hot paths in the kernel).
# -----------------------------------------------------------------------------
@jax.jit
def residual_gru_forward(x_bth, packed):
    B, T, H = x_bth.shape
    mdt = packed["layers"][0]["wih"].dtype
    # Pad batch rows so every per-step dynamic row offset in the serial loop is
    # native-sublane-tile aligned (8 rows for f32, 16 for bf16 packing).
    row_align = 8 * max(1, 4 // jnp.dtype(mdt).itemsize)
    Bp = ((B + row_align - 1) // row_align) * row_align

    x_tbh = jnp.transpose(x_bth, (1, 0, 2)).astype(jnp.float32)
    if Bp != B:
        x_tbh = jnp.pad(x_tbh, ((0, 0), (0, Bp - B), (0, 0)))
    x2d = x_tbh.reshape(T * Bp, H)              # f32 residual, time-major rows
    layer_in = x2d.astype(mdt)                  # pre-cast activations once

    layers = packed["layers"]
    out2d = None
    for li, lp in enumerate(layers):
        if li == len(layers) - 1:
            # last layer: residual + LayerNorm fused as the kernel epilogue
            out2d = bigru_layer(layer_in, lp["wih"], lp["whh"], lp["bias"], lp["bhhn"],
                                batch=Bp, out_dtype=jnp.float32, residual=x2d,
                                gamma=packed["ln_gamma"], beta=packed["ln_beta"])
        else:
            # intermediate layers: emit activations in the matmul dtype (bf16)
            layer_in = bigru_layer(layer_in, lp["wih"], lp["whh"], lp["bias"],
                                   lp["bhhn"], batch=Bp, out_dtype=mdt)

    out_tbh = out2d.reshape(T, Bp, H)[:, :B, :]
    return jnp.transpose(out_tbh, (1, 0, 2))


# -----------------------------------------------------------------------------
# Pure-JAX reference (same math as PyTorch's GRU + LayerNorm) for correctness.
# -----------------------------------------------------------------------------
def _gru_dir_ref(x_tbh, wih_t, whh_t, bih, bhh):
    T, B, _ = x_tbh.shape
    Hd = whh_t.shape[0]
    h = jnp.zeros((B, Hd), jnp.float32)
    outs = []
    for t in range(T):
        gx = x_tbh[t] @ wih_t + bih
        gh = h @ whh_t + bhh
        r = jax.nn.sigmoid(gx[:, :Hd] + gh[:, :Hd])
        z = jax.nn.sigmoid(gx[:, Hd:2 * Hd] + gh[:, Hd:2 * Hd])
        n = jnp.tanh(gx[:, 2 * Hd:] + r * gh[:, 2 * Hd:])
        h = (1.0 - z) * n + z * h
        outs.append(h)
    return jnp.stack(outs, 0)


def _residual_gru_ref(x_bth, params, num_layers=2):
    x_tbh = jnp.transpose(x_bth, (1, 0, 2))
    layer_in = x_tbh
    for layer in range(num_layers):
        pf = params["gru"][layer]["fwd"]
        pb = params["gru"][layer]["bwd"]
        out_f = _gru_dir_ref(layer_in, pf["wih_t"], pf["whh_t"], pf["bih"], pf["bhh"])
        out_b = _gru_dir_ref(layer_in[::-1], pb["wih_t"], pb["whh_t"],
                             pb["bih"], pb["bhh"])[::-1]
        layer_in = jnp.concatenate([out_f, out_b], axis=-1)
    y = jnp.transpose(layer_in, (1, 0, 2))
    s = y + x_bth
    mean = jnp.mean(s, axis=-1, keepdims=True)
    var = jnp.mean((s - mean) ** 2, axis=-1, keepdims=True)
    return (s - mean) * jax.lax.rsqrt(var + 1e-5) * params["ln_gamma"][0] + params["ln_beta"][0]


# -----------------------------------------------------------------------------
# Deterministic parameter init (PyTorch-style: U(-1/sqrt(Hd), 1/sqrt(Hd))).
# -----------------------------------------------------------------------------
def init_params(key, hidden_size, num_layers=2):
    Hd = hidden_size // 2
    k = 1.0 / (Hd ** 0.5)
    params = {"gru": []}
    for _ in range(num_layers):
        hin = hidden_size  # layer 0 input = H; later layers input = 2*Hd = H
        layer_p = {}
        for direction in ("fwd", "bwd"):
            key, k1, k2, k3, k4 = jax.random.split(key, 5)
            layer_p[direction] = {
                # stored already transposed for right-multiplication in kernel
                "wih_t": jax.random.uniform(k1, (hin, 3 * Hd), jnp.float32, -k, k),
                "whh_t": jax.random.uniform(k2, (Hd, 3 * Hd), jnp.float32, -k, k),
                "bih": jax.random.uniform(k3, (1, 3 * Hd), jnp.float32, -k, k),
                "bhh": jax.random.uniform(k4, (1, 3 * Hd), jnp.float32, -k, k),
            }
        params["gru"].append(layer_p)
    params["ln_gamma"] = jnp.ones((1, hidden_size), jnp.float32)
    params["ln_beta"] = jnp.zeros((1, hidden_size), jnp.float32)
    return params


if __name__ == "__main__":
    B, T, H = 2, 8, 32          # batch, seq, hidden_size (Hd = 16 per direction)
    key = jax.random.PRNGKey(0)
    key_x, key_p = jax.random.split(key)
    x = jax.random.normal(key_x, (B, T, H), jnp.float32)
    params = init_params(key_p, H, num_layers=2)

    ref = _residual_gru_ref(x, params, num_layers=2)

    # f32 matmul/storage path: tight numerical check of the kernel math.
    packed_f32 = pack_params(params, H, matmul_dtype=jnp.float32)
    out_f32 = jax.block_until_ready(residual_gru_forward(x, packed_f32))
    assert out_f32.shape == (B, T, H)
    assert jnp.allclose(out_f32, ref, rtol=5e-4, atol=5e-4), \
        f"f32 max abs diff {jnp.max(jnp.abs(out_f32 - ref))}"

    # bf16 perf path (MXU operands, bf16 gx scratch + inter-layer activations):
    # loose check (bf16 rounding compounds over the recurrence).
    packed_bf16 = pack_params(params, H, matmul_dtype=jnp.bfloat16)
    out_bf16 = jax.block_until_ready(residual_gru_forward(x, packed_bf16))
    assert out_bf16.shape == (B, T, H)
    assert jnp.allclose(out_bf16, ref, rtol=0.0, atol=2.5e-1), \
        f"bf16 max abs diff {jnp.max(jnp.abs(out_bf16 - ref))}"

    print("KERNEL_OK")
</pallas_src>

<mosaic_0001>
module attributes {stable_mosaic.version = 11 : i64} {
  func.func @bigru_layer_kernel(%arg0: memref<64x32xf32, #tpu.memory_space<vmem>>, %arg1: memref<32x96xf32, #tpu.memory_space<vmem>>, %arg2: memref<32x96xf32, #tpu.memory_space<vmem>>, %arg3: memref<1x96xf32, #tpu.memory_space<vmem>>, %arg4: memref<1x32xf32, #tpu.memory_space<vmem>>, %arg5: memref<64x32xf32, #tpu.memory_space<vmem>>, %arg6: memref<64x96xf32, #tpu.memory_space<vmem>>, %arg7: memref<64x32xf32, #tpu.memory_space<vmem>>) attributes {dimension_semantics = [], scalar_prefetch = 0 : i64, scratch_operands = 2 : i64, tpu.core_type = #tpu.core_type<tc>} {
    %c0 = arith.constant 0 : index
    %c0_0 = arith.constant 0 : index
    %0 = vector.load %arg0[%c0, %c0_0] : memref<64x32xf32, #tpu.memory_space<vmem>>, vector<64x32xf32>
    %c0_1 = arith.constant 0 : index
    %c0_2 = arith.constant 0 : index
    %1 = vector.load %arg1[%c0_1, %c0_2] : memref<32x96xf32, #tpu.memory_space<vmem>>, vector<32x96xf32>
    %cst = arith.constant dense<0.000000e+00> : vector<64x96xf32>
    %2 = tpu.matmul %0, %1, %cst {dimension_numbers = #tpu.dot_dimension_numbers<[1], [0], [0], [1], [0, 0, 1, 1], [], []>} : vector<64x32xf32>, vector<32x96xf32>, vector<64x96xf32> -> vector<64x96xf32>
    %c0_3 = arith.constant 0 : index
    %c0_4 = arith.constant 0 : index
    %3 = vector.load %arg3[%c0_3, %c0_4] : memref<1x96xf32, #tpu.memory_space<vmem>>, vector<1x96xf32>
    %4 = vector.broadcast %3 : vector<1x96xf32> to vector<64x96xf32>
    %5 = arith.addf %2, %4 : vector<64x96xf32>
    %c0_5 = arith.constant 0 : index
    %c0_6 = arith.constant 0 : index
    %6 = vector.load %arg6[%c0_5, %c0_6] : memref<64x96xf32, #tpu.memory_space<vmem>>, vector<64x96xf32>
    tpu.vector_store %arg6[%c0_5, %c0_6], %5 {strides = array<i32>} : memref<64x96xf32, #tpu.memory_space<vmem>>, vector<64x96xf32>,
    %c0_7 = arith.constant 0 : index
    %c0_8 = arith.constant 0 : index
    %7 = vector.load %arg4[%c0_7, %c0_8] : memref<1x32xf32, #tpu.memory_space<vmem>>, vector<1x16xf32>
    %8 = vector.shape_cast %7 : vector<1x16xf32> to vector<1x16xf32>
    %9 = vector.broadcast %8 : vector<1x16xf32> to vector<8x16xf32>
    %c0_9 = arith.constant 0 : index
    %c16 = arith.constant 16 : index
    %10 = vector.load %arg4[%c0_9, %c16] : memref<1x32xf32, #tpu.memory_space<vmem>>, vector<1x16xf32>
    %11 = vector.shape_cast %10 : vector<1x16xf32> to vector<1x16xf32>
    %12 = vector.broadcast %11 : vector<1x16xf32> to vector<8x16xf32>
    %c0_10 = arith.constant 0 : index
    %c0_11 = arith.constant 0 : index
    %13 = vector.load %arg2[%c0_10, %c0_11] : memref<32x96xf32, #tpu.memory_space<vmem>>, vector<32x96xf32>
    %cst_12 = arith.constant 0.000000e+00 : f32
    %14 = vector.broadcast %cst_12 : f32 to vector<8x16xf32>
    %c0_i32 = arith.constant 0 : i32
    %c8_i32 = arith.constant 8 : i32
    %15 = arith.muli %c0_i32, %c8_i32 : i32
    %16 = tpu.assume_multiple %15, 8 : i32
    %c7_i32 = arith.constant 7 : i32
    %17 = arith.subi %c7_i32, %c0_i32 : i32
    %c8_i32_13 = arith.constant 8 : i32
    %18 = arith.muli %17, %c8_i32_13 : i32
    %19 = tpu.assume_multiple %18, 8 : i32
    %20 = arith.index_cast %16 : i32 to index
    %c0_14 = arith.constant 0 : index
    %21 = vector.load %arg6[%20, %c0_14] : memref<64x96xf32, #tpu.memory_space<vmem>>, vector<8x96xf32>
    %22 = arith.index_cast %19 : i32 to index
    %c0_15 = arith.constant 0 : index
    %23 = vector.load %arg6[%22, %c0_15] : memref<64x96xf32, #tpu.memory_space<vmem>>, vector<8x96xf32>
    %24 = tpu.concatenate %14, %14 in 1 : vector<8x16xf32>, vector<8x16xf32> -> vector<8x32xf32>
    %cst_16 = arith.constant dense<0.000000e+00> : vector<8x96xf32>
    %25 = tpu.matmul %24, %13, %cst_16 {dimension_numbers = #tpu.dot_dimension_numbers<[1], [0], [0], [1], [0, 0, 1, 1], [], []>} : vector<8x32xf32>, vector<32x96xf32>, vector<8x96xf32> -> vector<8x96xf32>
    %26 = vector.extract_strided_slice %25 {offsets = [0, 0], sizes = [8, 48], strides = [1, 1]} : vector<8x96xf32> to vector<8x48xf32>
    %27 = vector.extract_strided_slice %25 {offsets = [0, 48], sizes = [8, 48], strides = [1, 1]} : vector<8x96xf32> to vector<8x48xf32>
    %28 = vector.extract_strided_slice %21 {offsets = [0, 0], sizes = [8, 16], strides = [1, 1]} : vector<8x96xf32> to vector<8x16xf32>
    %29 = vector.extract_strided_slice %26 {offsets = [0, 0], sizes = [8, 16], strides = [1, 1]} : vector<8x48xf32> to vector<8x16xf32>
    %30 = arith.addf %28, %29 : vector<8x16xf32>
    %cst_17 = arith.constant 5.000000e-01 : f32
    %31 = vector.broadcast %cst_17 : f32 to vector<8x16xf32>
    %32 = arith.mulf %31, %30 : vector<8x16xf32>
    %33 = math.tanh %32 : vector<8x16xf32>
    %cst_18 = arith.constant 1.000000e+00 : f32
    %34 = vector.broadcast %cst_18 : f32 to vector<8x16xf32>
    %35 = arith.addf %33, %34 : vector<8x16xf32>
    %cst_19 = arith.constant 5.000000e-01 : f32
    %36 = vector.broadcast %cst_19 : f32 to vector<8x16xf32>
    %37 = arith.mulf %36, %35 : vector<8x16xf32>
    %38 = vector.extract_strided_slice %21 {offsets = [0, 16], sizes = [8, 16], strides = [1, 1]} : vector<8x96xf32> to vector<8x16xf32>
    %39 = vector.extract_strided_slice %26 {offsets = [0, 16], sizes = [8, 16], strides = [1, 1]} : vector<8x48xf32> to vector<8x16xf32>
    %40 = arith.addf %38, %39 : vector<8x16xf32>
    %cst_20 = arith.constant 5.000000e-01 : f32
    %41 = vector.broadcast %cst_20 : f32 to vector<8x16xf32>
    %42 = arith.mulf %41, %40 : vector<8x16xf32>
    %43 = math.tanh %42 : vector<8x16xf32>
    %cst_21 = arith.constant 1.000000e+00 : f32
    %44 = vector.broadcast %cst_21 : f32 to vector<8x16xf32>
    %45 = arith.addf %43, %44 : vector<8x16xf32>
    %cst_22 = arith.constant 5.000000e-01 : f32
    %46 = vector.broadcast %cst_22 : f32 to vector<8x16xf32>
    %47 = arith.mulf %46, %45 : vector<8x16xf32>
    %48 = vector.extract_strided_slice %21 {offsets = [0, 32], sizes = [8, 16], strides = [1, 1]} : vector<8x96xf32> to vector<8x16xf32>
    %49 = vector.extract_strided_slice %26 {offsets = [0, 32], sizes = [8, 16], strides = [1, 1]} : vector<8x48xf32> to vector<8x16xf32>
    %50 = arith.addf %49, %9 : vector<8x16xf32>
    %51 = arith.mulf %37, %50 : vector<8x16xf32>
    %52 = arith.addf %48, %51 : vector<8x16xf32>
    %53 = math.tanh %52 : vector<8x16xf32>
    %cst_23 = arith.constant 1.000000e+00 : f32
    %54 = vector.broadcast %cst_23 : f32 to vector<8x16xf32>
    %55 = arith.subf %54, %47 : vector<8x16xf32>
    %56 = arith.mulf %55, %53 : vector<8x16xf32>
    %57 = arith.mulf %47, %14 : vector<8x16xf32>
    %58 = arith.addf %56, %57 : vector<8x16xf32>
    %59 = vector.extract_strided_slice %23 {offsets = [0, 48], sizes = [8, 16], strides = [1, 1]} : vector<8x96xf32> to vector<8x16xf32>
    %60 = vector.extract_strided_slice %27 {offsets = [0, 0], sizes = [8, 16], strides = [1, 1]} : vector<8x48xf32> to vector<8x16xf32>
    %61 = arith.addf %59, %60 : vector<8x16xf32>
    %cst_24 = arith.constant 5.000000e-01 : f32
    %62 = vector.broadcast %cst_24 : f32 to vector<8x16xf32>
    %63 = arith.mulf %62, %61 : vector<8x16xf32>
    %64 = math.tanh %63 : vector<8x16xf32>
    %cst_25 = arith.constant 1.000000e+00 : f32
    %65 = vector.broadcast %cst_25 : f32 to vector<8x16xf32>
    %66 = arith.addf %64, %65 : vector<8x16xf32>
    %cst_26 = arith.constant 5.000000e-01 : f32
    %67 = vector.broadcast %cst_26 : f32 to vector<8x16xf32>
    %68 = arith.mulf %67, %66 : vector<8x16xf32>
    %69 = vector.extract_strided_slice %23 {offsets = [0, 64], sizes = [8, 16], strides = [1, 1]} : vector<8x96xf32> to vector<8x16xf32>
    %70 = vector.extract_strided_slice %27 {offsets = [0, 16], sizes = [8, 16], strides = [1, 1]} : vector<8x48xf32> to vector<8x16xf32>
    %71 = arith.addf %69, %70 : vector<8x16xf32>
    %cst_27 = arith.constant 5.000000e-01 : f32
    %72 = vector.broadcast %cst_27 : f32 to vector<8x16xf32>
    %73 = arith.mulf %72, %71 : vector<8x16xf32>
    %74 = math.tanh %73 : vector<8x16xf32>
    %cst_28 = arith.constant 1.000000e+00 : f32
    %75 = vector.broadcast %cst_28 : f32 to vector<8x16xf32>
    %76 = arith.addf %74, %75 : vector<8x16xf32>
    %cst_29 = arith.constant 5.000000e-01 : f32
    %77 = vector.broadcast %cst_29 : f32 to vector<8x16xf32>
    %78 = arith.mulf %77, %76 : vector<8x16xf32>
    %79 = vector.extract_strided_slice %23 {offsets = [0, 80], sizes = [8, 16], strides = [1, 1]} : vector<8x96xf32> to vector<8x16xf32>
    %80 = vector.extract_strided_slice %27 {offsets = [0, 32], sizes = [8, 16], strides = [1, 1]} : vector<8x48xf32> to vector<8x16xf32>
    %81 = arith.addf %80, %12 : vector<8x16xf32>
    %82 = arith.mulf %68, %81 : vector<8x16xf32>
    %83 = arith.addf %79, %82 : vector<8x16xf32>
    %84 = math.tanh %83 : vector<8x16xf32>
    %cst_30 = arith.constant 1.000000e+00 : f32
    %85 = vector.broadcast %cst_30 : f32 to vector<8x16xf32>
    %86 = arith.subf %85, %78 : vector<8x16xf32>
    %87 = arith.mulf %86, %84 : vector<8x16xf32>
    %88 = arith.mulf %78, %14 : vector<8x16xf32>
    %89 = arith.addf %87, %88 : vector<8x16xf32>
    %90 = arith.index_cast %16 : i32 to index
    %c0_31 = arith.constant 0 : index
    %91 = vector.load %arg7[%90, %c0_31] : memref<64x32xf32, #tpu.memory_space<vmem>>, vector<8x16xf32>
    tpu.vector_store %arg7[%90, %c0_31], %58 {strides = array<i32>} : memref<64x32xf32, #tpu.memory_space<vmem>>, vector<8x16xf32>,
    %92 = arith.index_cast %19 : i32 to index
    %c16_32 = arith.constant 16 : index
    %93 = vector.load %arg7[%92, %c16_32] : memref<64x32xf32, #tpu.memory_space<vmem>>, vector<8x16xf32>
    tpu.vector_store %arg7[%92, %c16_32], %89 {strides = array<i32>} : memref<64x32xf32, #tpu.memory_space<vmem>>, vector<8x16xf32>,
    %c1_i32 = arith.constant 1 : i32
    %c8_i32_33 = arith.constant 8 : i32
    %94 = arith.muli %c1_i32, %c8_i32_33 : i32
    %95 = tpu.assume_multiple %94, 8 : i32
    %c7_i32_34 = arith.constant 7 : i32
    %96 = arith.subi %c7_i32_34, %c1_i32 : i32
    %c8_i32_35 = arith.constant 8 : i32
    %97 = arith.muli %96, %c8_i32_35 : i32
    %98 = tpu.assume_multiple %97, 8 : i32
    %99 = arith.index_cast %95 : i32 to index
    %c0_36 = arith.constant 0 : index
    %100 = vector.load %arg6[%99, %c0_36] : memref<64x96xf32, #tpu.memory_space<vmem>>, vector<8x96xf32>
    %101 = arith.index_cast %98 : i32 to index
    %c0_37 = arith.constant 0 : index
    %102 = vector.load %arg6[%101, %c0_37] : memref<64x96xf32, #tpu.memory_space<vmem>>, vector<8x96xf32>
    %103 = tpu.concatenate %58, %89 in 1 : vector<8x16xf32>, vector<8x16xf32> -> vector<8x32xf32>
    %cst_38 = arith.constant dense<0.000000e+00> : vector<8x96xf32>
    %104 = tpu.matmul %103, %13, %cst_38 {dimension_numbers = #tpu.dot_dimension_numbers<[1], [0], [0], [1], [0, 0, 1, 1], [], []>} : vector<8x32xf32>, vector<32x96xf32>, vector<8x96xf32> -> vector<8x96xf32>
    %105 = vector.extract_strided_slice %104 {offsets = [0, 0], sizes = [8, 48], strides = [1, 1]} : vector<8x96xf32> to vector<8x48xf32>
    %106 = vector.extract_strided_slice %104 {offsets = [0, 48], sizes = [8, 48], strides = [1, 1]} : vector<8x96xf32> to vector<8x48xf32>
    %107 = vector.extract_strided_slice %100 {offsets = [0, 0], sizes = [8, 16], strides = [1, 1]} : vector<8x96xf32> to vector<8x16xf32>
    %108 = vector.extract_strided_slice %105 {offsets = [0, 0], sizes = [8, 16], strides = [1, 1]} : vector<8x48xf32> to vector<8x16xf32>
    %109 = arith.addf %107, %108 : vector<8x16xf32>
    %cst_39 = arith.constant 5.000000e-01 : f32
    %110 = vector.broadcast %cst_39 : f32 to vector<8x16xf32>
    %111 = arith.mulf %110, %109 : vector<8x16xf32>
    %112 = math.tanh %111 : vector<8x16xf32>
    %cst_40 = arith.constant 1.000000e+00 : f32
    %113 = vector.broadcast %cst_40 : f32 to vector<8x16xf32>
    %114 = arith.addf %112, %113 : vector<8x16xf32>
    %cst_41 = arith.constant 5.000000e-01 : f32
    %115 = vector.broadcast %cst_41 : f32 to vector<8x16xf32>
    %116 = arith.mulf %115, %114 : vector<8x16xf32>
    %117 = vector.extract_strided_slice %100 {offsets = [0, 16], sizes = [8, 16], strides = [1, 1]} : vector<8x96xf32> to vector<8x16xf32>
    %118 = vector.extract_strided_slice %105 {offsets = [0, 16], sizes = [8, 16], strides = [1, 1]} : vector<8x48xf32> to vector<8x16xf32>
    %119 = arith.addf %117, %118 : vector<8x16xf32>
    %cst_42 = arith.constant 5.000000e-01 : f32
    %120 = vector.broadcast %cst_42 : f32 to vector<8x16xf32>
    %121 = arith.mulf %120, %119 : vector<8x16xf32>
    %122 = math.tanh %121 : vector<8x16xf32>
    %cst_43 = arith.constant 1.000000e+00 : f32
    %123 = vector.broadcast %cst_43 : f32 to vector<8x16xf32>
    %124 = arith.addf %122, %123 : vector<8x16xf32>
    %cst_44 = arith.constant 5.000000e-01 : f32
    %125 = vector.broadcast %cst_44 : f32 to vector<8x16xf32>
    %126 = arith.mulf %125, %124 : vector<8x16xf32>
    %127 = vector.extract_strided_slice %100 {offsets = [0, 32], sizes = [8, 16], strides = [1, 1]} : vector<8x96xf32> to vector<8x16xf32>
    %128 = vector.extract_strided_slice %105 {offsets = [0, 32], sizes = [8, 16], strides = [1, 1]} : vector<8x48xf32> to vector<8x16xf32>
    %129 = arith.addf %128, %9 : vector<8x16xf32>
    %130 = arith.mulf %116, %129 : vector<8x16xf32>
    %131 = arith.addf %127, %130 : vector<8x16xf32>
    %132 = math.tanh %131 : vector<8x16xf32>
    %cst_45 = arith.constant 1.000000e+00 : f32
    %133 = vector.broadcast %cst_45 : f32 to vector<8x16xf32>
    %134 = arith.subf %133, %126 : vector<8x16xf32>
    %135 = arith.mulf %134, %132 : vector<8x16xf32>
    %136 = arith.mulf %126, %58 : vector<8x16xf32>
    %137 = arith.addf %135, %136 : vector<8x16xf32>
    %138 = vector.extract_strided_slice %102 {offsets = [0, 48], sizes = [8, 16], strides = [1, 1]} : vector<8x96xf32> to vector<8x16xf32>
    %139 = vector.extract_strided_slice %106 {offsets = [0, 0], sizes = [8, 16], strides = [1, 1]} : vector<8x48xf32> to vector<8x16xf32>
    %140 = arith.addf %138, %139 : vector<8x16xf32>
    %cst_46 = arith.constant 5.000000e-01 : f32
    %141 = vector.broadcast %cst_46 : f32 to vector<8x16xf32>
    %142 = arith.mulf %141, %140 : vector<8x16xf32>
    %143 = math.tanh %142 : vector<8x16xf32>
    %cst_47 = arith.constant 1.000000e+00 : f32
    %144 = vector.broadcast %cst_47 : f32 to vector<8x16xf32>
    %145 = arith.addf %143, %144 : vector<8x16xf32>
    %cst_48 = arith.constant 5.000000e-01 : f32
    %146 = vector.broadcast %cst_48 : f32 to vector<8x16xf32>
    %147 = arith.mulf %146, %145 : vector<8x16xf32>
    %148 = vector.extract_strided_slice %102 {offsets = [0, 64], sizes = [8, 16], strides = [1, 1]} : vector<8x96xf32> to vector<8x16xf32>
    %149 = vector.extract_strided_slice %106 {offsets = [0, 16], sizes = [8, 16], strides = [1, 1]} : vector<8x48xf32> to vector<8x16xf32>
    %150 = arith.addf %148, %149 : vector<8x16xf32>
    %cst_49 = arith.constant 5.000000e-01 : f32
    %151 = vector.broadcast %cst_49 : f32 to vector<8x16xf32>
    %152 = arith.mulf %151, %150 : vector<8x16xf32>
    %153 = math.tanh %152 : vector<8x16xf32>
    %cst_50 = arith.constant 1.000000e+00 : f32
    %154 = vector.broadcast %cst_50 : f32 to vector<8x16xf32>
    %155 = arith.addf %153, %154 : vector<8x16xf32>
    %cst_51 = arith.constant 5.000000e-01 : f32
    %156 = vector.broadcast %cst_51 : f32 to vector<8x16xf32>
    %157 = arith.mulf %156, %155 : vector<8x16xf32>
    %158 = vector.extract_strided_slice %102 {offsets = [0, 80], sizes = [8, 16], strides = [1, 1]} : vector<8x96xf32> to vector<8x16xf32>
    %159 = vector.extract_strided_slice %106 {offsets = [0, 32], sizes = [8, 16], strides = [1, 1]} : vector<8x48xf32> to vector<8x16xf32>
    %160 = arith.addf %159, %12 : vector<8x16xf32>
    %161 = arith.mulf %147, %160 : vector<8x16xf32>
    %162 = arith.addf %158, %161 : vector<8x16xf32>
    %163 = math.tanh %162 : vector<8x16xf32>
    %cst_52 = arith.constant 1.000000e+00 : f32
    %164 = vector.broadcast %cst_52 : f32 to vector<8x16xf32>
    %165 = arith.subf %164, %157 : vector<8x16xf32>
    %166 = arith.mulf %165, %163 : vector<8x16xf32>
    %167 = arith.mulf %157, %89 : vector<8x16xf32>
    %168 = arith.addf %166, %167 : vector<8x16xf32>
    %169 = arith.index_cast %95 : i32 to index
    %c0_53 = arith.constant 0 : index
    %170 = vector.load %arg7[%169, %c0_53] : memref<64x32xf32, #tpu.memory_space<vmem>>, vector<8x16xf32>
    tpu.vector_store %arg7[%169, %c0_53], %137 {strides = array<i32>} : memref<64x32xf32, #tpu.memory_space<vmem>>, vector<8x16xf32>,
    %171 = arith.index_cast %98 : i32 to index
    %c16_54 = arith.constant 16 : index
    %172 = vector.load %arg7[%171, %c16_54] : memref<64x32xf32, #tpu.memory_space<vmem>>, vector<8x16xf32>
    tpu.vector_store %arg7[%171, %c16_54], %168 {strides = array<i32>} : memref<64x32xf32, #tpu.memory_space<vmem>>, vector<8x16xf32>,
    %c2_i32 = arith.constant 2 : i32
    %c8_i32_55 = arith.constant 8 : i32
    %173 = arith.muli %c2_i32, %c8_i32_55 : i32
    %174 = tpu.assume_multiple %173, 8 : i32
    %c7_i32_56 = arith.constant 7 : i32
    %175 = arith.subi %c7_i32_56, %c2_i32 : i32
    %c8_i32_57 = arith.constant 8 : i32
    %176 = arith.muli %175, %c8_i32_57 : i32
    %177 = tpu.assume_multiple %176, 8 : i32
    %178 = arith.index_cast %174 : i32 to index
    %c0_58 = arith.constant 0 : index
    %179 = vector.load %arg6[%178, %c0_58] : memref<64x96xf32, #tpu.memory_space<vmem>>, vector<8x96xf32>
    %180 = arith.index_cast %177 : i32 to index
    %c0_59 = arith.constant 0 : index
    %181 = vector.load %arg6[%180, %c0_59] : memref<64x96xf32, #tpu.memory_space<vmem>>, vector<8x96xf32>
    %182 = tpu.concatenate %137, %168 in 1 : vector<8x16xf32>, vector<8x16xf32> -> vector<8x32xf32>
    %cst_60 = arith.constant dense<0.000000e+00> : vector<8x96xf32>
    %183 = tpu.matmul %182, %13, %cst_60 {dimension_numbers = #tpu.dot_dimension_numbers<[1], [0], [0], [1], [0, 0, 1, 1], [], []>} : vector<8x32xf32>, vector<32x96xf32>, vector<8x96xf32> -> vector<8x96xf32>
    %184 = vector.extract_strided_slice %183 {offsets = [0, 0], sizes = [8, 48], strides = [1, 1]} : vector<8x96xf32> to vector<8x48xf32>
    %185 = vector.extract_strided_slice %183 {offsets = [0, 48], sizes = [8, 48], strides = [1, 1]} : vector<8x96xf32> to vector<8x48xf32>
    %186 = vector.extract_strided_slice %179 {offsets = [0, 0], sizes = [8, 16], strides = [1, 1]} : vector<8x96xf32> to vector<8x16xf32>
    %187 = vector.extract_strided_slice %184 {offsets = [0, 0], sizes = [8, 16], strides = [1, 1]} : vector<8x48xf32> to vector<8x16xf32>
    %188 = arith.addf %186, %187 : vector<8x16xf32>
    %cst_61 = arith.constant 5.000000e-01 : f32
    %189 = vector.broadcast %cst_61 : f32 to vector<8x16xf32>
    %190 = arith.mulf %189, %188 : vector<8x16xf32>
    %191 = math.tanh %190 : vector<8x16xf32>
    %cst_62 = arith.constant 1.000000e+00 : f32
    %192 = vector.broadcast %cst_62 : f32 to vector<8x16xf32>
    %193 = arith.addf %191, %192 : vector<8x16xf32>
    %cst_63 = arith.constant 5.000000e-01 : f32
    %194 = vector.broadcast %cst_63 : f32 to vector<8x16xf32>
    %195 = arith.mulf %194, %193 : vector<8x16xf32>
    %196 = vector.extract_strided_slice %179 {offsets = [0, 16], sizes = [8, 16], strides = [1, 1]} : vector<8x96xf32> to vector<8x16xf32>
    %197 = vector.extract_strided_slice %184 {offsets = [0, 16], sizes = [8, 16], strides = [1, 1]} : vector<8x48xf32> to vector<8x16xf32>
    %198 = arith.addf %196, %197 : vector<8x16xf32>
    %cst_64 = arith.constant 5.000000e-01 : f32
    %199 = vector.broadcast %cst_64 : f32 to vector<8x16xf32>
    %200 = arith.mulf %199, %198 : vector<8x16xf32>
    %201 = math.tanh %200 : vector<8x16xf32>
    %cst_65 = arith.constant 1.000000e+00 : f32
    %202 = vector.broadcast %cst_65 : f32 to vector<8x16xf32>
    %203 = arith.addf %201, %202 : vector<8x16xf32>
    %cst_66 = arith.constant 5.000000e-01 : f32
    %204 = vector.broadcast %cst_66 : f32 to vector<8x16xf32>
    %205 = arith.mulf %204, %203 : vector<8x16xf32>
    %206 = vector.extract_strided_slice %179 {offsets = [0, 32], sizes = [8, 16], strides = [1, 1]} : vector<8x96xf32> to vector<8x16xf32>
    %207 = vector.extract_strided_slice %184 {offsets = [0, 32], sizes = [8, 16], strides = [1, 1]} : vector<8x48xf32> to vector<8x16xf32>
    %208 = arith.addf %207, %9 : vector<8x16xf32>
    %209 = arith.mulf %195, %208 : vector<8x16xf32>
    %210 = arith.addf %206, %209 : vector<8x16xf32>
    %211 = math.tanh %210 : vector<8x16xf32>
    %cst_67 = arith.constant 1.000000e+00 : f32
    %212 = vector.broadcast %cst_67 : f32 to vector<8x16xf32>
    %213 = arith.subf %212, %205 : vector<8x16xf32>
    %214 = arith.mulf %213, %211 : vector<8x16xf32>
    %215 = arith.mulf %205, %137 : vector<8x16xf32>
    %216 = arith.addf %214, %215 : vector<8x16xf32>
    %217 = vector.extract_strided_slice %181 {offsets = [0, 48], sizes = [8, 16], strides = [1, 1]} : vector<8x96xf32> to vector<8x16xf32>
    %218 = vector.extract_strided_slice %185 {offsets = [0, 0], sizes = [8, 16], strides = [1, 1]} : vector<8x48xf32> to vector<8x16xf32>
    %219 = arith.addf %217, %218 : vector<8x16xf32>
    %cst_68 = arith.constant 5.000000e-01 : f32
    %220 = vector.broadcast %cst_68 : f32 to vector<8x16xf32>
    %221 = arith.mulf %220, %219 : vector<8x16xf32>
    %222 = math.tanh %221 : vector<8x16xf32>
    %cst_69 = arith.constant 1.000000e+00 : f32
    %223 = vector.broadcast %cst_69 : f32 to vector<8x16xf32>
    %224 = arith.addf %222, %223 : vector<8x16xf32>
    %cst_70 = arith.constant 5.000000e-01 : f32
    %225 = vector.broadcast %cst_70 : f32 to vector<8x16xf32>
    %226 = arith.mulf %225, %224 : vector<8x16xf32>
    %227 = vector.extract_strided_slice %181 {offsets = [0, 64], sizes = [8, 16], strides = [1, 1]} : vector<8x96xf32> to vector<8x16xf32>
    %228 = vector.extract_strided_slice %185 {offsets = [0, 16], sizes = [8, 16], strides = [1, 1]} : vector<8x48xf32> to vector<8x16xf32>
    %229 = arith.addf %227, %228 : vector<8x16xf32>
    %cst_71 = arith.constant 5.000000e-01 : f32
    %230 = vector.broadcast %cst_71 : f32 to vector<8x16xf32>
    %231 = arith.mulf %230, %229 : vector<8x16xf32>
    %232 = math.tanh %231 : vector<8x16xf32>
    %cst_72 = arith.constant 1.000000e+00 : f32
    %233 = vector.broadcast %cst_72 : f32 to vector<8x16xf32>
    %234 = arith.addf %232, %233 : vector<8x16xf32>
    %cst_73 = arith.constant 5.000000e-01 : f32
    %235 = vector.broadcast %cst_73 : f32 to vector<8x16xf32>
    %236 = arith.mulf %235, %234 : vector<8x16xf32>
    %237 = vector.extract_strided_slice %181 {offsets = [0, 80], sizes = [8, 16], strides = [1, 1]} : vector<8x96xf32> to vector<8x16xf32>
    %238 = vector.extract_strided_slice %185 {offsets = [0, 32], sizes = [8, 16], strides = [1, 1]} : vector<8x48xf32> to vector<8x16xf32>
    %239 = arith.addf %238, %12 : vector<8x16xf32>
    %240 = arith.mulf %226, %239 : vector<8x16xf32>
    %241 = arith.addf %237, %240 : vector<8x16xf32>
    %242 = math.tanh %241 : vector<8x16xf32>
    %cst_74 = arith.constant 1.000000e+00 : f32
    %243 = vector.broadcast %cst_74 : f32 to vector<8x16xf32>
    %244 = arith.subf %243, %236 : vector<8x16xf32>
    %245 = arith.mulf %244, %242 : vector<8x16xf32>
    %246 = arith.mulf %236, %168 : vector<8x16xf32>
    %247 = arith.addf %245, %246 : vector<8x16xf32>
    %248 = arith.index_cast %174 : i32 to index
    %c0_75 = arith.constant 0 : index
    %249 = vector.load %arg7[%248, %c0_75] : memref<64x32xf32, #tpu.memory_space<vmem>>, vector<8x16xf32>
    tpu.vector_store %arg7[%248, %c0_75], %216 {strides = array<i32>} : memref<64x32xf32, #tpu.memory_space<vmem>>, vector<8x16xf32>,
    %250 = arith.index_cast %177 : i32 to index
    %c16_76 = arith.constant 16 : index
    %251 = vector.load %arg7[%250, %c16_76] : memref<64x32xf32, #tpu.memory_space<vmem>>, vector<8x16xf32>
    tpu.vector_store %arg7[%250, %c16_76], %247 {strides = array<i32>} : memref<64x32xf32, #tpu.memory_space<vmem>>, vector<8x16xf32>,
    %c3_i32 = arith.constant 3 : i32
    %c8_i32_77 = arith.constant 8 : i32
    %252 = arith.muli %c3_i32, %c8_i32_77 : i32
    %253 = tpu.assume_multiple %252, 8 : i32
    %c7_i32_78 = arith.constant 7 : i32
    %254 = arith.subi %c7_i32_78, %c3_i32 : i32
    %c8_i32_79 = arith.constant 8 : i32
    %255 = arith.muli %254, %c8_i32_79 : i32
    %256 = tpu.assume_multiple %255, 8 : i32
    %257 = arith.index_cast %253 : i32 to index
    %c0_80 = arith.constant 0 : index
    %258 = vector.load %arg6[%257, %c0_80] : memref<64x96xf32, #tpu.memory_space<vmem>>, vector<8x96xf32>
    %259 = arith.index_cast %256 : i32 to index
    %c0_81 = arith.constant 0 : index
    %260 = vector.load %arg6[%259, %c0_81] : memref<64x96xf32, #tpu.memory_space<vmem>>, vector<8x96xf32>
    %261 = tpu.concatenate %216, %247 in 1 : vector<8x16xf32>, vector<8x16xf32> -> vector<8x32xf32>
    %cst_82 = arith.constant dense<0.000000e+00> : vector<8x96xf32>
    %262 = tpu.matmul %261, %13, %cst_82 {dimension_numbers = #tpu.dot_dimension_numbers<[1], [0], [0], [1], [0, 0, 1, 1], [], []>} : vector<8x32xf32>, vector<32x96xf32>, vector<8x96xf32> -> vector<8x96xf32>
    %263 = vector.extract_strided_slice %262 {offsets = [0, 0], sizes = [8, 48], strides = [1, 1]} : vector<8x96xf32> to vector<8x48xf32>
    %264 = vector.extract_strided_slice %262 {offsets = [0, 48], sizes = [8, 48], strides = [1, 1]} : vector<8x96xf32> to vector<8x48xf32>
    %265 = vector.extract_strided_slice %258 {offsets = [0, 0], sizes = [8, 16], strides = [1, 1]} : vector<8x96xf32> to vector<8x16xf32>
    %266 = vector.extract_strided_slice %263 {offsets = [0, 0], sizes = [8, 16], strides = [1, 1]} : vector<8x48xf32> to vector<8x16xf32>
    %267 = arith.addf %265, %266 : vector<8x16xf32>
    %cst_83 = arith.constant 5.000000e-01 : f32
    %268 = vector.broadcast %cst_83 : f32 to vector<8x16xf32>
    %269 = arith.mulf %268, %267 : vector<8x16xf32>
    %270 = math.tanh %269 : vector<8x16xf32>
    %cst_84 = arith.constant 1.000000e+00 : f32
    %271 = vector.broadcast %cst_84 : f32 to vector<8x16xf32>
    %272 = arith.addf %270, %271 : vector<8x16xf32>
    %cst_85 = arith.constant 5.000000e-01 : f32
    %273 = vector.broadcast %cst_85 : f32 to vector<8x16xf32>
    %274 = arith.mulf %273, %272 : vector<8x16xf32>
    %275 = vector.extract_strided_slice %258 {offsets = [0, 16], sizes = [8, 16], strides = [1, 1]} : vector<8x96xf32> to vector<8x16xf32>
    %276 = vector.extract_strided_slice %263 {offsets = [0, 16], sizes = [8, 16], strides = [1, 1]} : vector<8x48xf32> to vector<8x16xf32>
    %277 = arith.addf %275, %276 : vector<8x16xf32>
    %cst_86 = arith.constant 5.000000e-01 : f32
    %278 = vector.broadcast %cst_86 : f32 to vector<8x16xf32>
    %279 = arith.mulf %278, %277 : vector<8x16xf32>
    %280 = math.tanh %279 : vector<8x16xf32>
    %cst_87 = arith.constant 1.000000e+00 : f32
    %281 = vector.broadcast %cst_87 : f32 to vector<8x16xf32>
    %282 = arith.addf %280, %281 : vector<8x16xf32>
    %cst_88 = arith.constant 5.000000e-01 : f32
    %283 = vector.broadcast %cst_88 : f32 to vector<8x16xf32>
    %284 = arith.mulf %283, %282 : vector<8x16xf32>
    %285 = vector.extract_strided_slice %258 {offsets = [0, 32], sizes = [8, 16], strides = [1, 1]} : vector<8x96xf32> to vector<8x16xf32>
    %286 = vector.extract_strided_slice %263 {offsets = [0, 32], sizes = [8, 16], strides = [1, 1]} : vector<8x48xf32> to vector<8x16xf32>
    %287 = arith.addf %286, %9 : vector<8x16xf32>
    %288 = arith.mulf %274, %287 : vector<8x16xf32>
    %289 = arith.addf %285, %288 : vector<8x16xf32>
    %290 = math.tanh %289 : vector<8x16xf32>
    %cst_89 = arith.constant 1.000000e+00 : f32
    %291 = vector.broadcast %cst_89 : f32 to vector<8x16xf32>
    %292 = arith.subf %291, %284 : vector<8x16xf32>
    %293 = arith.mulf %292, %290 : vector<8x16xf32>
    %294 = arith.mulf %284, %216 : vector<8x16xf32>
    %295 = arith.addf %293, %294 : vector<8x16xf32>
    %296 = vector.extract_strided_slice %260 {offsets = [0, 48], sizes = [8, 16], strides = [1, 1]} : vector<8x96xf32> to vector<8x16xf32>
    %297 = vector.extract_strided_slice %264 {offsets = [0, 0], sizes = [8, 16], strides = [1, 1]} : vector<8x48xf32> to vector<8x16xf32>
    %298 = arith.addf %296, %297 : vector<8x16xf32>
    %cst_90 = arith.constant 5.000000e-01 : f32
    %299 = vector.broadcast %cst_90 : f32 to vector<8x16xf32>
    %300 = arith.mulf %299, %298 : vector<8x16xf32>
    %301 = math.tanh %300 : vector<8x16xf32>
    %cst_91 = arith.constant 1.000000e+00 : f32
    %302 = vector.broadcast %cst_91 : f32 to vector<8x16xf32>
    %303 = arith.addf %301, %302 : vector<8x16xf32>
    %cst_92 = arith.constant 5.000000e-01 : f32
    %304 = vector.broadcast %cst_92 : f32 to vector<8x16xf32>
    %305 = arith.mulf %304, %303 : vector<8x16xf32>
    %306 = vector.extract_strided_slice %260 {offsets = [0, 64], sizes = [8, 16], strides = [1, 1]} : vector<8x96xf32> to vector<8x16xf32>
    %307 = vector.extract_strided_slice %264 {offsets = [0, 16], sizes = [8, 16], strides = [1, 1]} : vector<8x48xf32> to vector<8x16xf32>
    %308 = arith.addf %306, %307 : vector<8x16xf32>
    %cst_93 = arith.constant 5.000000e-01 : f32
    %309 = vector.broadcast %cst_93 : f32 to vector<8x16xf32>
    %310 = arith.mulf %309, %308 : vector<8x16xf32>
    %311 = math.tanh %310 : vector<8x16xf32>
    %cst_94 = arith.constant 1.000000e+00 : f32
    %312 = vector.broadcast %cst_94 : f32 to vector<8x16xf32>
    %313 = arith.addf %311, %312 : vector<8x16xf32>
    %cst_95 = arith.constant 5.000000e-01 : f32
    %314 = vector.broadcast %cst_95 : f32 to vector<8x16xf32>
    %315 = arith.mulf %314, %313 : vector<8x16xf32>
    %316 = vector.extract_strided_slice %260 {offsets = [0, 80], sizes = [8, 16], strides = [1, 1]} : vector<8x96xf32> to vector<8x16xf32>
    %317 = vector.extract_strided_slice %264 {offsets = [0, 32], sizes = [8, 16], strides = [1, 1]} : vector<8x48xf32> to vector<8x16xf32>
    %318 = arith.addf %317, %12 : vector<8x16xf32>
    %319 = arith.mulf %305, %318 : vector<8x16xf32>
    %320 = arith.addf %316, %319 : vector<8x16xf32>
    %321 = math.tanh %320 : vector<8x16xf32>
    %cst_96 = arith.constant 1.000000e+00 : f32
    %322 = vector.broadcast %cst_96 : f32 to vector<8x16xf32>
    %323 = arith.subf %322, %315 : vector<8x16xf32>
    %324 = arith.mulf %323, %321 : vector<8x16xf32>
    %325 = arith.mulf %315, %247 : vector<8x16xf32>
    %326 = arith.addf %324, %325 : vector<8x16xf32>
    %327 = arith.index_cast %253 : i32 to index
    %c0_97 = arith.constant 0 : index
    %328 = vector.load %arg7[%327, %c0_97] : memref<64x32xf32, #tpu.memory_space<vmem>>, vector<8x16xf32>
    tpu.vector_store %arg7[%327, %c0_97], %295 {strides = array<i32>} : memref<64x32xf32, #tpu.memory_space<vmem>>, vector<8x16xf32>,
    %329 = arith.index_cast %256 : i32 to index
    %c16_98 = arith.constant 16 : index
    %330 = vector.load %arg7[%329, %c16_98] : memref<64x32xf32, #tpu.memory_space<vmem>>, vector<8x16xf32>
    tpu.vector_store %arg7[%329, %c16_98], %326 {strides = array<i32>} : memref<64x32xf32, #tpu.memory_space<vmem>>, vector<8x16xf32>,
    %c4_i32 = arith.constant 4 : i32
    %c8_i32_99 = arith.constant 8 : i32
    %331 = arith.muli %c4_i32, %c8_i32_99 : i32
    %332 = tpu.assume_multiple %331, 8 : i32
    %c7_i32_100 = arith.constant 7 : i32
    %333 = arith.subi %c7_i32_100, %c4_i32 : i32
    %c8_i32_101 = arith.constant 8 : i32
    %334 = arith.muli %333, %c8_i32_101 : i32
    %335 = tpu.assume_multiple %334, 8 : i32
    %336 = arith.index_cast %332 : i32 to index
    %c0_102 = arith.constant 0 : index
    %337 = vector.load %arg6[%336, %c0_102] : memref<64x96xf32, #tpu.memory_space<vmem>>, vector<8x96xf32>
    %338 = arith.index_cast %335 : i32 to index
    %c0_103 = arith.constant 0 : index
    %339 = vector.load %arg6[%338, %c0_103] : memref<64x96xf32, #tpu.memory_space<vmem>>, vector<8x96xf32>
    %340 = tpu.concatenate %295, %326 in 1 : vector<8x16xf32>, vector<8x16xf32> -> vector<8x32xf32>
    %cst_104 = arith.constant dense<0.000000e+00> : vector<8x96xf32>
    %341 = tpu.matmul %340, %13, %cst_104 {dimension_numbers = #tpu.dot_dimension_numbers<[1], [0], [0], [1], [0, 0, 1, 1], [], []>} : vector<8x32xf32>, vector<32x96xf32>, vector<8x96xf32> -> vector<8x96xf32>
    %342 = vector.extract_strided_slice %341 {offsets = [0, 0], sizes = [8, 48], strides = [1, 1]} : vector<8x96xf32> to vector<8x48xf32>
    %343 = vector.extract_strided_slice %341 {offsets = [0, 48], sizes = [8, 48], strides = [1, 1]} : vector<8x96xf32> to vector<8x48xf32>
    %344 = vector.extract_strided_slice %337 {offsets = [0, 0], sizes = [8, 16], strides = [1, 1]} : vector<8x96xf32> to vector<8x16xf32>
    %345 = vector.extract_strided_slice %342 {offsets = [0, 0], sizes = [8, 16], strides = [1, 1]} : vector<8x48xf32> to vector<8x16xf32>
    %346 = arith.addf %344, %345 : vector<8x16xf32>
    %cst_105 = arith.constant 5.000000e-01 : f32
    %347 = vector.broadcast %cst_105 : f32 to vector<8x16xf32>
    %348 = arith.mulf %347, %346 : vector<8x16xf32>
    %349 = math.tanh %348 : vector<8x16xf32>
    %cst_106 = arith.constant 1.000000e+00 : f32
    %350 = vector.broadcast %cst_106 : f32 to vector<8x16xf32>
    %351 = arith.addf %349, %350 : vector<8x16xf32>
    %cst_107 = arith.constant 5.000000e-01 : f32
    %352 = vector.broadcast %cst_107 : f32 to vector<8x16xf32>
    %353 = arith.mulf %352, %351 : vector<8x16xf32>
    %354 = vector.extract_strided_slice %337 {offsets = [0, 16], sizes = [8, 16], strides = [1, 1]} : vector<8x96xf32> to vector<8x16xf32>
    %355 = vector.extract_strided_slice %342 {offsets = [0, 16], sizes = [8, 16], strides = [1, 1]} : vector<8x48xf32> to vector<8x16xf32>
    %356 = arith.addf %354, %355 : vector<8x16xf32>
    %cst_108 = arith.constant 5.000000e-01 : f32
    %357 = vector.broadcast %cst_108 : f32 to vector<8x16xf32>
    %358 = arith.mulf %357, %356 : vector<8x16xf32>
    %359 = math.tanh %358 : vector<8x16xf32>
    %cst_109 = arith.constant 1.000000e+00 : f32
    %360 = vector.broadcast %cst_109 : f32 to vector<8x16xf32>
    %361 = arith.addf %359, %360 : vector<8x16xf32>
    %cst_110 = arith.constant 5.000000e-01 : f32
    %362 = vector.broadcast %cst_110 : f32 to vector<8x16xf32>
    %363 = arith.mulf %362, %361 : vector<8x16xf32>
    %364 = vector.extract_strided_slice %337 {offsets = [0, 32], sizes = [8, 16], strides = [1, 1]} : vector<8x96xf32> to vector<8x16xf32>
    %365 = vector.extract_strided_slice %342 {offsets = [0, 32], sizes = [8, 16], strides = [1, 1]} : vector<8x48xf32> to vector<8x16xf32>
    %366 = arith.addf %365, %9 : vector<8x16xf32>
    %367 = arith.mulf %353, %366 : vector<8x16xf32>
    %368 = arith.addf %364, %367 : vector<8x16xf32>
    %369 = math.tanh %368 : vector<8x16xf32>
    %cst_111 = arith.constant 1.000000e+00 : f32
    %370 = vector.broadcast %cst_111 : f32 to vector<8x16xf32>
    %371 = arith.subf %370, %363 : vector<8x16xf32>
    %372 = arith.mulf %371, %369 : vector<8x16xf32>
    %373 = arith.mulf %363, %295 : vector<8x16xf32>
    %374 = arith.addf %372, %373 : vector<8x16xf32>
    %375 = vector.extract_strided_slice %339 {offsets = [0, 48], sizes = [8, 16], strides = [1, 1]} : vector<8x96xf32> to vector<8x16xf32>
    %376 = vector.extract_strided_slice %343 {offsets = [0, 0], sizes = [8, 16], strides = [1, 1]} : vector<8x48xf32> to vector<8x16xf32>
    %377 = arith.addf %375, %376 : vector<8x16xf32>
    %cst_112 = arith.constant 5.000000e-01 : f32
    %378 = vector.broadcast %cst_112 : f32 to vector<8x16xf32>
    %379 = arith.mulf %378, %377 : vector<8x16xf32>
    %380 = math.tanh %379 : vector<8x16xf32>
    %cst_113 = arith.constant 1.000000e+00 : f32
    %381 = vector.broadcast %cst_113 : f32 to vector<8x16xf32>
    %382 = arith.addf %380, %381 : vector<8x16xf32>
    %cst_114 = arith.constant 5.000000e-01 : f32
    %383 = vector.broadcast %cst_114 : f32 to vector<8x16xf32>
    %384 = arith.mulf %383, %382 : vector<8x16xf32>
    %385 = vector.extract_strided_slice %339 {offsets = [0, 64], sizes = [8, 16], strides = [1, 1]} : vector<8x96xf32> to vector<8x16xf32>
    %386 = vector.extract_strided_slice %343 {offsets = [0, 16], sizes = [8, 16], strides = [1, 1]} : vector<8x48xf32> to vector<8x16xf32>
    %387 = arith.addf %385, %386 : vector<8x16xf32>
    %cst_115 = arith.constant 5.000000e-01 : f32
    %388 = vector.broadcast %cst_115 : f32 to vector<8x16xf32>
    %389 = arith.mulf %388, %387 : vector<8x16xf32>
    %390 = math.tanh %389 : vector<8x16xf32>
    %cst_116 = arith.constant 1.000000e+00 : f32
    %391 = vector.broadcast %cst_116 : f32 to vector<8x16xf32>
    %392 = arith.addf %390, %391 : vector<8x16xf32>
    %cst_117 = arith.constant 5.000000e-01 : f32
    %393 = vector.broadcast %cst_117 : f32 to vector<8x16xf32>
    %394 = arith.mulf %393, %392 : vector<8x16xf32>
    %395 = vector.extract_strided_slice %339 {offsets = [0, 80], sizes = [8, 16], strides = [1, 1]} : vector<8x96xf32> to vector<8x16xf32>
    %396 = vector.extract_strided_slice %343 {offsets = [0, 32], sizes = [8, 16], strides = [1, 1]} : vector<8x48xf32> to vector<8x16xf32>
    %397 = arith.addf %396, %12 : vector<8x16xf32>
    %398 = arith.mulf %384, %397 : vector<8x16xf32>
    %399 = arith.addf %395, %398 : vector<8x16xf32>
    %400 = math.tanh %399 : vector<8x16xf32>
    %cst_118 = arith.constant 1.000000e+00 : f32
    %401 = vector.broadcast %cst_118 : f32 to vector<8x16xf32>
    %402 = arith.subf %401, %394 : vector<8x16xf32>
    %403 = arith.mulf %402, %400 : vector<8x16xf32>
    %404 = arith.mulf %394, %326 : vector<8x16xf32>
    %405 = arith.addf %403, %404 : vector<8x16xf32>
    %406 = arith.index_cast %332 : i32 to index
    %c0_119 = arith.constant 0 : index
    %407 = vector.load %arg7[%406, %c0_119] : memref<64x32xf32, #tpu.memory_space<vmem>>, vector<8x16xf32>
    tpu.vector_store %arg7[%406, %c0_119], %374 {strides = array<i32>} : memref<64x32xf32, #tpu.memory_space<vmem>>, vector<8x16xf32>,
    %408 = arith.index_cast %335 : i32 to index
    %c16_120 = arith.constant 16 : index
    %409 = vector.load %arg7[%408, %c16_120] : memref<64x32xf32, #tpu.memory_space<vmem>>, vector<8x16xf32>
    tpu.vector_store %arg7[%408, %c16_120], %405 {strides = array<i32>} : memref<64x32xf32, #tpu.memory_space<vmem>>, vector<8x16xf32>,
    %c5_i32 = arith.constant 5 : i32
    %c8_i32_121 = arith.constant 8 : i32
    %410 = arith.muli %c5_i32, %c8_i32_121 : i32
    %411 = tpu.assume_multiple %410, 8 : i32
    %c7_i32_122 = arith.constant 7 : i32
    %412 = arith.subi %c7_i32_122, %c5_i32 : i32
    %c8_i32_123 = arith.constant 8 : i32
    %413 = arith.muli %412, %c8_i32_123 : i32
    %414 = tpu.assume_multiple %413, 8 : i32
    %415 = arith.index_cast %411 : i32 to index
    %c0_124 = arith.constant 0 : index
    %416 = vector.load %arg6[%415, %c0_124] : memref<64x96xf32, #tpu.memory_space<vmem>>, vector<8x96xf32>
    %417 = arith.index_cast %414 : i32 to index
    %c0_125 = arith.constant 0 : index
    %418 = vector.load %arg6[%417, %c0_125] : memref<64x96xf32, #tpu.memory_space<vmem>>, vector<8x96xf32>
    %419 = tpu.concatenate %374, %405 in 1 : vector<8x16xf32>, vector<8x16xf32> -> vector<8x32xf32>
    %cst_126 = arith.constant dense<0.000000e+00> : vector<8x96xf32>
    %420 = tpu.matmul %419, %13, %cst_126 {dimension_numbers = #tpu.dot_dimension_numbers<[1], [0], [0], [1], [0, 0, 1, 1], [], []>} : vector<8x32xf32>, vector<32x96xf32>, vector<8x96xf32> -> vector<8x96xf32>
    %421 = vector.extract_strided_slice %420 {offsets = [0, 0], sizes = [8, 48], strides = [1, 1]} : vector<8x96xf32> to vector<8x48xf32>
    %422 = vector.extract_strided_slice %420 {offsets = [0, 48], sizes = [8, 48], strides = [1, 1]} : vector<8x96xf32> to vector<8x48xf32>
    %423 = vector.extract_strided_slice %416 {offsets = [0, 0], sizes = [8, 16], strides = [1, 1]} : vector<8x96xf32> to vector<8x16xf32>
    %424 = vector.extract_strided_slice %421 {offsets = [0, 0], sizes = [8, 16], strides = [1, 1]} : vector<8x48xf32> to vector<8x16xf32>
    %425 = arith.addf %423, %424 : vector<8x16xf32>
    %cst_127 = arith.constant 5.000000e-01 : f32
    %426 = vector.broadcast %cst_127 : f32 to vector<8x16xf32>
    %427 = arith.mulf %426, %425 : vector<8x16xf32>
    %428 = math.tanh %427 : vector<8x16xf32>
    %cst_128 = arith.constant 1.000000e+00 : f32
    %429 = vector.broadcast %cst_128 : f32 to vector<8x16xf32>
    %430 = arith.addf %428, %429 : vector<8x16xf32>
    %cst_129 = arith.constant 5.000000e-01 : f32
    %431 = vector.broadcast %cst_129 : f32 to vector<8x16xf32>
    %432 = arith.mulf %431, %430 : vector<8x16xf32>
    %433 = vector.extract_strided_slice %416 {offsets = [0, 16], sizes = [8, 16], strides = [1, 1]} : vector<8x96xf32> to vector<8x16xf32>
    %434 = vector.extract_strided_slice %421 {offsets = [0, 16], sizes = [8, 16], strides = [1, 1]} : vector<8x48xf32> to vector<8x16xf32>
    %435 = arith.addf %433, %434 : vector<8x16xf32>
    %cst_130 = arith.constant 5.000000e-01 : f32
    %436 = vector.broadcast %cst_130 : f32 to vector<8x16xf32>
    %437 = arith.mulf %436, %435 : vector<8x16xf32>
    %438 = math.tanh %437 : vector<8x16xf32>
    %cst_131 = arith.constant 1.000000e+00 : f32
    %439 = vector.broadcast %cst_131 : f32 to vector<8x16xf32>
    %440 = arith.addf %438, %439 : vector<8x16xf32>
    %cst_132 = arith.constant 5.000000e-01 : f32
    %441 = vector.broadcast %cst_132 : f32 to vector<8x16xf32>
    %442 = arith.mulf %441, %440 : vector<8x16xf32>
    %443 = vector.extract_strided_slice %416 {offsets = [0, 32], sizes = [8, 16], strides = [1, 1]} : vector<8x96xf32> to vector<8x16xf32>
    %444 = vector.extract_strided_slice %421 {offsets = [0, 32], sizes = [8, 16], strides = [1, 1]} : vector<8x48xf32> to vector<8x16xf32>
    %445 = arith.addf %444, %9 : vector<8x16xf32>
    %446 = arith.mulf %432, %445 : vector<8x16xf32>
    %447 = arith.addf %443, %446 : vector<8x16xf32>
    %448 = math.tanh %447 : vector<8x16xf32>
    %cst_133 = arith.constant 1.000000e+00 : f32
    %449 = vector.broadcast %cst_133 : f32 to vector<8x16xf32>
    %450 = arith.subf %449, %442 : vector<8x16xf32>
    %451 = arith.mulf %450, %448 : vector<8x16xf32>
    %452 = arith.mulf %442, %374 : vector<8x16xf32>
    %453 = arith.addf %451, %452 : vector<8x16xf32>
    %454 = vector.extract_strided_slice %418 {offsets = [0, 48], sizes = [8, 16], strides = [1, 1]} : vector<8x96xf32> to vector<8x16xf32>
    %455 = vector.extract_strided_slice %422 {offsets = [0, 0], sizes = [8, 16], strides = [1, 1]} : vector<8x48xf32> to vector<8x16xf32>
    %456 = arith.addf %454, %455 : vector<8x16xf32>
    %cst_134 = arith.constant 5.000000e-01 : f32
    %457 = vector.broadcast %cst_134 : f32 to vector<8x16xf32>
    %458 = arith.mulf %457, %456 : vector<8x16xf32>
    %459 = math.tanh %458 : vector<8x16xf32>
    %cst_135 = arith.constant 1.000000e+00 : f32
    %460 = vector.broadcast %cst_135 : f32 to vector<8x16xf32>
    %461 = arith.addf %459, %460 : vector<8x16xf32>
    %cst_136 = arith.constant 5.000000e-01 : f32
    %462 = vector.broadcast %cst_136 : f32 to vector<8x16xf32>
    %463 = arith.mulf %462, %461 : vector<8x16xf32>
    %464 = vector.extract_strided_slice %418 {offsets = [0, 64], sizes = [8, 16], strides = [1, 1]} : vector<8x96xf32> to vector<8x16xf32>
    %465 = vector.extract_strided_slice %422 {offsets = [0, 16], sizes = [8, 16], strides = [1, 1]} : vector<8x48xf32> to vector<8x16xf32>
    %466 = arith.addf %464, %465 : vector<8x16xf32>
    %cst_137 = arith.constant 5.000000e-01 : f32
    %467 = vector.broadcast %cst_137 : f32 to vector<8x16xf32>
    %468 = arith.mulf %467, %466 : vector<8x16xf32>
    %469 = math.tanh %468 : vector<8x16xf32>
    %cst_138 = arith.constant 1.000000e+00 : f32
    %470 = vector.broadcast %cst_138 : f32 to vector<8x16xf32>
    %471 = arith.addf %469, %470 : vector<8x16xf32>
    %cst_139 = arith.constant 5.000000e-01 : f32
    %472 = vector.broadcast %cst_139 : f32 to vector<8x16xf32>
    %473 = arith.mulf %472, %471 : vector<8x16xf32>
    %474 = vector.extract_strided_slice %418 {offsets = [0, 80], sizes = [8, 16], strides = [1, 1]} : vector<8x96xf32> to vector<8x16xf32>
    %475 = vector.extract_strided_slice %422 {offsets = [0, 32], sizes = [8, 16], strides = [1, 1]} : vector<8x48xf32> to vector<8x16xf32>
    %476 = arith.addf %475, %12 : vector<8x16xf32>
    %477 = arith.mulf %463, %476 : vector<8x16xf32>
    %478 = arith.addf %474, %477 : vector<8x16xf32>
    %479 = math.tanh %478 : vector<8x16xf32>
    %cst_140 = arith.constant 1.000000e+00 : f32
    %480 = vector.broadcast %cst_140 : f32 to vector<8x16xf32>
    %481 = arith.subf %480, %473 : vector<8x16xf32>
    %482 = arith.mulf %481, %479 : vector<8x16xf32>
    %483 = arith.mulf %473, %405 : vector<8x16xf32>
    %484 = arith.addf %482, %483 : vector<8x16xf32>
    %485 = arith.index_cast %411 : i32 to index
    %c0_141 = arith.constant 0 : index
    %486 = vector.load %arg7[%485, %c0_141] : memref<64x32xf32, #tpu.memory_space<vmem>>, vector<8x16xf32>
    tpu.vector_store %arg7[%485, %c0_141], %453 {strides = array<i32>} : memref<64x32xf32, #tpu.memory_space<vmem>>, vector<8x16xf32>,
    %487 = arith.index_cast %414 : i32 to index
    %c16_142 = arith.constant 16 : index
    %488 = vector.load %arg7[%487, %c16_142] : memref<64x32xf32, #tpu.memory_space<vmem>>, vector<8x16xf32>
    tpu.vector_store %arg7[%487, %c16_142], %484 {strides = array<i32>} : memref<64x32xf32, #tpu.memory_space<vmem>>, vector<8x16xf32>,
    %c6_i32 = arith.constant 6 : i32
    %c8_i32_143 = arith.constant 8 : i32
    %489 = arith.muli %c6_i32, %c8_i32_143 : i32
    %490 = tpu.assume_multiple %489, 8 : i32
    %c7_i32_144 = arith.constant 7 : i32
    %491 = arith.subi %c7_i32_144, %c6_i32 : i32
    %c8_i32_145 = arith.constant 8 : i32
    %492 = arith.muli %491, %c8_i32_145 : i32
    %493 = tpu.assume_multiple %492, 8 : i32
    %494 = arith.index_cast %490 : i32 to index
    %c0_146 = arith.constant 0 : index
    %495 = vector.load %arg6[%494, %c0_146] : memref<64x96xf32, #tpu.memory_space<vmem>>, vector<8x96xf32>
    %496 = arith.index_cast %493 : i32 to index
    %c0_147 = arith.constant 0 : index
    %497 = vector.load %arg6[%496, %c0_147] : memref<64x96xf32, #tpu.memory_space<vmem>>, vector<8x96xf32>
    %498 = tpu.concatenate %453, %484 in 1 : vector<8x16xf32>, vector<8x16xf32> -> vector<8x32xf32>
    %cst_148 = arith.constant dense<0.000000e+00> : vector<8x96xf32>
    %499 = tpu.matmul %498, %13, %cst_148 {dimension_numbers = #tpu.dot_dimension_numbers<[1], [0], [0], [1], [0, 0, 1, 1], [], []>} : vector<8x32xf32>, vector<32x96xf32>, vector<8x96xf32> -> vector<8x96xf32>
    %500 = vector.extract_strided_slice %499 {offsets = [0, 0], sizes = [8, 48], strides = [1, 1]} : vector<8x96xf32> to vector<8x48xf32>
    %501 = vector.extract_strided_slice %499 {offsets = [0, 48], sizes = [8, 48], strides = [1, 1]} : vector<8x96xf32> to vector<8x48xf32>
    %502 = vector.extract_strided_slice %495 {offsets = [0, 0], sizes = [8, 16], strides = [1, 1]} : vector<8x96xf32> to vector<8x16xf32>
    %503 = vector.extract_strided_slice %500 {offsets = [0, 0], sizes = [8, 16], strides = [1, 1]} : vector<8x48xf32> to vector<8x16xf32>
    %504 = arith.addf %502, %503 : vector<8x16xf32>
    %cst_149 = arith.constant 5.000000e-01 : f32
    %505 = vector.broadcast %cst_149 : f32 to vector<8x16xf32>
    %506 = arith.mulf %505, %504 : vector<8x16xf32>
    %507 = math.tanh %506 : vector<8x16xf32>
    %cst_150 = arith.constant 1.000000e+00 : f32
    %508 = vector.broadcast %cst_150 : f32 to vector<8x16xf32>
    %509 = arith.addf %507, %508 : vector<8x16xf32>
    %cst_151 = arith.constant 5.000000e-01 : f32
    %510 = vector.broadcast %cst_151 : f32 to vector<8x16xf32>
    %511 = arith.mulf %510, %509 : vector<8x16xf32>
    %512 = vector.extract_strided_slice %495 {offsets = [0, 16], sizes = [8, 16], strides = [1, 1]} : vector<8x96xf32> to vector<8x16xf32>
    %513 = vector.extract_strided_slice %500 {offsets = [0, 16], sizes = [8, 16], strides = [1, 1]} : vector<8x48xf32> to vector<8x16xf32>
    %514 = arith.addf %512, %513 : vector<8x16xf32>
    %cst_152 = arith.constant 5.000000e-01 : f32
    %515 = vector.broadcast %cst_152 : f32 to vector<8x16xf32>
    %516 = arith.mulf %515, %514 : vector<8x16xf32>
    %517 = math.tanh %516 : vector<8x16xf32>
    %cst_153 = arith.constant 1.000000e+00 : f32
    %518 = vector.broadcast %cst_153 : f32 to vector<8x16xf32>
    %519 = arith.addf %517, %518 : vector<8x16xf32>
    %cst_154 = arith.constant 5.000000e-01 : f32
    %520 = vector.broadcast %cst_154 : f32 to vector<8x16xf32>
    %521 = arith.mulf %520, %519 : vector<8x16xf32>
    %522 = vector.extract_strided_slice %495 {offsets = [0, 32], sizes = [8, 16], strides = [1, 1]} : vector<8x96xf32> to vector<8x16xf32>
    %523 = vector.extract_strided_slice %500 {offsets = [0, 32], sizes = [8, 16], strides = [1, 1]} : vector<8x48xf32> to vector<8x16xf32>
    %524 = arith.addf %523, %9 : vector<8x16xf32>
    %525 = arith.mulf %511, %524 : vector<8x16xf32>
    %526 = arith.addf %522, %525 : vector<8x16xf32>
    %527 = math.tanh %526 : vector<8x16xf32>
    %cst_155 = arith.constant 1.000000e+00 : f32
    %528 = vector.broadcast %cst_155 : f32 to vector<8x16xf32>
    %529 = arith.subf %528, %521 : vector<8x16xf32>
    %530 = arith.mulf %529, %527 : vector<8x16xf32>
    %531 = arith.mulf %521, %453 : vector<8x16xf32>
    %532 = arith.addf %530, %531 : vector<8x16xf32>
    %533 = vector.extract_strided_slice %497 {offsets = [0, 48], sizes = [8, 16], strides = [1, 1]} : vector<8x96xf32> to vector<8x16xf32>
    %534 = vector.extract_strided_slice %501 {offsets = [0, 0], sizes = [8, 16], strides = [1, 1]} : vector<8x48xf32> to vector<8x16xf32>
    %535 = arith.addf %533, %534 : vector<8x16xf32>
    %cst_156 = arith.constant 5.000000e-01 : f32
    %536 = vector.broadcast %cst_156 : f32 to vector<8x16xf32>
    %537 = arith.mulf %536, %535 : vector<8x16xf32>
    %538 = math.tanh %537 : vector<8x16xf32>
    %cst_157 = arith.constant 1.000000e+00 : f32
    %539 = vector.broadcast %cst_157 : f32 to vector<8x16xf32>
    %540 = arith.addf %538, %539 : vector<8x16xf32>
    %cst_158 = arith.constant 5.000000e-01 : f32
    %541 = vector.broadcast %cst_158 : f32 to vector<8x16xf32>
    %542 = arith.mulf %541, %540 : vector<8x16xf32>
    %543 = vector.extract_strided_slice %497 {offsets = [0, 64], sizes = [8, 16], strides = [1, 1]} : vector<8x96xf32> to vector<8x16xf32>
    %544 = vector.extract_strided_slice %501 {offsets = [0, 16], sizes = [8, 16], strides = [1, 1]} : vector<8x48xf32> to vector<8x16xf32>
    %545 = arith.addf %543, %544 : vector<8x16xf32>
    %cst_159 = arith.constant 5.000000e-01 : f32
    %546 = vector.broadcast %cst_159 : f32 to vector<8x16xf32>
    %547 = arith.mulf %546, %545 : vector<8x16xf32>
    %548 = math.tanh %547 : vector<8x16xf32>
    %cst_160 = arith.constant 1.000000e+00 : f32
    %549 = vector.broadcast %cst_160 : f32 to vector<8x16xf32>
    %550 = arith.addf %548, %549 : vector<8x16xf32>
    %cst_161 = arith.constant 5.000000e-01 : f32
    %551 = vector.broadcast %cst_161 : f32 to vector<8x16xf32>
    %552 = arith.mulf %551, %550 : vector<8x16xf32>
    %553 = vector.extract_strided_slice %497 {offsets = [0, 80], sizes = [8, 16], strides = [1, 1]} : vector<8x96xf32> to vector<8x16xf32>
    %554 = vector.extract_strided_slice %501 {offsets = [0, 32], sizes = [8, 16], strides = [1, 1]} : vector<8x48xf32> to vector<8x16xf32>
    %555 = arith.addf %554, %12 : vector<8x16xf32>
    %556 = arith.mulf %542, %555 : vector<8x16xf32>
    %557 = arith.addf %553, %556 : vector<8x16xf32>
    %558 = math.tanh %557 : vector<8x16xf32>
    %cst_162 = arith.constant 1.000000e+00 : f32
    %559 = vector.broadcast %cst_162 : f32 to vector<8x16xf32>
    %560 = arith.subf %559, %552 : vector<8x16xf32>
    %561 = arith.mulf %560, %558 : vector<8x16xf32>
    %562 = arith.mulf %552, %484 : vector<8x16xf32>
    %563 = arith.addf %561, %562 : vector<8x16xf32>
    %564 = arith.index_cast %490 : i32 to index
    %c0_163 = arith.constant 0 : index
    %565 = vector.load %arg7[%564, %c0_163] : memref<64x32xf32, #tpu.memory_space<vmem>>, vector<8x16xf32>
    tpu.vector_store %arg7[%564, %c0_163], %532 {strides = array<i32>} : memref<64x32xf32, #tpu.memory_space<vmem>>, vector<8x16xf32>,
    %566 = arith.index_cast %493 : i32 to index
    %c16_164 = arith.constant 16 : index
    %567 = vector.load %arg7[%566, %c16_164] : memref<64x32xf32, #tpu.memory_space<vmem>>, vector<8x16xf32>
    tpu.vector_store %arg7[%566, %c16_164], %563 {strides = array<i32>} : memref<64x32xf32, #tpu.memory_space<vmem>>, vector<8x16xf32>,
    %c7_i32_165 = arith.constant 7 : i32
    %c8_i32_166 = arith.constant 8 : i32
    %568 = arith.muli %c7_i32_165, %c8_i32_166 : i32
    %569 = tpu.assume_multiple %568, 8 : i32
    %c7_i32_167 = arith.constant 7 : i32
    %570 = arith.subi %c7_i32_167, %c7_i32_165 : i32
    %c8_i32_168 = arith.constant 8 : i32
    %571 = arith.muli %570, %c8_i32_168 : i32
    %572 = tpu.assume_multiple %571, 8 : i32
    %573 = arith.index_cast %569 : i32 to index
    %c0_169 = arith.constant 0 : index
    %574 = vector.load %arg6[%573, %c0_169] : memref<64x96xf32, #tpu.memory_space<vmem>>, vector<8x96xf32>
    %575 = arith.index_cast %572 : i32 to index
    %c0_170 = arith.constant 0 : index
    %576 = vector.load %arg6[%575, %c0_170] : memref<64x96xf32, #tpu.memory_space<vmem>>, vector<8x96xf32>
    %577 = tpu.concatenate %532, %563 in 1 : vector<8x16xf32>, vector<8x16xf32> -> vector<8x32xf32>
    %cst_171 = arith.constant dense<0.000000e+00> : vector<8x96xf32>
    %578 = tpu.matmul %577, %13, %cst_171 {dimension_numbers = #tpu.dot_dimension_numbers<[1], [0], [0], [1], [0, 0, 1, 1], [], []>} : vector<8x32xf32>, vector<32x96xf32>, vector<8x96xf32> -> vector<8x96xf32>
    %579 = vector.extract_strided_slice %578 {offsets = [0, 0], sizes = [8, 48], strides = [1, 1]} : vector<8x96xf32> to vector<8x48xf32>
    %580 = vector.extract_strided_slice %578 {offsets = [0, 48], sizes = [8, 48], strides = [1, 1]} : vector<8x96xf32> to vector<8x48xf32>
    %581 = vector.extract_strided_slice %574 {offsets = [0, 0], sizes = [8, 16], strides = [1, 1]} : vector<8x96xf32> to vector<8x16xf32>
    %582 = vector.extract_strided_slice %579 {offsets = [0, 0], sizes = [8, 16], strides = [1, 1]} : vector<8x48xf32> to vector<8x16xf32>
    %583 = arith.addf %581, %582 : vector<8x16xf32>
    %cst_172 = arith.constant 5.000000e-01 : f32
    %584 = vector.broadcast %cst_172 : f32 to vector<8x16xf32>
    %585 = arith.mulf %584, %583 : vector<8x16xf32>
    %586 = math.tanh %585 : vector<8x16xf32>
    %cst_173 = arith.constant 1.000000e+00 : f32
    %587 = vector.broadcast %cst_173 : f32 to vector<8x16xf32>
    %588 = arith.addf %586, %587 : vector<8x16xf32>
    %cst_174 = arith.constant 5.000000e-01 : f32
    %589 = vector.broadcast %cst_174 : f32 to vector<8x16xf32>
    %590 = arith.mulf %589, %588 : vector<8x16xf32>
    %591 = vector.extract_strided_slice %574 {offsets = [0, 16], sizes = [8, 16], strides = [1, 1]} : vector<8x96xf32> to vector<8x16xf32>
    %592 = vector.extract_strided_slice %579 {offsets = [0, 16], sizes = [8, 16], strides = [1, 1]} : vector<8x48xf32> to vector<8x16xf32>
    %593 = arith.addf %591, %592 : vector<8x16xf32>
    %cst_175 = arith.constant 5.000000e-01 : f32
    %594 = vector.broadcast %cst_175 : f32 to vector<8x16xf32>
    %595 = arith.mulf %594, %593 : vector<8x16xf32>
    %596 = math.tanh %595 : vector<8x16xf32>
    %cst_176 = arith.constant 1.000000e+00 : f32
    %597 = vector.broadcast %cst_176 : f32 to vector<8x16xf32>
    %598 = arith.addf %596, %597 : vector<8x16xf32>
    %cst_177 = arith.constant 5.000000e-01 : f32
    %599 = vector.broadcast %cst_177 : f32 to vector<8x16xf32>
    %600 = arith.mulf %599, %598 : vector<8x16xf32>
    %601 = vector.extract_strided_slice %574 {offsets = [0, 32], sizes = [8, 16], strides = [1, 1]} : vector<8x96xf32> to vector<8x16xf32>
    %602 = vector.extract_strided_slice %579 {offsets = [0, 32], sizes = [8, 16], strides = [1, 1]} : vector<8x48xf32> to vector<8x16xf32>
    %603 = arith.addf %602, %9 : vector<8x16xf32>
    %604 = arith.mulf %590, %603 : vector<8x16xf32>
    %605 = arith.addf %601, %604 : vector<8x16xf32>
    %606 = math.tanh %605 : vector<8x16xf32>
    %cst_178 = arith.constant 1.000000e+00 : f32
    %607 = vector.broadcast %cst_178 : f32 to vector<8x16xf32>
    %608 = arith.subf %607, %600 : vector<8x16xf32>
    %609 = arith.mulf %608, %606 : vector<8x16xf32>
    %610 = arith.mulf %600, %532 : vector<8x16xf32>
    %611 = arith.addf %609, %610 : vector<8x16xf32>
    %612 = vector.extract_strided_slice %576 {offsets = [0, 48], sizes = [8, 16], strides = [1, 1]} : vector<8x96xf32> to vector<8x16xf32>
    %613 = vector.extract_strided_slice %580 {offsets = [0, 0], sizes = [8, 16], strides = [1, 1]} : vector<8x48xf32> to vector<8x16xf32>
    %614 = arith.addf %612, %613 : vector<8x16xf32>
    %cst_179 = arith.constant 5.000000e-01 : f32
    %615 = vector.broadcast %cst_179 : f32 to vector<8x16xf32>
    %616 = arith.mulf %615, %614 : vector<8x16xf32>
    %617 = math.tanh %616 : vector<8x16xf32>
    %cst_180 = arith.constant 1.000000e+00 : f32
    %618 = vector.broadcast %cst_180 : f32 to vector<8x16xf32>
    %619 = arith.addf %617, %618 : vector<8x16xf32>
    %cst_181 = arith.constant 5.000000e-01 : f32
    %620 = vector.broadcast %cst_181 : f32 to vector<8x16xf32>
    %621 = arith.mulf %620, %619 : vector<8x16xf32>
    %622 = vector.extract_strided_slice %576 {offsets = [0, 64], sizes = [8, 16], strides = [1, 1]} : vector<8x96xf32> to vector<8x16xf32>
    %623 = vector.extract_strided_slice %580 {offsets = [0, 16], sizes = [8, 16], strides = [1, 1]} : vector<8x48xf32> to vector<8x16xf32>
    %624 = arith.addf %622, %623 : vector<8x16xf32>
    %cst_182 = arith.constant 5.000000e-01 : f32
    %625 = vector.broadcast %cst_182 : f32 to vector<8x16xf32>
    %626 = arith.mulf %625, %624 : vector<8x16xf32>
    %627 = math.tanh %626 : vector<8x16xf32>
    %cst_183 = arith.constant 1.000000e+00 : f32
    %628 = vector.broadcast %cst_183 : f32 to vector<8x16xf32>
    %629 = arith.addf %627, %628 : vector<8x16xf32>
    %cst_184 = arith.constant 5.000000e-01 : f32
    %630 = vector.broadcast %cst_184 : f32 to vector<8x16xf32>
    %631 = arith.mulf %630, %629 : vector<8x16xf32>
    %632 = vector.extract_strided_slice %576 {offsets = [0, 80], sizes = [8, 16], strides = [1, 1]} : vector<8x96xf32> to vector<8x16xf32>
    %633 = vector.extract_strided_slice %580 {offsets = [0, 32], sizes = [8, 16], strides = [1, 1]} : vector<8x48xf32> to vector<8x16xf32>
    %634 = arith.addf %633, %12 : vector<8x16xf32>
    %635 = arith.mulf %621, %634 : vector<8x16xf32>
    %636 = arith.addf %632, %635 : vector<8x16xf32>
    %637 = math.tanh %636 : vector<8x16xf32>
    %cst_185 = arith.constant 1.000000e+00 : f32
    %638 = vector.broadcast %cst_185 : f32 to vector<8x16xf32>
    %639 = arith.subf %638, %631 : vector<8x16xf32>
    %640 = arith.mulf %639, %637 : vector<8x16xf32>
    %641 = arith.mulf %631, %563 : vector<8x16xf32>
    %642 = arith.addf %640, %641 : vector<8x16xf32>
    %643 = arith.index_cast %569 : i32 to index
    %c0_186 = arith.constant 0 : index
    %644 = vector.load %arg7[%643, %c0_186] : memref<64x32xf32, #tpu.memory_space<vmem>>, vector<8x16xf32>
    tpu.vector_store %arg7[%643, %c0_186], %611 {strides = array<i32>} : memref<64x32xf32, #tpu.memory_space<vmem>>, vector<8x16xf32>,
    %645 = arith.index_cast %572 : i32 to index
    %c16_187 = arith.constant 16 : index
    %646 = vector.load %arg7[%645, %c16_187] : memref<64x32xf32, #tpu.memory_space<vmem>>, vector<8x16xf32>
    tpu.vector_store %arg7[%645, %c16_187], %642 {strides = array<i32>} : memref<64x32xf32, #tpu.memory_space<vmem>>, vector<8x16xf32>,
    %c8_i32_188 = arith.constant 8 : i32
    %c0_189 = arith.constant 0 : index
    %c0_190 = arith.constant 0 : index
    %647 = vector.load %arg7[%c0_189, %c0_190] : memref<64x32xf32, #tpu.memory_space<vmem>>, vector<64x32xf32>
    %c0_191 = arith.constant 0 : index
    %c0_192 = arith.constant 0 : index
    %648 = vector.load %arg5[%c0_191, %c0_192] : memref<64x32xf32, #tpu.memory_space<vmem>>, vector<64x32xf32>
    tpu.vector_store %arg5[%c0_191, %c0_192], %647 {strides = array<i32>} : memref<64x32xf32, #tpu.memory_space<vmem>>, vector<64x32xf32>,
    return
  }
}

module attributes {stable_mosaic.version = 11 : i64} {
  func.func @bigru_layer_kernel(%arg0: memref<64x32xf32, #tpu.memory_space<vmem>>, %arg1: memref<32x96xf32, #tpu.memory_space<vmem>>, %arg2: memref<32x96xf32, #tpu.memory_space<vmem>>, %arg3: memref<1x96xf32, #tpu.memory_space<vmem>>, %arg4: memref<1x32xf32, #tpu.memory_space<vmem>>, %arg5: memref<64x32xf32, #tpu.memory_space<vmem>>, %arg6: memref<1x32xf32, #tpu.memory_space<vmem>>, %arg7: memref<1x32xf32, #tpu.memory_space<vmem>>, %arg8: memref<64x32xf32, #tpu.memory_space<vmem>>, %arg9: memref<64x96xf32, #tpu.memory_space<vmem>>, %arg10: memref<64x32xf32, #tpu.memory_space<vmem>>) attributes {dimension_semantics = [], scalar_prefetch = 0 : i64, scratch_operands = 2 : i64, tpu.core_type = #tpu.core_type<tc>} {
    %c0 = arith.constant 0 : index
    %c0_0 = arith.constant 0 : index
    %0 = vector.load %arg0[%c0, %c0_0] : memref<64x32xf32, #tpu.memory_space<vmem>>, vector<64x32xf32>
    %c0_1 = arith.constant 0 : index
    %c0_2 = arith.constant 0 : index
    %1 = vector.load %arg1[%c0_1, %c0_2] : memref<32x96xf32, #tpu.memory_space<vmem>>, vector<32x96xf32>
    %cst = arith.constant dense<0.000000e+00> : vector<64x96xf32>
    %2 = tpu.matmul %0, %1, %cst {dimension_numbers = #tpu.dot_dimension_numbers<[1], [0], [0], [1], [0, 0, 1, 1], [], []>} : vector<64x32xf32>, vector<32x96xf32>, vector<64x96xf32> -> vector<64x96xf32>
    %c0_3 = arith.constant 0 : index
    %c0_4 = arith.constant 0 : index
    %3 = vector.load %arg3[%c0_3, %c0_4] : memref<1x96xf32, #tpu.memory_space<vmem>>, vector<1x96xf32>
    %4 = vector.broadcast %3 : vector<1x96xf32> to vector<64x96xf32>
    %5 = arith.addf %2, %4 : vector<64x96xf32>
    %c0_5 = arith.constant 0 : index
    %c0_6 = arith.constant 0 : index
    %6 = vector.load %arg9[%c0_5, %c0_6] : memref<64x96xf32, #tpu.memory_space<vmem>>, vector<64x96xf32>
    tpu.vector_store %arg9[%c0_5, %c0_6], %5 {strides = array<i32>} : memref<64x96xf32, #tpu.memory_space<vmem>>, vector<64x96xf32>,
    %c0_7 = arith.constant 0 : index
    %c0_8 = arith.constant 0 : index
    %7 = vector.load %arg4[%c0_7, %c0_8] : memref<1x32xf32, #tpu.memory_space<vmem>>, vector<1x16xf32>
    %8 = vector.shape_cast %7 : vector<1x16xf32> to vector<1x16xf32>
    %9 = vector.broadcast %8 : vector<1x16xf32> to vector<8x16xf32>
    %c0_9 = arith.constant 0 : index
    %c16 = arith.constant 16 : index
    %10 = vector.load %arg4[%c0_9, %c16] : memref<1x32xf32, #tpu.memory_space<vmem>>, vector<1x16xf32>
    %11 = vector.shape_cast %10 : vector<1x16xf32> to vector<1x16xf32>
    %12 = vector.broadcast %11 : vector<1x16xf32> to vector<8x16xf32>
    %c0_10 = arith.constant 0 : index
    %c0_11 = arith.constant 0 : index
    %13 = vector.load %arg2[%c0_10, %c0_11] : memref<32x96xf32, #tpu.memory_space<vmem>>, vector<32x96xf32>
    %cst_12 = arith.constant 0.000000e+00 : f32
    %14 = vector.broadcast %cst_12 : f32 to vector<8x16xf32>
    %c0_i32 = arith.constant 0 : i32
    %c8_i32 = arith.constant 8 : i32
    %15 = arith.muli %c0_i32, %c8_i32 : i32
    %16 = tpu.assume_multiple %15, 8 : i32
    %c7_i32 = arith.constant 7 : i32
    %17 = arith.subi %c7_i32, %c0_i32 : i32
    %c8_i32_13 = arith.constant 8 : i32
    %18 = arith.muli %17, %c8_i32_13 : i32
    %19 = tpu.assume_multiple %18, 8 : i32
    %20 = arith.index_cast %16 : i32 to index
    %c0_14 = arith.constant 0 : index
    %21 = vector.load %arg9[%20, %c0_14] : memref<64x96xf32, #tpu.memory_space<vmem>>, vector<8x96xf32>
    %22 = arith.index_cast %19 : i32 to index
    %c0_15 = arith.constant 0 : index
    %23 = vector.load %arg9[%22, %c0_15] : memref<64x96xf32, #tpu.memory_space<vmem>>, vector<8x96xf32>
    %24 = tpu.concatenate %14, %14 in 1 : vector<8x16xf32>, vector<8x16xf32> -> vector<8x32xf32>
    %cst_16 = arith.constant dense<0.000000e+00> : vector<8x96xf32>
    %25 = tpu.matmul %24, %13, %cst_16 {dimension_numbers = #tpu.dot_dimension_numbers<[1], [0], [0], [1], [0, 0, 1, 1], [], []>} : vector<8x32xf32>, vector<32x96xf32>, vector<8x96xf32> -> vector<8x96xf32>
    %26 = vector.extract_strided_slice %25 {offsets = [0, 0], sizes = [8, 48], strides = [1, 1]} : vector<8x96xf32> to vector<8x48xf32>
    %27 = vector.extract_strided_slice %25 {offsets = [0, 48], sizes = [8, 48], strides = [1, 1]} : vector<8x96xf32> to vector<8x48xf32>
    %28 = vector.extract_strided_slice %21 {offsets = [0, 0], sizes = [8, 16], strides = [1, 1]} : vector<8x96xf32> to vector<8x16xf32>
    %29 = vector.extract_strided_slice %26 {offsets = [0, 0], sizes = [8, 16], strides = [1, 1]} : vector<8x48xf32> to vector<8x16xf32>
    %30 = arith.addf %28, %29 : vector<8x16xf32>
    %cst_17 = arith.constant 5.000000e-01 : f32
    %31 = vector.broadcast %cst_17 : f32 to vector<8x16xf32>
    %32 = arith.mulf %31, %30 : vector<8x16xf32>
    %33 = math.tanh %32 : vector<8x16xf32>
    %cst_18 = arith.constant 1.000000e+00 : f32
    %34 = vector.broadcast %cst_18 : f32 to vector<8x16xf32>
    %35 = arith.addf %33, %34 : vector<8x16xf32>
    %cst_19 = arith.constant 5.000000e-01 : f32
    %36 = vector.broadcast %cst_19 : f32 to vector<8x16xf32>
    %37 = arith.mulf %36, %35 : vector<8x16xf32>
    %38 = vector.extract_strided_slice %21 {offsets = [0, 16], sizes = [8, 16], strides = [1, 1]} : vector<8x96xf32> to vector<8x16xf32>
    %39 = vector.extract_strided_slice %26 {offsets = [0, 16], sizes = [8, 16], strides = [1, 1]} : vector<8x48xf32> to vector<8x16xf32>
    %40 = arith.addf %38, %39 : vector<8x16xf32>
    %cst_20 = arith.constant 5.000000e-01 : f32
    %41 = vector.broadcast %cst_20 : f32 to vector<8x16xf32>
    %42 = arith.mulf %41, %40 : vector<8x16xf32>
    %43 = math.tanh %42 : vector<8x16xf32>
    %cst_21 = arith.constant 1.000000e+00 : f32
    %44 = vector.broadcast %cst_21 : f32 to vector<8x16xf32>
    %45 = arith.addf %43, %44 : vector<8x16xf32>
    %cst_22 = arith.constant 5.000000e-01 : f32
    %46 = vector.broadcast %cst_22 : f32 to vector<8x16xf32>
    %47 = arith.mulf %46, %45 : vector<8x16xf32>
    %48 = vector.extract_strided_slice %21 {offsets = [0, 32], sizes = [8, 16], strides = [1, 1]} : vector<8x96xf32> to vector<8x16xf32>
    %49 = vector.extract_strided_slice %26 {offsets = [0, 32], sizes = [8, 16], strides = [1, 1]} : vector<8x48xf32> to vector<8x16xf32>
    %50 = arith.addf %49, %9 : vector<8x16xf32>
    %51 = arith.mulf %37, %50 : vector<8x16xf32>
    %52 = arith.addf %48, %51 : vector<8x16xf32>
    %53 = math.tanh %52 : vector<8x16xf32>
    %cst_23 = arith.constant 1.000000e+00 : f32
    %54 = vector.broadcast %cst_23 : f32 to vector<8x16xf32>
    %55 = arith.subf %54, %47 : vector<8x16xf32>
    %56 = arith.mulf %55, %53 : vector<8x16xf32>
    %57 = arith.mulf %47, %14 : vector<8x16xf32>
    %58 = arith.addf %56, %57 : vector<8x16xf32>
    %59 = vector.extract_strided_slice %23 {offsets = [0, 48], sizes = [8, 16], strides = [1, 1]} : vector<8x96xf32> to vector<8x16xf32>
    %60 = vector.extract_strided_slice %27 {offsets = [0, 0], sizes = [8, 16], strides = [1, 1]} : vector<8x48xf32> to vector<8x16xf32>
    %61 = arith.addf %59, %60 : vector<8x16xf32>
    %cst_24 = arith.constant 5.000000e-01 : f32
    %62 = vector.broadcast %cst_24 : f32 to vector<8x16xf32>
    %63 = arith.mulf %62, %61 : vector<8x16xf32>
    %64 = math.tanh %63 : vector<8x16xf32>
    %cst_25 = arith.constant 1.000000e+00 : f32
    %65 = vector.broadcast %cst_25 : f32 to vector<8x16xf32>
    %66 = arith.addf %64, %65 : vector<8x16xf32>
    %cst_26 = arith.constant 5.000000e-01 : f32
    %67 = vector.broadcast %cst_26 : f32 to vector<8x16xf32>
    %68 = arith.mulf %67, %66 : vector<8x16xf32>
    %69 = vector.extract_strided_slice %23 {offsets = [0, 64], sizes = [8, 16], strides = [1, 1]} : vector<8x96xf32> to vector<8x16xf32>
    %70 = vector.extract_strided_slice %27 {offsets = [0, 16], sizes = [8, 16], strides = [1, 1]} : vector<8x48xf32> to vector<8x16xf32>
    %71 = arith.addf %69, %70 : vector<8x16xf32>
    %cst_27 = arith.constant 5.000000e-01 : f32
    %72 = vector.broadcast %cst_27 : f32 to vector<8x16xf32>
    %73 = arith.mulf %72, %71 : vector<8x16xf32>
    %74 = math.tanh %73 : vector<8x16xf32>
    %cst_28 = arith.constant 1.000000e+00 : f32
    %75 = vector.broadcast %cst_28 : f32 to vector<8x16xf32>
    %76 = arith.addf %74, %75 : vector<8x16xf32>
    %cst_29 = arith.constant 5.000000e-01 : f32
    %77 = vector.broadcast %cst_29 : f32 to vector<8x16xf32>
    %78 = arith.mulf %77, %76 : vector<8x16xf32>
    %79 = vector.extract_strided_slice %23 {offsets = [0, 80], sizes = [8, 16], strides = [1, 1]} : vector<8x96xf32> to vector<8x16xf32>
    %80 = vector.extract_strided_slice %27 {offsets = [0, 32], sizes = [8, 16], strides = [1, 1]} : vector<8x48xf32> to vector<8x16xf32>
    %81 = arith.addf %80, %12 : vector<8x16xf32>
    %82 = arith.mulf %68, %81 : vector<8x16xf32>
    %83 = arith.addf %79, %82 : vector<8x16xf32>
    %84 = math.tanh %83 : vector<8x16xf32>
    %cst_30 = arith.constant 1.000000e+00 : f32
    %85 = vector.broadcast %cst_30 : f32 to vector<8x16xf32>
    %86 = arith.subf %85, %78 : vector<8x16xf32>
    %87 = arith.mulf %86, %84 : vector<8x16xf32>
    %88 = arith.mulf %78, %14 : vector<8x16xf32>
    %89 = arith.addf %87, %88 : vector<8x16xf32>
    %90 = arith.index_cast %16 : i32 to index
    %c0_31 = arith.constant 0 : index
    %91 = vector.load %arg10[%90, %c0_31] : memref<64x32xf32, #tpu.memory_space<vmem>>, vector<8x16xf32>
    tpu.vector_store %arg10[%90, %c0_31], %58 {strides = array<i32>} : memref<64x32xf32, #tpu.memory_space<vmem>>, vector<8x16xf32>,
    %92 = arith.index_cast %19 : i32 to index
    %c16_32 = arith.constant 16 : index
    %93 = vector.load %arg10[%92, %c16_32] : memref<64x32xf32, #tpu.memory_space<vmem>>, vector<8x16xf32>
    tpu.vector_store %arg10[%92, %c16_32], %89 {strides = array<i32>} : memref<64x32xf32, #tpu.memory_space<vmem>>, vector<8x16xf32>,
    %c1_i32 = arith.constant 1 : i32
    %c8_i32_33 = arith.constant 8 : i32
    %94 = arith.muli %c1_i32, %c8_i32_33 : i32
    %95 = tpu.assume_multiple %94, 8 : i32
    %c7_i32_34 = arith.constant 7 : i32
    %96 = arith.subi %c7_i32_34, %c1_i32 : i32
    %c8_i32_35 = arith.constant 8 : i32
    %97 = arith.muli %96, %c8_i32_35 : i32
    %98 = tpu.assume_multiple %97, 8 : i32
    %99 = arith.index_cast %95 : i32 to index
    %c0_36 = arith.constant 0 : index
    %100 = vector.load %arg9[%99, %c0_36] : memref<64x96xf32, #tpu.memory_space<vmem>>, vector<8x96xf32>
    %101 = arith.index_cast %98 : i32 to index
    %c0_37 = arith.constant 0 : index
    %102 = vector.load %arg9[%101, %c0_37] : memref<64x96xf32, #tpu.memory_space<vmem>>, vector<8x96xf32>
    %103 = tpu.concatenate %58, %89 in 1 : vector<8x16xf32>, vector<8x16xf32> -> vector<8x32xf32>
    %cst_38 = arith.constant dense<0.000000e+00> : vector<8x96xf32>
    %104 = tpu.matmul %103, %13, %cst_38 {dimension_numbers = #tpu.dot_dimension_numbers<[1], [0], [0], [1], [0, 0, 1, 1], [], []>} : vector<8x32xf32>, vector<32x96xf32>, vector<8x96xf32> -> vector<8x96xf32>
    %105 = vector.extract_strided_slice %104 {offsets = [0, 0], sizes = [8, 48], strides = [1, 1]} : vector<8x96xf32> to vector<8x48xf32>
    %106 = vector.extract_strided_slice %104 {offsets = [0, 48], sizes = [8, 48], strides = [1, 1]} : vector<8x96xf32> to vector<8x48xf32>
    %107 = vector.extract_strided_slice %100 {offsets = [0, 0], sizes = [8, 16], strides = [1, 1]} : vector<8x96xf32> to vector<8x16xf32>
    %108 = vector.extract_strided_slice %105 {offsets = [0, 0], sizes = [8, 16], strides = [1, 1]} : vector<8x48xf32> to vector<8x16xf32>
    %109 = arith.addf %107, %108 : vector<8x16xf32>
    %cst_39 = arith.constant 5.000000e-01 : f32
    %110 = vector.broadcast %cst_39 : f32 to vector<8x16xf32>
    %111 = arith.mulf %110, %109 : vector<8x16xf32>
    %112 = math.tanh %111 : vector<8x16xf32>
    %cst_40 = arith.constant 1.000000e+00 : f32
    %113 = vector.broadcast %cst_40 : f32 to vector<8x16xf32>
    %114 = arith.addf %112, %113 : vector<8x16xf32>
    %cst_41 = arith.constant 5.000000e-01 : f32
    %115 = vector.broadcast %cst_41 : f32 to vector<8x16xf32>
    %116 = arith.mulf %115, %114 : vector<8x16xf32>
    %117 = vector.extract_strided_slice %100 {offsets = [0, 16], sizes = [8, 16], strides = [1, 1]} : vector<8x96xf32> to vector<8x16xf32>
    %118 = vector.extract_strided_slice %105 {offsets = [0, 16], sizes = [8, 16], strides = [1, 1]} : vector<8x48xf32> to vector<8x16xf32>
    %119 = arith.addf %117, %118 : vector<8x16xf32>
    %cst_42 = arith.constant 5.000000e-01 : f32
    %120 = vector.broadcast %cst_42 : f32 to vector<8x16xf32>
    %121 = arith.mulf %120, %119 : vector<8x16xf32>
    %122 = math.tanh %121 : vector<8x16xf32>
    %cst_43 = arith.constant 1.000000e+00 : f32
    %123 = vector.broadcast %cst_43 : f32 to vector<8x16xf32>
    %124 = arith.addf %122, %123 : vector<8x16xf32>
    %cst_44 = arith.constant 5.000000e-01 : f32
    %125 = vector.broadcast %cst_44 : f32 to vector<8x16xf32>
    %126 = arith.mulf %125, %124 : vector<8x16xf32>
    %127 = vector.extract_strided_slice %100 {offsets = [0, 32], sizes = [8, 16], strides = [1, 1]} : vector<8x96xf32> to vector<8x16xf32>
    %128 = vector.extract_strided_slice %105 {offsets = [0, 32], sizes = [8, 16], strides = [1, 1]} : vector<8x48xf32> to vector<8x16xf32>
    %129 = arith.addf %128, %9 : vector<8x16xf32>
    %130 = arith.mulf %116, %129 : vector<8x16xf32>
    %131 = arith.addf %127, %130 : vector<8x16xf32>
    %132 = math.tanh %131 : vector<8x16xf32>
    %cst_45 = arith.constant 1.000000e+00 : f32
    %133 = vector.broadcast %cst_45 : f32 to vector<8x16xf32>
    %134 = arith.subf %133, %126 : vector<8x16xf32>
    %135 = arith.mulf %134, %132 : vector<8x16xf32>
    %136 = arith.mulf %126, %58 : vector<8x16xf32>
    %137 = arith.addf %135, %136 : vector<8x16xf32>
    %138 = vector.extract_strided_slice %102 {offsets = [0, 48], sizes = [8, 16], strides = [1, 1]} : vector<8x96xf32> to vector<8x16xf32>
    %139 = vector.extract_strided_slice %106 {offsets = [0, 0], sizes = [8, 16], strides = [1, 1]} : vector<8x48xf32> to vector<8x16xf32>
    %140 = arith.addf %138, %139 : vector<8x16xf32>
    %cst_46 = arith.constant 5.000000e-01 : f32
    %141 = vector.broadcast %cst_46 : f32 to vector<8x16xf32>
    %142 = arith.mulf %141, %140 : vector<8x16xf32>
    %143 = math.tanh %142 : vector<8x16xf32>
    %cst_47 = arith.constant 1.000000e+00 : f32
    %144 = vector.broadcast %cst_47 : f32 to vector<8x16xf32>
    %145 = arith.addf %143, %144 : vector<8x16xf32>
    %cst_48 = arith.constant 5.000000e-01 : f32
    %146 = vector.broadcast %cst_48 : f32 to vector<8x16xf32>
    %147 = arith.mulf %146, %145 : vector<8x16xf32>
    %148 = vector.extract_strided_slice %102 {offsets = [0, 64], sizes = [8, 16], strides = [1, 1]} : vector<8x96xf32> to vector<8x16xf32>
    %149 = vector.extract_strided_slice %106 {offsets = [0, 16], sizes = [8, 16], strides = [1, 1]} : vector<8x48xf32> to vector<8x16xf32>
    %150 = arith.addf %148, %149 : vector<8x16xf32>
    %cst_49 = arith.constant 5.000000e-01 : f32
    %151 = vector.broadcast %cst_49 : f32 to vector<8x16xf32>
    %152 = arith.mulf %151, %150 : vector<8x16xf32>
    %153 = math.tanh %152 : vector<8x16xf32>
    %cst_50 = arith.constant 1.000000e+00 : f32
    %154 = vector.broadcast %cst_50 : f32 to vector<8x16xf32>
    %155 = arith.addf %153, %154 : vector<8x16xf32>
    %cst_51 = arith.constant 5.000000e-01 : f32
    %156 = vector.broadcast %cst_51 : f32 to vector<8x16xf32>
    %157 = arith.mulf %156, %155 : vector<8x16xf32>
    %158 = vector.extract_strided_slice %102 {offsets = [0, 80], sizes = [8, 16], strides = [1, 1]} : vector<8x96xf32> to vector<8x16xf32>
    %159 = vector.extract_strided_slice %106 {offsets = [0, 32], sizes = [8, 16], strides = [1, 1]} : vector<8x48xf32> to vector<8x16xf32>
    %160 = arith.addf %159, %12 : vector<8x16xf32>
    %161 = arith.mulf %147, %160 : vector<8x16xf32>
    %162 = arith.addf %158, %161 : vector<8x16xf32>
    %163 = math.tanh %162 : vector<8x16xf32>
    %cst_52 = arith.constant 1.000000e+00 : f32
    %164 = vector.broadcast %cst_52 : f32 to vector<8x16xf32>
    %165 = arith.subf %164, %157 : vector<8x16xf32>
    %166 = arith.mulf %165, %163 : vector<8x16xf32>
    %167 = arith.mulf %157, %89 : vector<8x16xf32>
    %168 = arith.addf %166, %167 : vector<8x16xf32>
    %169 = arith.index_cast %95 : i32 to index
    %c0_53 = arith.constant 0 : index
    %170 = vector.load %arg10[%169, %c0_53] : memref<64x32xf32, #tpu.memory_space<vmem>>, vector<8x16xf32>
    tpu.vector_store %arg10[%169, %c0_53], %137 {strides = array<i32>} : memref<64x32xf32, #tpu.memory_space<vmem>>, vector<8x16xf32>,
    %171 = arith.index_cast %98 : i32 to index
    %c16_54 = arith.constant 16 : index
    %172 = vector.load %arg10[%171, %c16_54] : memref<64x32xf32, #tpu.memory_space<vmem>>, vector<8x16xf32>
    tpu.vector_store %arg10[%171, %c16_54], %168 {strides = array<i32>} : memref<64x32xf32, #tpu.memory_space<vmem>>, vector<8x16xf32>,
    %c2_i32 = arith.constant 2 : i32
    %c8_i32_55 = arith.constant 8 : i32
    %173 = arith.muli %c2_i32, %c8_i32_55 : i32
    %174 = tpu.assume_multiple %173, 8 : i32
    %c7_i32_56 = arith.constant 7 : i32
    %175 = arith.subi %c7_i32_56, %c2_i32 : i32
    %c8_i32_57 = arith.constant 8 : i32
    %176 = arith.muli %175, %c8_i32_57 : i32
    %177 = tpu.assume_multiple %176, 8 : i32
    %178 = arith.index_cast %174 : i32 to index
    %c0_58 = arith.constant 0 : index
    %179 = vector.load %arg9[%178, %c0_58] : memref<64x96xf32, #tpu.memory_space<vmem>>, vector<8x96xf32>
    %180 = arith.index_cast %177 : i32 to index
    %c0_59 = arith.constant 0 : index
    %181 = vector.load %arg9[%180, %c0_59] : memref<64x96xf32, #tpu.memory_space<vmem>>, vector<8x96xf32>
    %182 = tpu.concatenate %137, %168 in 1 : vector<8x16xf32>, vector<8x16xf32> -> vector<8x32xf32>
    %cst_60 = arith.constant dense<0.000000e+00> : vector<8x96xf32>
    %183 = tpu.matmul %182, %13, %cst_60 {dimension_numbers = #tpu.dot_dimension_numbers<[1], [0], [0], [1], [0, 0, 1, 1], [], []>} : vector<8x32xf32>, vector<32x96xf32>, vector<8x96xf32> -> vector<8x96xf32>
    %184 = vector.extract_strided_slice %183 {offsets = [0, 0], sizes = [8, 48], strides = [1, 1]} : vector<8x96xf32> to vector<8x48xf32>
    %185 = vector.extract_strided_slice %183 {offsets = [0, 48], sizes = [8, 48], strides = [1, 1]} : vector<8x96xf32> to vector<8x48xf32>
    %186 = vector.extract_strided_slice %179 {offsets = [0, 0], sizes = [8, 16], strides = [1, 1]} : vector<8x96xf32> to vector<8x16xf32>
    %187 = vector.extract_strided_slice %184 {offsets = [0, 0], sizes = [8, 16], strides = [1, 1]} : vector<8x48xf32> to vector<8x16xf32>
    %188 = arith.addf %186, %187 : vector<8x16xf32>
    %cst_61 = arith.constant 5.000000e-01 : f32
    %189 = vector.broadcast %cst_61 : f32 to vector<8x16xf32>
    %190 = arith.mulf %189, %188 : vector<8x16xf32>
    %191 = math.tanh %190 : vector<8x16xf32>
    %cst_62 = arith.constant 1.000000e+00 : f32
    %192 = vector.broadcast %cst_62 : f32 to vector<8x16xf32>
    %193 = arith.addf %191, %192 : vector<8x16xf32>
    %cst_63 = arith.constant 5.000000e-01 : f32
    %194 = vector.broadcast %cst_63 : f32 to vector<8x16xf32>
    %195 = arith.mulf %194, %193 : vector<8x16xf32>
    %196 = vector.extract_strided_slice %179 {offsets = [0, 16], sizes = [8, 16], strides = [1, 1]} : vector<8x96xf32> to vector<8x16xf32>
    %197 = vector.extract_strided_slice %184 {offsets = [0, 16], sizes = [8, 16], strides = [1, 1]} : vector<8x48xf32> to vector<8x16xf32>
    %198 = arith.addf %196, %197 : vector<8x16xf32>
    %cst_64 = arith.constant 5.000000e-01 : f32
    %199 = vector.broadcast %cst_64 : f32 to vector<8x16xf32>
    %200 = arith.mulf %199, %198 : vector<8x16xf32>
    %201 = math.tanh %200 : vector<8x16xf32>
    %cst_65 = arith.constant 1.000000e+00 : f32
    %202 = vector.broadcast %cst_65 : f32 to vector<8x16xf32>
    %203 = arith.addf %201, %202 : vector<8x16xf32>
    %cst_66 = arith.constant 5.000000e-01 : f32
    %204 = vector.broadcast %cst_66 : f32 to vector<8x16xf32>
    %205 = arith.mulf %204, %203 : vector<8x16xf32>
    %206 = vector.extract_strided_slice %179 {offsets = [0, 32], sizes = [8, 16], strides = [1, 1]} : vector<8x96xf32> to vector<8x16xf32>
    %207 = vector.extract_strided_slice %184 {offsets = [0, 32], sizes = [8, 16], strides = [1, 1]} : vector<8x48xf32> to vector<8x16xf32>
    %208 = arith.addf %207, %9 : vector<8x16xf32>
    %209 = arith.mulf %195, %208 : vector<8x16xf32>
    %210 = arith.addf %206, %209 : vector<8x16xf32>
    %211 = math.tanh %210 : vector<8x16xf32>
    %cst_67 = arith.constant 1.000000e+00 : f32
    %212 = vector.broadcast %cst_67 : f32 to vector<8x16xf32>
    %213 = arith.subf %212, %205 : vector<8x16xf32>
    %214 = arith.mulf %213, %211 : vector<8x16xf32>
    %215 = arith.mulf %205, %137 : vector<8x16xf32>
    %216 = arith.addf %214, %215 : vector<8x16xf32>
    %217 = vector.extract_strided_slice %181 {offsets = [0, 48], sizes = [8, 16], strides = [1, 1]} : vector<8x96xf32> to vector<8x16xf32>
    %218 = vector.extract_strided_slice %185 {offsets = [0, 0], sizes = [8, 16], strides = [1, 1]} : vector<8x48xf32> to vector<8x16xf32>
    %219 = arith.addf %217, %218 : vector<8x16xf32>
    %cst_68 = arith.constant 5.000000e-01 : f32
    %220 = vector.broadcast %cst_68 : f32 to vector<8x16xf32>
    %221 = arith.mulf %220, %219 : vector<8x16xf32>
    %222 = math.tanh %221 : vector<8x16xf32>
    %cst_69 = arith.constant 1.000000e+00 : f32
    %223 = vector.broadcast %cst_69 : f32 to vector<8x16xf32>
    %224 = arith.addf %222, %223 : vector<8x16xf32>
    %cst_70 = arith.constant 5.000000e-01 : f32
    %225 = vector.broadcast %cst_70 : f32 to vector<8x16xf32>
    %226 = arith.mulf %225, %224 : vector<8x16xf32>
    %227 = vector.extract_strided_slice %181 {offsets = [0, 64], sizes = [8, 16], strides = [1, 1]} : vector<8x96xf32> to vector<8x16xf32>
    %228 = vector.extract_strided_slice %185 {offsets = [0, 16], sizes = [8, 16], strides = [1, 1]} : vector<8x48xf32> to vector<8x16xf32>
    %229 = arith.addf %227, %228 : vector<8x16xf32>
    %cst_71 = arith.constant 5.000000e-01 : f32
    %230 = vector.broadcast %cst_71 : f32 to vector<8x16xf32>
    %231 = arith.mulf %230, %229 : vector<8x16xf32>
    %232 = math.tanh %231 : vector<8x16xf32>
    %cst_72 = arith.constant 1.000000e+00 : f32
    %233 = vector.broadcast %cst_72 : f32 to vector<8x16xf32>
    %234 = arith.addf %232, %233 : vector<8x16xf32>
    %cst_73 = arith.constant 5.000000e-01 : f32
    %235 = vector.broadcast %cst_73 : f32 to vector<8x16xf32>
    %236 = arith.mulf %235, %234 : vector<8x16xf32>
    %237 = vector.extract_strided_slice %181 {offsets = [0, 80], sizes = [8, 16], strides = [1, 1]} : vector<8x96xf32> to vector<8x16xf32>
    %238 = vector.extract_strided_slice %185 {offsets = [0, 32], sizes = [8, 16], strides = [1, 1]} : vector<8x48xf32> to vector<8x16xf32>
    %239 = arith.addf %238, %12 : vector<8x16xf32>
    %240 = arith.mulf %226, %239 : vector<8x16xf32>
    %241 = arith.addf %237, %240 : vector<8x16xf32>
    %242 = math.tanh %241 : vector<8x16xf32>
    %cst_74 = arith.constant 1.000000e+00 : f32
    %243 = vector.broadcast %cst_74 : f32 to vector<8x16xf32>
    %244 = arith.subf %243, %236 : vector<8x16xf32>
    %245 = arith.mulf %244, %242 : vector<8x16xf32>
    %246 = arith.mulf %236, %168 : vector<8x16xf32>
    %247 = arith.addf %245, %246 : vector<8x16xf32>
    %248 = arith.index_cast %174 : i32 to index
    %c0_75 = arith.constant 0 : index
    %249 = vector.load %arg10[%248, %c0_75] : memref<64x32xf32, #tpu.memory_space<vmem>>, vector<8x16xf32>
    tpu.vector_store %arg10[%248, %c0_75], %216 {strides = array<i32>} : memref<64x32xf32, #tpu.memory_space<vmem>>, vector<8x16xf32>,
    %250 = arith.index_cast %177 : i32 to index
    %c16_76 = arith.constant 16 : index
    %251 = vector.load %arg10[%250, %c16_76] : memref<64x32xf32, #tpu.memory_space<vmem>>, vector<8x16xf32>
    tpu.vector_store %arg10[%250, %c16_76], %247 {strides = array<i32>} : memref<64x32xf32, #tpu.memory_space<vmem>>, vector<8x16xf32>,
    %c3_i32 = arith.constant 3 : i32
    %c8_i32_77 = arith.constant 8 : i32
    %252 = arith.muli %c3_i32, %c8_i32_77 : i32
    %253 = tpu.assume_multiple %252, 8 : i32
    %c7_i32_78 = arith.constant 7 : i32
    %254 = arith.subi %c7_i32_78, %c3_i32 : i32
    %c8_i32_79 = arith.constant 8 : i32
    %255 = arith.muli %254, %c8_i32_79 : i32
    %256 = tpu.assume_multiple %255, 8 : i32
    %257 = arith.index_cast %253 : i32 to index
    %c0_80 = arith.constant 0 : index
    %258 = vector.load %arg9[%257, %c0_80] : memref<64x96xf32, #tpu.memory_space<vmem>>, vector<8x96xf32>
    %259 = arith.index_cast %256 : i32 to index
    %c0_81 = arith.constant 0 : index
    %260 = vector.load %arg9[%259, %c0_81] : memref<64x96xf32, #tpu.memory_space<vmem>>, vector<8x96xf32>
    %261 = tpu.concatenate %216, %247 in 1 : vector<8x16xf32>, vector<8x16xf32> -> vector<8x32xf32>
    %cst_82 = arith.constant dense<0.000000e+00> : vector<8x96xf32>
    %262 = tpu.matmul %261, %13, %cst_82 {dimension_numbers = #tpu.dot_dimension_numbers<[1], [0], [0], [1], [0, 0, 1, 1], [], []>} : vector<8x32xf32>, vector<32x96xf32>, vector<8x96xf32> -> vector<8x96xf32>
    %263 = vector.extract_strided_slice %262 {offsets = [0, 0], sizes = [8, 48], strides = [1, 1]} : vector<8x96xf32> to vector<8x48xf32>
    %264 = vector.extract_strided_slice %262 {offsets = [0, 48], sizes = [8, 48], strides = [1, 1]} : vector<8x96xf32> to vector<8x48xf32>
    %265 = vector.extract_strided_slice %258 {offsets = [0, 0], sizes = [8, 16], strides = [1, 1]} : vector<8x96xf32> to vector<8x16xf32>
    %266 = vector.extract_strided_slice %263 {offsets = [0, 0], sizes = [8, 16], strides = [1, 1]} : vector<8x48xf32> to vector<8x16xf32>
    %267 = arith.addf %265, %266 : vector<8x16xf32>
    %cst_83 = arith.constant 5.000000e-01 : f32
    %268 = vector.broadcast %cst_83 : f32 to vector<8x16xf32>
    %269 = arith.mulf %268, %267 : vector<8x16xf32>
    %270 = math.tanh %269 : vector<8x16xf32>
    %cst_84 = arith.constant 1.000000e+00 : f32
    %271 = vector.broadcast %cst_84 : f32 to vector<8x16xf32>
    %272 = arith.addf %270, %271 : vector<8x16xf32>
    %cst_85 = arith.constant 5.000000e-01 : f32
    %273 = vector.broadcast %cst_85 : f32 to vector<8x16xf32>
    %274 = arith.mulf %273, %272 : vector<8x16xf32>
    %275 = vector.extract_strided_slice %258 {offsets = [0, 16], sizes = [8, 16], strides = [1, 1]} : vector<8x96xf32> to vector<8x16xf32>
    %276 = vector.extract_strided_slice %263 {offsets = [0, 16], sizes = [8, 16], strides = [1, 1]} : vector<8x48xf32> to vector<8x16xf32>
    %277 = arith.addf %275, %276 : vector<8x16xf32>
    %cst_86 = arith.constant 5.000000e-01 : f32
    %278 = vector.broadcast %cst_86 : f32 to vector<8x16xf32>
    %279 = arith.mulf %278, %277 : vector<8x16xf32>
    %280 = math.tanh %279 : vector<8x16xf32>
    %cst_87 = arith.constant 1.000000e+00 : f32
    %281 = vector.broadcast %cst_87 : f32 to vector<8x16xf32>
    %282 = arith.addf %280, %281 : vector<8x16xf32>
    %cst_88 = arith.constant 5.000000e-01 : f32
    %283 = vector.broadcast %cst_88 : f32 to vector<8x16xf32>
    %284 = arith.mulf %283, %282 : vector<8x16xf32>
    %285 = vector.extract_strided_slice %258 {offsets = [0, 32], sizes = [8, 16], strides = [1, 1]} : vector<8x96xf32> to vector<8x16xf32>
    %286 = vector.extract_strided_slice %263 {offsets = [0, 32], sizes = [8, 16], strides = [1, 1]} : vector<8x48xf32> to vector<8x16xf32>
    %287 = arith.addf %286, %9 : vector<8x16xf32>
    %288 = arith.mulf %274, %287 : vector<8x16xf32>
    %289 = arith.addf %285, %288 : vector<8x16xf32>
    %290 = math.tanh %289 : vector<8x16xf32>
    %cst_89 = arith.constant 1.000000e+00 : f32
    %291 = vector.broadcast %cst_89 : f32 to vector<8x16xf32>
    %292 = arith.subf %291, %284 : vector<8x16xf32>
    %293 = arith.mulf %292, %290 : vector<8x16xf32>
    %294 = arith.mulf %284, %216 : vector<8x16xf32>
    %295 = arith.addf %293, %294 : vector<8x16xf32>
    %296 = vector.extract_strided_slice %260 {offsets = [0, 48], sizes = [8, 16], strides = [1, 1]} : vector<8x96xf32> to vector<8x16xf32>
    %297 = vector.extract_strided_slice %264 {offsets = [0, 0], sizes = [8, 16], strides = [1, 1]} : vector<8x48xf32> to vector<8x16xf32>
    %298 = arith.addf %296, %297 : vector<8x16xf32>
    %cst_90 = arith.constant 5.000000e-01 : f32
    %299 = vector.broadcast %cst_90 : f32 to vector<8x16xf32>
    %300 = arith.mulf %299, %298 : vector<8x16xf32>
    %301 = math.tanh %300 : vector<8x16xf32>
    %cst_91 = arith.constant 1.000000e+00 : f32
    %302 = vector.broadcast %cst_91 : f32 to vector<8x16xf32>
    %303 = arith.addf %301, %302 : vector<8x16xf32>
    %cst_92 = arith.constant 5.000000e-01 : f32
    %304 = vector.broadcast %cst_92 : f32 to vector<8x16xf32>
    %305 = arith.mulf %304, %303 : vector<8x16xf32>
    %306 = vector.extract_strided_slice %260 {offsets = [0, 64], sizes = [8, 16], strides = [1, 1]} : vector<8x96xf32> to vector<8x16xf32>
    %307 = vector.extract_strided_slice %264 {offsets = [0, 16], sizes = [8, 16], strides = [1, 1]} : vector<8x48xf32> to vector<8x16xf32>
    %308 = arith.addf %306, %307 : vector<8x16xf32>
    %cst_93 = arith.constant 5.000000e-01 : f32
    %309 = vector.broadcast %cst_93 : f32 to vector<8x16xf32>
    %310 = arith.mulf %309, %308 : vector<8x16xf32>
    %311 = math.tanh %310 : vector<8x16xf32>
    %cst_94 = arith.constant 1.000000e+00 : f32
    %312 = vector.broadcast %cst_94 : f32 to vector<8x16xf32>
    %313 = arith.addf %311, %312 : vector<8x16xf32>
    %cst_95 = arith.constant 5.000000e-01 : f32
    %314 = vector.broadcast %cst_95 : f32 to vector<8x16xf32>
    %315 = arith.mulf %314, %313 : vector<8x16xf32>
    %316 = vector.extract_strided_slice %260 {offsets = [0, 80], sizes = [8, 16], strides = [1, 1]} : vector<8x96xf32> to vector<8x16xf32>
    %317 = vector.extract_strided_slice %264 {offsets = [0, 32], sizes = [8, 16], strides = [1, 1]} : vector<8x48xf32> to vector<8x16xf32>
    %318 = arith.addf %317, %12 : vector<8x16xf32>
    %319 = arith.mulf %305, %318 : vector<8x16xf32>
    %320 = arith.addf %316, %319 : vector<8x16xf32>
    %321 = math.tanh %320 : vector<8x16xf32>
    %cst_96 = arith.constant 1.000000e+00 : f32
    %322 = vector.broadcast %cst_96 : f32 to vector<8x16xf32>
    %323 = arith.subf %322, %315 : vector<8x16xf32>
    %324 = arith.mulf %323, %321 : vector<8x16xf32>
    %325 = arith.mulf %315, %247 : vector<8x16xf32>
    %326 = arith.addf %324, %325 : vector<8x16xf32>
    %327 = arith.index_cast %253 : i32 to index
    %c0_97 = arith.constant 0 : index
    %328 = vector.load %arg10[%327, %c0_97] : memref<64x32xf32, #tpu.memory_space<vmem>>, vector<8x16xf32>
    tpu.vector_store %arg10[%327, %c0_97], %295 {strides = array<i32>} : memref<64x32xf32, #tpu.memory_space<vmem>>, vector<8x16xf32>,
    %329 = arith.index_cast %256 : i32 to index
    %c16_98 = arith.constant 16 : index
    %330 = vector.load %arg10[%329, %c16_98] : memref<64x32xf32, #tpu.memory_space<vmem>>, vector<8x16xf32>
    tpu.vector_store %arg10[%329, %c16_98], %326 {strides = array<i32>} : memref<64x32xf32, #tpu.memory_space<vmem>>, vector<8x16xf32>,
    %c4_i32 = arith.constant 4 : i32
    %c8_i32_99 = arith.constant 8 : i32
    %331 = arith.muli %c4_i32, %c8_i32_99 : i32
    %332 = tpu.assume_multiple %331, 8 : i32
    %c7_i32_100 = arith.constant 7 : i32
    %333 = arith.subi %c7_i32_100, %c4_i32 : i32
    %c8_i32_101 = arith.constant 8 : i32
    %334 = arith.muli %333, %c8_i32_101 : i32
    %335 = tpu.assume_multiple %334, 8 : i32
    %336 = arith.index_cast %332 : i32 to index
    %c0_102 = arith.constant 0 : index
    %337 = vector.load %arg9[%336, %c0_102] : memref<64x96xf32, #tpu.memory_space<vmem>>, vector<8x96xf32>
    %338 = arith.index_cast %335 : i32 to index
    %c0_103 = arith.constant 0 : index
    %339 = vector.load %arg9[%338, %c0_103] : memref<64x96xf32, #tpu.memory_space<vmem>>, vector<8x96xf32>
    %340 = tpu.concatenate %295, %326 in 1 : vector<8x16xf32>, vector<8x16xf32> -> vector<8x32xf32>
    %cst_104 = arith.constant dense<0.000000e+00> : vector<8x96xf32>
    %341 = tpu.matmul %340, %13, %cst_104 {dimension_numbers = #tpu.dot_dimension_numbers<[1], [0], [0], [1], [0, 0, 1, 1], [], []>} : vector<8x32xf32>, vector<32x96xf32>, vector<8x96xf32> -> vector<8x96xf32>
    %342 = vector.extract_strided_slice %341 {offsets = [0, 0], sizes = [8, 48], strides = [1, 1]} : vector<8x96xf32> to vector<8x48xf32>
    %343 = vector.extract_strided_slice %341 {offsets = [0, 48], sizes = [8, 48], strides = [1, 1]} : vector<8x96xf32> to vector<8x48xf32>
    %344 = vector.extract_strided_slice %337 {offsets = [0, 0], sizes = [8, 16], strides = [1, 1]} : vector<8x96xf32> to vector<8x16xf32>
    %345 = vector.extract_strided_slice %342 {offsets = [0, 0], sizes = [8, 16], strides = [1, 1]} : vector<8x48xf32> to vector<8x16xf32>
    %346 = arith.addf %344, %345 : vector<8x16xf32>
    %cst_105 = arith.constant 5.000000e-01 : f32
    %347 = vector.broadcast %cst_105 : f32 to vector<8x16xf32>
    %348 = arith.mulf %347, %346 : vector<8x16xf32>
    %349 = math.tanh %348 : vector<8x16xf32>
    %cst_106 = arith.constant 1.000000e+00 : f32
    %350 = vector.broadcast %cst_106 : f32 to vector<8x16xf32>
    %351 = arith.addf %349, %350 : vector<8x16xf32>
    %cst_107 = arith.constant 5.000000e-01 : f32
    %352 = vector.broadcast %cst_107 : f32 to vector<8x16xf32>
    %353 = arith.mulf %352, %351 : vector<8x16xf32>
    %354 = vector.extract_strided_slice %337 {offsets = [0, 16], sizes = [8, 16], strides = [1, 1]} : vector<8x96xf32> to vector<8x16xf32>
    %355 = vector.extract_strided_slice %342 {offsets = [0, 16], sizes = [8, 16], strides = [1, 1]} : vector<8x48xf32> to vector<8x16xf32>
    %356 = arith.addf %354, %355 : vector<8x16xf32>
    %cst_108 = arith.constant 5.000000e-01 : f32
    %357 = vector.broadcast %cst_108 : f32 to vector<8x16xf32>
    %358 = arith.mulf %357, %356 : vector<8x16xf32>
    %359 = math.tanh %358 : vector<8x16xf32>
    %cst_109 = arith.constant 1.000000e+00 : f32
    %360 = vector.broadcast %cst_109 : f32 to vector<8x16xf32>
    %361 = arith.addf %359, %360 : vector<8x16xf32>
    %cst_110 = arith.constant 5.000000e-01 : f32
    %362 = vector.broadcast %cst_110 : f32 to vector<8x16xf32>
    %363 = arith.mulf %362, %361 : vector<8x16xf32>
    %364 = vector.extract_strided_slice %337 {offsets = [0, 32], sizes = [8, 16], strides = [1, 1]} : vector<8x96xf32> to vector<8x16xf32>
    %365 = vector.extract_strided_slice %342 {offsets = [0, 32], sizes = [8, 16], strides = [1, 1]} : vector<8x48xf32> to vector<8x16xf32>
    %366 = arith.addf %365, %9 : vector<8x16xf32>
    %367 = arith.mulf %353, %366 : vector<8x16xf32>
    %368 = arith.addf %364, %367 : vector<8x16xf32>
    %369 = math.tanh %368 : vector<8x16xf32>
    %cst_111 = arith.constant 1.000000e+00 : f32
    %370 = vector.broadcast %cst_111 : f32 to vector<8x16xf32>
    %371 = arith.subf %370, %363 : vector<8x16xf32>
    %372 = arith.mulf %371, %369 : vector<8x16xf32>
    %373 = arith.mulf %363, %295 : vector<8x16xf32>
    %374 = arith.addf %372, %373 : vector<8x16xf32>
    %375 = vector.extract_strided_slice %339 {offsets = [0, 48], sizes = [8, 16], strides = [1, 1]} : vector<8x96xf32> to vector<8x16xf32>
    %376 = vector.extract_strided_slice %343 {offsets = [0, 0], sizes = [8, 16], strides = [1, 1]} : vector<8x48xf32> to vector<8x16xf32>
    %377 = arith.addf %375, %376 : vector<8x16xf32>
    %cst_112 = arith.constant 5.000000e-01 : f32
    %378 = vector.broadcast %cst_112 : f32 to vector<8x16xf32>
    %379 = arith.mulf %378, %377 : vector<8x16xf32>
    %380 = math.tanh %379 : vector<8x16xf32>
    %cst_113 = arith.constant 1.000000e+00 : f32
    %381 = vector.broadcast %cst_113 : f32 to vector<8x16xf32>
    %382 = arith.addf %380, %381 : vector<8x16xf32>
    %cst_114 = arith.constant 5.000000e-01 : f32
    %383 = vector.broadcast %cst_114 : f32 to vector<8x16xf32>
    %384 = arith.mulf %383, %382 : vector<8x16xf32>
    %385 = vector.extract_strided_slice %339 {offsets = [0, 64], sizes = [8, 16], strides = [1, 1]} : vector<8x96xf32> to vector<8x16xf32>
    %386 = vector.extract_strided_slice %343 {offsets = [0, 16], sizes = [8, 16], strides = [1, 1]} : vector<8x48xf32> to vector<8x16xf32>
    %387 = arith.addf %385, %386 : vector<8x16xf32>
    %cst_115 = arith.constant 5.000000e-01 : f32
    %388 = vector.broadcast %cst_115 : f32 to vector<8x16xf32>
    %389 = arith.mulf %388, %387 : vector<8x16xf32>
    %390 = math.tanh %389 : vector<8x16xf32>
    %cst_116 = arith.constant 1.000000e+00 : f32
    %391 = vector.broadcast %cst_116 : f32 to vector<8x16xf32>
    %392 = arith.addf %390, %391 : vector<8x16xf32>
    %cst_117 = arith.constant 5.000000e-01 : f32
    %393 = vector.broadcast %cst_117 : f32 to vector<8x16xf32>
    %394 = arith.mulf %393, %392 : vector<8x16xf32>
    %395 = vector.extract_strided_slice %339 {offsets = [0, 80], sizes = [8, 16], strides = [1, 1]} : vector<8x96xf32> to vector<8x16xf32>
    %396 = vector.extract_strided_slice %343 {offsets = [0, 32], sizes = [8, 16], strides = [1, 1]} : vector<8x48xf32> to vector<8x16xf32>
    %397 = arith.addf %396, %12 : vector<8x16xf32>
    %398 = arith.mulf %384, %397 : vector<8x16xf32>
    %399 = arith.addf %395, %398 : vector<8x16xf32>
    %400 = math.tanh %399 : vector<8x16xf32>
    %cst_118 = arith.constant 1.000000e+00 : f32
    %401 = vector.broadcast %cst_118 : f32 to vector<8x16xf32>
    %402 = arith.subf %401, %394 : vector<8x16xf32>
    %403 = arith.mulf %402, %400 : vector<8x16xf32>
    %404 = arith.mulf %394, %326 : vector<8x16xf32>
    %405 = arith.addf %403, %404 : vector<8x16xf32>
    %406 = arith.index_cast %332 : i32 to index
    %c0_119 = arith.constant 0 : index
    %407 = vector.load %arg10[%406, %c0_119] : memref<64x32xf32, #tpu.memory_space<vmem>>, vector<8x16xf32>
    tpu.vector_store %arg10[%406, %c0_119], %374 {strides = array<i32>} : memref<64x32xf32, #tpu.memory_space<vmem>>, vector<8x16xf32>,
    %408 = arith.index_cast %335 : i32 to index
    %c16_120 = arith.constant 16 : index
    %409 = vector.load %arg10[%408, %c16_120] : memref<64x32xf32, #tpu.memory_space<vmem>>, vector<8x16xf32>
    tpu.vector_store %arg10[%408, %c16_120], %405 {strides = array<i32>} : memref<64x32xf32, #tpu.memory_space<vmem>>, vector<8x16xf32>,
    %c5_i32 = arith.constant 5 : i32
    %c8_i32_121 = arith.constant 8 : i32
    %410 = arith.muli %c5_i32, %c8_i32_121 : i32
    %411 = tpu.assume_multiple %410, 8 : i32
    %c7_i32_122 = arith.constant 7 : i32
    %412 = arith.subi %c7_i32_122, %c5_i32 : i32
    %c8_i32_123 = arith.constant 8 : i32
    %413 = arith.muli %412, %c8_i32_123 : i32
    %414 = tpu.assume_multiple %413, 8 : i32
    %415 = arith.index_cast %411 : i32 to index
    %c0_124 = arith.constant 0 : index
    %416 = vector.load %arg9[%415, %c0_124] : memref<64x96xf32, #tpu.memory_space<vmem>>, vector<8x96xf32>
    %417 = arith.index_cast %414 : i32 to index
    %c0_125 = arith.constant 0 : index
    %418 = vector.load %arg9[%417, %c0_125] : memref<64x96xf32, #tpu.memory_space<vmem>>, vector<8x96xf32>
    %419 = tpu.concatenate %374, %405 in 1 : vector<8x16xf32>, vector<8x16xf32> -> vector<8x32xf32>
    %cst_126 = arith.constant dense<0.000000e+00> : vector<8x96xf32>
    %420 = tpu.matmul %419, %13, %cst_126 {dimension_numbers = #tpu.dot_dimension_numbers<[1], [0], [0], [1], [0, 0, 1, 1], [], []>} : vector<8x32xf32>, vector<32x96xf32>, vector<8x96xf32> -> vector<8x96xf32>
    %421 = vector.extract_strided_slice %420 {offsets = [0, 0], sizes = [8, 48], strides = [1, 1]} : vector<8x96xf32> to vector<8x48xf32>
    %422 = vector.extract_strided_slice %420 {offsets = [0, 48], sizes = [8, 48], strides = [1, 1]} : vector<8x96xf32> to vector<8x48xf32>
    %423 = vector.extract_strided_slice %416 {offsets = [0, 0], sizes = [8, 16], strides = [1, 1]} : vector<8x96xf32> to vector<8x16xf32>
    %424 = vector.extract_strided_slice %421 {offsets = [0, 0], sizes = [8, 16], strides = [1, 1]} : vector<8x48xf32> to vector<8x16xf32>
    %425 = arith.addf %423, %424 : vector<8x16xf32>
    %cst_127 = arith.constant 5.000000e-01 : f32
    %426 = vector.broadcast %cst_127 : f32 to vector<8x16xf32>
    %427 = arith.mulf %426, %425 : vector<8x16xf32>
    %428 = math.tanh %427 : vector<8x16xf32>
    %cst_128 = arith.constant 1.000000e+00 : f32
    %429 = vector.broadcast %cst_128 : f32 to vector<8x16xf32>
    %430 = arith.addf %428, %429 : vector<8x16xf32>
    %cst_129 = arith.constant 5.000000e-01 : f32
    %431 = vector.broadcast %cst_129 : f32 to vector<8x16xf32>
    %432 = arith.mulf %431, %430 : vector<8x16xf32>
    %433 = vector.extract_strided_slice %416 {offsets = [0, 16], sizes = [8, 16], strides = [1, 1]} : vector<8x96xf32> to vector<8x16xf32>
    %434 = vector.extract_strided_slice %421 {offsets = [0, 16], sizes = [8, 16], strides = [1, 1]} : vector<8x48xf32> to vector<8x16xf32>
    %435 = arith.addf %433, %434 : vector<8x16xf32>
    %cst_130 = arith.constant 5.000000e-01 : f32
    %436 = vector.broadcast %cst_130 : f32 to vector<8x16xf32>
    %437 = arith.mulf %436, %435 : vector<8x16xf32>
    %438 = math.tanh %437 : vector<8x16xf32>
    %cst_131 = arith.constant 1.000000e+00 : f32
    %439 = vector.broadcast %cst_131 : f32 to vector<8x16xf32>
    %440 = arith.addf %438, %439 : vector<8x16xf32>
    %cst_132 = arith.constant 5.000000e-01 : f32
    %441 = vector.broadcast %cst_132 : f32 to vector<8x16xf32>
    %442 = arith.mulf %441, %440 : vector<8x16xf32>
    %443 = vector.extract_strided_slice %416 {offsets = [0, 32], sizes = [8, 16], strides = [1, 1]} : vector<8x96xf32> to vector<8x16xf32>
    %444 = vector.extract_strided_slice %421 {offsets = [0, 32], sizes = [8, 16], strides = [1, 1]} : vector<8x48xf32> to vector<8x16xf32>
    %445 = arith.addf %444, %9 : vector<8x16xf32>
    %446 = arith.mulf %432, %445 : vector<8x16xf32>
    %447 = arith.addf %443, %446 : vector<8x16xf32>
    %448 = math.tanh %447 : vector<8x16xf32>
    %cst_133 = arith.constant 1.000000e+00 : f32
    %449 = vector.broadcast %cst_133 : f32 to vector<8x16xf32>
    %450 = arith.subf %449, %442 : vector<8x16xf32>
    %451 = arith.mulf %450, %448 : vector<8x16xf32>
    %452 = arith.mulf %442, %374 : vector<8x16xf32>
    %453 = arith.addf %451, %452 : vector<8x16xf32>
    %454 = vector.extract_strided_slice %418 {offsets = [0, 48], sizes = [8, 16], strides = [1, 1]} : vector<8x96xf32> to vector<8x16xf32>
    %455 = vector.extract_strided_slice %422 {offsets = [0, 0], sizes = [8, 16], strides = [1, 1]} : vector<8x48xf32> to vector<8x16xf32>
    %456 = arith.addf %454, %455 : vector<8x16xf32>
    %cst_134 = arith.constant 5.000000e-01 : f32
    %457 = vector.broadcast %cst_134 : f32 to vector<8x16xf32>
    %458 = arith.mulf %457, %456 : vector<8x16xf32>
    %459 = math.tanh %458 : vector<8x16xf32>
    %cst_135 = arith.constant 1.000000e+00 : f32
    %460 = vector.broadcast %cst_135 : f32 to vector<8x16xf32>
    %461 = arith.addf %459, %460 : vector<8x16xf32>
    %cst_136 = arith.constant 5.000000e-01 : f32
    %462 = vector.broadcast %cst_136 : f32 to vector<8x16xf32>
    %463 = arith.mulf %462, %461 : vector<8x16xf32>
    %464 = vector.extract_strided_slice %418 {offsets = [0, 64], sizes = [8, 16], strides = [1, 1]} : vector<8x96xf32> to vector<8x16xf32>
    %465 = vector.extract_strided_slice %422 {offsets = [0, 16], sizes = [8, 16], strides = [1, 1]} : vector<8x48xf32> to vector<8x16xf32>
    %466 = arith.addf %464, %465 : vector<8x16xf32>
    %cst_137 = arith.constant 5.000000e-01 : f32
    %467 = vector.broadcast %cst_137 : f32 to vector<8x16xf32>
    %468 = arith.mulf %467, %466 : vector<8x16xf32>
    %469 = math.tanh %468 : vector<8x16xf32>
    %cst_138 = arith.constant 1.000000e+00 : f32
    %470 = vector.broadcast %cst_138 : f32 to vector<8x16xf32>
    %471 = arith.addf %469, %470 : vector<8x16xf32>
    %cst_139 = arith.constant 5.000000e-01 : f32
    %472 = vector.broadcast %cst_139 : f32 to vector<8x16xf32>
    %473 = arith.mulf %472, %471 : vector<8x16xf32>
    %474 = vector.extract_strided_slice %418 {offsets = [0, 80], sizes = [8, 16], strides = [1, 1]} : vector<8x96xf32> to vector<8x16xf32>
    %475 = vector.extract_strided_slice %422 {offsets = [0, 32], sizes = [8, 16], strides = [1, 1]} : vector<8x48xf32> to vector<8x16xf32>
    %476 = arith.addf %475, %12 : vector<8x16xf32>
    %477 = arith.mulf %463, %476 : vector<8x16xf32>
    %478 = arith.addf %474, %477 : vector<8x16xf32>
    %479 = math.tanh %478 : vector<8x16xf32>
    %cst_140 = arith.constant 1.000000e+00 : f32
    %480 = vector.broadcast %cst_140 : f32 to vector<8x16xf32>
    %481 = arith.subf %480, %473 : vector<8x16xf32>
    %482 = arith.mulf %481, %479 : vector<8x16xf32>
    %483 = arith.mulf %473, %405 : vector<8x16xf32>
    %484 = arith.addf %482, %483 : vector<8x16xf32>
    %485 = arith.index_cast %411 : i32 to index
    %c0_141 = arith.constant 0 : index
    %486 = vector.load %arg10[%485, %c0_141] : memref<64x32xf32, #tpu.memory_space<vmem>>, vector<8x16xf32>
    tpu.vector_store %arg10[%485, %c0_141], %453 {strides = array<i32>} : memref<64x32xf32, #tpu.memory_space<vmem>>, vector<8x16xf32>,
    %487 = arith.index_cast %414 : i32 to index
    %c16_142 = arith.constant 16 : index
    %488 = vector.load %arg10[%487, %c16_142] : memref<64x32xf32, #tpu.memory_space<vmem>>, vector<8x16xf32>
    tpu.vector_store %arg10[%487, %c16_142], %484 {strides = array<i32>} : memref<64x32xf32, #tpu.memory_space<vmem>>, vector<8x16xf32>,
    %c6_i32 = arith.constant 6 : i32
    %c8_i32_143 = arith.constant 8 : i32
    %489 = arith.muli %c6_i32, %c8_i32_143 : i32
    %490 = tpu.assume_multiple %489, 8 : i32
    %c7_i32_144 = arith.constant 7 : i32
    %491 = arith.subi %c7_i32_144, %c6_i32 : i32
    %c8_i32_145 = arith.constant 8 : i32
    %492 = arith.muli %491, %c8_i32_145 : i32
    %493 = tpu.assume_multiple %492, 8 : i32
    %494 = arith.index_cast %490 : i32 to index
    %c0_146 = arith.constant 0 : index
    %495 = vector.load %arg9[%494, %c0_146] : memref<64x96xf32, #tpu.memory_space<vmem>>, vector<8x96xf32>
    %496 = arith.index_cast %493 : i32 to index
    %c0_147 = arith.constant 0 : index
    %497 = vector.load %arg9[%496, %c0_147] : memref<64x96xf32, #tpu.memory_space<vmem>>, vector<8x96xf32>
    %498 = tpu.concatenate %453, %484 in 1 : vector<8x16xf32>, vector<8x16xf32> -> vector<8x32xf32>
    %cst_148 = arith.constant dense<0.000000e+00> : vector<8x96xf32>
    %499 = tpu.matmul %498, %13, %cst_148 {dimension_numbers = #tpu.dot_dimension_numbers<[1], [0], [0], [1], [0, 0, 1, 1], [], []>} : vector<8x32xf32>, vector<32x96xf32>, vector<8x96xf32> -> vector<8x96xf32>
    %500 = vector.extract_strided_slice %499 {offsets = [0, 0], sizes = [8, 48], strides = [1, 1]} : vector<8x96xf32> to vector<8x48xf32>
    %501 = vector.extract_strided_slice %499 {offsets = [0, 48], sizes = [8, 48], strides = [1, 1]} : vector<8x96xf32> to vector<8x48xf32>
    %502 = vector.extract_strided_slice %495 {offsets = [0, 0], sizes = [8, 16], strides = [1, 1]} : vector<8x96xf32> to vector<8x16xf32>
    %503 = vector.extract_strided_slice %500 {offsets = [0, 0], sizes = [8, 16], strides = [1, 1]} : vector<8x48xf32> to vector<8x16xf32>
    %504 = arith.addf %502, %503 : vector<8x16xf32>
    %cst_149 = arith.constant 5.000000e-01 : f32
    %505 = vector.broadcast %cst_149 : f32 to vector<8x16xf32>
    %506 = arith.mulf %505, %504 : vector<8x16xf32>
    %507 = math.tanh %506 : vector<8x16xf32>
    %cst_150 = arith.constant 1.000000e+00 : f32
    %508 = vector.broadcast %cst_150 : f32 to vector<8x16xf32>
    %509 = arith.addf %507, %508 : vector<8x16xf32>
    %cst_151 = arith.constant 5.000000e-01 : f32
    %510 = vector.broadcast %cst_151 : f32 to vector<8x16xf32>
    %511 = arith.mulf %510, %509 : vector<8x16xf32>
    %512 = vector.extract_strided_slice %495 {offsets = [0, 16], sizes = [8, 16], strides = [1, 1]} : vector<8x96xf32> to vector<8x16xf32>
    %513 = vector.extract_strided_slice %500 {offsets = [0, 16], sizes = [8, 16], strides = [1, 1]} : vector<8x48xf32> to vector<8x16xf32>
    %514 = arith.addf %512, %513 : vector<8x16xf32>
    %cst_152 = arith.constant 5.000000e-01 : f32
    %515 = vector.broadcast %cst_152 : f32 to vector<8x16xf32>
    %516 = arith.mulf %515, %514 : vector<8x16xf32>
    %517 = math.tanh %516 : vector<8x16xf32>
    %cst_153 = arith.constant 1.000000e+00 : f32
    %518 = vector.broadcast %cst_153 : f32 to vector<8x16xf32>
    %519 = arith.addf %517, %518 : vector<8x16xf32>
    %cst_154 = arith.constant 5.000000e-01 : f32
    %520 = vector.broadcast %cst_154 : f32 to vector<8x16xf32>
    %521 = arith.mulf %520, %519 : vector<8x16xf32>
    %522 = vector.extract_strided_slice %495 {offsets = [0, 32], sizes = [8, 16], strides = [1, 1]} : vector<8x96xf32> to vector<8x16xf32>
    %523 = vector.extract_strided_slice %500 {offsets = [0, 32], sizes = [8, 16], strides = [1, 1]} : vector<8x48xf32> to vector<8x16xf32>
    %524 = arith.addf %523, %9 : vector<8x16xf32>
    %525 = arith.mulf %511, %524 : vector<8x16xf32>
    %526 = arith.addf %522, %525 : vector<8x16xf32>
    %527 = math.tanh %526 : vector<8x16xf32>
    %cst_155 = arith.constant 1.000000e+00 : f32
    %528 = vector.broadcast %cst_155 : f32 to vector<8x16xf32>
    %529 = arith.subf %528, %521 : vector<8x16xf32>
    %530 = arith.mulf %529, %527 : vector<8x16xf32>
    %531 = arith.mulf %521, %453 : vector<8x16xf32>
    %532 = arith.addf %530, %531 : vector<8x16xf32>
    %533 = vector.extract_strided_slice %497 {offsets = [0, 48], sizes = [8, 16], strides = [1, 1]} : vector<8x96xf32> to vector<8x16xf32>
    %534 = vector.extract_strided_slice %501 {offsets = [0, 0], sizes = [8, 16], strides = [1, 1]} : vector<8x48xf32> to vector<8x16xf32>
    %535 = arith.addf %533, %534 : vector<8x16xf32>
    %cst_156 = arith.constant 5.000000e-01 : f32
    %536 = vector.broadcast %cst_156 : f32 to vector<8x16xf32>
    %537 = arith.mulf %536, %535 : vector<8x16xf32>
    %538 = math.tanh %537 : vector<8x16xf32>
    %cst_157 = arith.constant 1.000000e+00 : f32
    %539 = vector.broadcast %cst_157 : f32 to vector<8x16xf32>
    %540 = arith.addf %538, %539 : vector<8x16xf32>
    %cst_158 = arith.constant 5.000000e-01 : f32
    %541 = vector.broadcast %cst_158 : f32 to vector<8x16xf32>
    %542 = arith.mulf %541, %540 : vector<8x16xf32>
    %543 = vector.extract_strided_slice %497 {offsets = [0, 64], sizes = [8, 16], strides = [1, 1]} : vector<8x96xf32> to vector<8x16xf32>
    %544 = vector.extract_strided_slice %501 {offsets = [0, 16], sizes = [8, 16], strides = [1, 1]} : vector<8x48xf32> to vector<8x16xf32>
    %545 = arith.addf %543, %544 : vector<8x16xf32>
    %cst_159 = arith.constant 5.000000e-01 : f32
    %546 = vector.broadcast %cst_159 : f32 to vector<8x16xf32>
    %547 = arith.mulf %546, %545 : vector<8x16xf32>
    %548 = math.tanh %547 : vector<8x16xf32>
    %cst_160 = arith.constant 1.000000e+00 : f32
    %549 = vector.broadcast %cst_160 : f32 to vector<8x16xf32>
    %550 = arith.addf %548, %549 : vector<8x16xf32>
    %cst_161 = arith.constant 5.000000e-01 : f32
    %551 = vector.broadcast %cst_161 : f32 to vector<8x16xf32>
    %552 = arith.mulf %551, %550 : vector<8x16xf32>
    %553 = vector.extract_strided_slice %497 {offsets = [0, 80], sizes = [8, 16], strides = [1, 1]} : vector<8x96xf32> to vector<8x16xf32>
    %554 = vector.extract_strided_slice %501 {offsets = [0, 32], sizes = [8, 16], strides = [1, 1]} : vector<8x48xf32> to vector<8x16xf32>
    %555 = arith.addf %554, %12 : vector<8x16xf32>
    %556 = arith.mulf %542, %555 : vector<8x16xf32>
    %557 = arith.addf %553, %556 : vector<8x16xf32>
    %558 = math.tanh %557 : vector<8x16xf32>
    %cst_162 = arith.constant 1.000000e+00 : f32
    %559 = vector.broadcast %cst_162 : f32 to vector<8x16xf32>
    %560 = arith.subf %559, %552 : vector<8x16xf32>
    %561 = arith.mulf %560, %558 : vector<8x16xf32>
    %562 = arith.mulf %552, %484 : vector<8x16xf32>
    %563 = arith.addf %561, %562 : vector<8x16xf32>
    %564 = arith.index_cast %490 : i32 to index
    %c0_163 = arith.constant 0 : index
    %565 = vector.load %arg10[%564, %c0_163] : memref<64x32xf32, #tpu.memory_space<vmem>>, vector<8x16xf32>
    tpu.vector_store %arg10[%564, %c0_163], %532 {strides = array<i32>} : memref<64x32xf32, #tpu.memory_space<vmem>>, vector<8x16xf32>,
    %566 = arith.index_cast %493 : i32 to index
    %c16_164 = arith.constant 16 : index
    %567 = vector.load %arg10[%566, %c16_164] : memref<64x32xf32, #tpu.memory_space<vmem>>, vector<8x16xf32>
    tpu.vector_store %arg10[%566, %c16_164], %563 {strides = array<i32>} : memref<64x32xf32, #tpu.memory_space<vmem>>, vector<8x16xf32>,
    %c7_i32_165 = arith.constant 7 : i32
    %c8_i32_166 = arith.constant 8 : i32
    %568 = arith.muli %c7_i32_165, %c8_i32_166 : i32
    %569 = tpu.assume_multiple %568, 8 : i32
    %c7_i32_167 = arith.constant 7 : i32
    %570 = arith.subi %c7_i32_167, %c7_i32_165 : i32
    %c8_i32_168 = arith.constant 8 : i32
    %571 = arith.muli %570, %c8_i32_168 : i32
    %572 = tpu.assume_multiple %571, 8 : i32
    %573 = arith.index_cast %569 : i32 to index
    %c0_169 = arith.constant 0 : index
    %574 = vector.load %arg9[%573, %c0_169] : memref<64x96xf32, #tpu.memory_space<vmem>>, vector<8x96xf32>
    %575 = arith.index_cast %572 : i32 to index
    %c0_170 = arith.constant 0 : index
    %576 = vector.load %arg9[%575, %c0_170] : memref<64x96xf32, #tpu.memory_space<vmem>>, vector<8x96xf32>
    %577 = tpu.concatenate %532, %563 in 1 : vector<8x16xf32>, vector<8x16xf32> -> vector<8x32xf32>
    %cst_171 = arith.constant dense<0.000000e+00> : vector<8x96xf32>
    %578 = tpu.matmul %577, %13, %cst_171 {dimension_numbers = #tpu.dot_dimension_numbers<[1], [0], [0], [1], [0, 0, 1, 1], [], []>} : vector<8x32xf32>, vector<32x96xf32>, vector<8x96xf32> -> vector<8x96xf32>
    %579 = vector.extract_strided_slice %578 {offsets = [0, 0], sizes = [8, 48], strides = [1, 1]} : vector<8x96xf32> to vector<8x48xf32>
    %580 = vector.extract_strided_slice %578 {offsets = [0, 48], sizes = [8, 48], strides = [1, 1]} : vector<8x96xf32> to vector<8x48xf32>
    %581 = vector.extract_strided_slice %574 {offsets = [0, 0], sizes = [8, 16], strides = [1, 1]} : vector<8x96xf32> to vector<8x16xf32>
    %582 = vector.extract_strided_slice %579 {offsets = [0, 0], sizes = [8, 16], strides = [1, 1]} : vector<8x48xf32> to vector<8x16xf32>
    %583 = arith.addf %581, %582 : vector<8x16xf32>
    %cst_172 = arith.constant 5.000000e-01 : f32
    %584 = vector.broadcast %cst_172 : f32 to vector<8x16xf32>
    %585 = arith.mulf %584, %583 : vector<8x16xf32>
    %586 = math.tanh %585 : vector<8x16xf32>
    %cst_173 = arith.constant 1.000000e+00 : f32
    %587 = vector.broadcast %cst_173 : f32 to vector<8x16xf32>
    %588 = arith.addf %586, %587 : vector<8x16xf32>
    %cst_174 = arith.constant 5.000000e-01 : f32
    %589 = vector.broadcast %cst_174 : f32 to vector<8x16xf32>
    %590 = arith.mulf %589, %588 : vector<8x16xf32>
    %591 = vector.extract_strided_slice %574 {offsets = [0, 16], sizes = [8, 16], strides = [1, 1]} : vector<8x96xf32> to vector<8x16xf32>
    %592 = vector.extract_strided_slice %579 {offsets = [0, 16], sizes = [8, 16], strides = [1, 1]} : vector<8x48xf32> to vector<8x16xf32>
    %593 = arith.addf %591, %592 : vector<8x16xf32>
    %cst_175 = arith.constant 5.000000e-01 : f32
    %594 = vector.broadcast %cst_175 : f32 to vector<8x16xf32>
    %595 = arith.mulf %594, %593 : vector<8x16xf32>
    %596 = math.tanh %595 : vector<8x16xf32>
    %cst_176 = arith.constant 1.000000e+00 : f32
    %597 = vector.broadcast %cst_176 : f32 to vector<8x16xf32>
    %598 = arith.addf %596, %597 : vector<8x16xf32>
    %cst_177 = arith.constant 5.000000e-01 : f32
    %599 = vector.broadcast %cst_177 : f32 to vector<8x16xf32>
    %600 = arith.mulf %599, %598 : vector<8x16xf32>
    %601 = vector.extract_strided_slice %574 {offsets = [0, 32], sizes = [8, 16], strides = [1, 1]} : vector<8x96xf32> to vector<8x16xf32>
    %602 = vector.extract_strided_slice %579 {offsets = [0, 32], sizes = [8, 16], strides = [1, 1]} : vector<8x48xf32> to vector<8x16xf32>
    %603 = arith.addf %602, %9 : vector<8x16xf32>
    %604 = arith.mulf %590, %603 : vector<8x16xf32>
    %605 = arith.addf %601, %604 : vector<8x16xf32>
    %606 = math.tanh %605 : vector<8x16xf32>
    %cst_178 = arith.constant 1.000000e+00 : f32
    %607 = vector.broadcast %cst_178 : f32 to vector<8x16xf32>
    %608 = arith.subf %607, %600 : vector<8x16xf32>
    %609 = arith.mulf %608, %606 : vector<8x16xf32>
    %610 = arith.mulf %600, %532 : vector<8x16xf32>
    %611 = arith.addf %609, %610 : vector<8x16xf32>
    %612 = vector.extract_strided_slice %576 {offsets = [0, 48], sizes = [8, 16], strides = [1, 1]} : vector<8x96xf32> to vector<8x16xf32>
    %613 = vector.extract_strided_slice %580 {offsets = [0, 0], sizes = [8, 16], strides = [1, 1]} : vector<8x48xf32> to vector<8x16xf32>
    %614 = arith.addf %612, %613 : vector<8x16xf32>
    %cst_179 = arith.constant 5.000000e-01 : f32
    %615 = vector.broadcast %cst_179 : f32 to vector<8x16xf32>
    %616 = arith.mulf %615, %614 : vector<8x16xf32>
    %617 = math.tanh %616 : vector<8x16xf32>
    %cst_180 = arith.constant 1.000000e+00 : f32
    %618 = vector.broadcast %cst_180 : f32 to vector<8x16xf32>
    %619 = arith.addf %617, %618 : vector<8x16xf32>
    %cst_181 = arith.constant 5.000000e-01 : f32
    %620 = vector.broadcast %cst_181 : f32 to vector<8x16xf32>
    %621 = arith.mulf %620, %619 : vector<8x16xf32>
    %622 = vector.extract_strided_slice %576 {offsets = [0, 64], sizes = [8, 16], strides = [1, 1]} : vector<8x96xf32> to vector<8x16xf32>
    %623 = vector.extract_strided_slice %580 {offsets = [0, 16], sizes = [8, 16], strides = [1, 1]} : vector<8x48xf32> to vector<8x16xf32>
    %624 = arith.addf %622, %623 : vector<8x16xf32>
    %cst_182 = arith.constant 5.000000e-01 : f32
    %625 = vector.broadcast %cst_182 : f32 to vector<8x16xf32>
    %626 = arith.mulf %625, %624 : vector<8x16xf32>
    %627 = math.tanh %626 : vector<8x16xf32>
    %cst_183 = arith.constant 1.000000e+00 : f32
    %628 = vector.broadcast %cst_183 : f32 to vector<8x16xf32>
    %629 = arith.addf %627, %628 : vector<8x16xf32>
    %cst_184 = arith.constant 5.000000e-01 : f32
    %630 = vector.broadcast %cst_184 : f32 to vector<8x16xf32>
    %631 = arith.mulf %630, %629 : vector<8x16xf32>
    %632 = vector.extract_strided_slice %576 {offsets = [0, 80], sizes = [8, 16], strides = [1, 1]} : vector<8x96xf32> to vector<8x16xf32>
    %633 = vector.extract_strided_slice %580 {offsets = [0, 32], sizes = [8, 16], strides = [1, 1]} : vector<8x48xf32> to vector<8x16xf32>
    %634 = arith.addf %633, %12 : vector<8x16xf32>
    %635 = arith.mulf %621, %634 : vector<8x16xf32>
    %636 = arith.addf %632, %635 : vector<8x16xf32>
    %637 = math.tanh %636 : vector<8x16xf32>
    %cst_185 = arith.constant 1.000000e+00 : f32
    %638 = vector.broadcast %cst_185 : f32 to vector<8x16xf32>
    %639 = arith.subf %638, %631 : vector<8x16xf32>
    %640 = arith.mulf %639, %637 : vector<8x16xf32>
    %641 = arith.mulf %631, %563 : vector<8x16xf32>
    %642 = arith.addf %640, %641 : vector<8x16xf32>
    %643 = arith.index_cast %569 : i32 to index
    %c0_186 = arith.constant 0 : index
    %644 = vector.load %arg10[%643, %c0_186] : memref<64x32xf32, #tpu.memory_space<vmem>>, vector<8x16xf32>
    tpu.vector_store %arg10[%643, %c0_186], %611 {strides = array<i32>} : memref<64x32xf32, #tpu.memory_space<vmem>>, vector<8x16xf32>,
    %645 = arith.index_cast %572 : i32 to index
    %c16_187 = arith.constant 16 : index
    %646 = vector.load %arg10[%645, %c16_187] : memref<64x32xf32, #tpu.memory_space<vmem>>, vector<8x16xf32>
    tpu.vector_store %arg10[%645, %c16_187], %642 {strides = array<i32>} : memref<64x32xf32, #tpu.memory_space<vmem>>, vector<8x16xf32>,
    %c8_i32_188 = arith.constant 8 : i32
    %c0_189 = arith.constant 0 : index
    %c0_190 = arith.constant 0 : index
    %647 = vector.load %arg10[%c0_189, %c0_190] : memref<64x32xf32, #tpu.memory_space<vmem>>, vector<64x32xf32>
    %c0_191 = arith.constant 0 : index
    %c0_192 = arith.constant 0 : index
    %648 = vector.load %arg5[%c0_191, %c0_192] : memref<64x32xf32, #tpu.memory_space<vmem>>, vector<64x32xf32>
    %649 = arith.addf %647, %648 : vector<64x32xf32>
    %cst_193 = arith.constant dense<0.000000e+00> : vector<64xf32>
    %650 = vector.multi_reduction <add>, %649, %cst_193 [1] : vector<64x32xf32> to vector<64xf32>
    %651 = vector.shape_cast %650 : vector<64xf32> to vector<64x1xf32>
    %cst_194 = arith.constant 3.200000e+01 : f32
    %652 = vector.broadcast %cst_194 : f32 to vector<64x1xf32>
    %653 = arith.divf %651, %652 : vector<64x1xf32>
    %654 = vector.broadcast %653 : vector<64x1xf32> to vector<64x32xf32>
    %655 = arith.subf %649, %654 : vector<64x32xf32>
    %656 = arith.mulf %655, %655 : vector<64x32xf32>
    %cst_195 = arith.constant dense<0.000000e+00> : vector<64xf32>
    %657 = vector.multi_reduction <add>, %656, %cst_195 [1] : vector<64x32xf32> to vector<64xf32>
    %658 = vector.shape_cast %657 : vector<64xf32> to vector<64x1xf32>
    %cst_196 = arith.constant 3.200000e+01 : f32
    %659 = vector.broadcast %cst_196 : f32 to vector<64x1xf32>
    %660 = arith.divf %658, %659 : vector<64x1xf32>
    %cst_197 = arith.constant 9.99999974E-6 : f32
    %661 = vector.broadcast %cst_197 : f32 to vector<64x1xf32>
    %662 = arith.addf %660, %661 : vector<64x1xf32>
    %663 = math.rsqrt %662 : vector<64x1xf32>
    %664 = vector.broadcast %663 : vector<64x1xf32> to vector<64x32xf32>
    %665 = arith.mulf %655, %664 : vector<64x32xf32>
    %c0_198 = arith.constant 0 : index
    %c0_199 = arith.constant 0 : index
    %666 = vector.load %arg6[%c0_198, %c0_199] : memref<1x32xf32, #tpu.memory_space<vmem>>, vector<1x32xf32>
    %667 = vector.broadcast %666 : vector<1x32xf32> to vector<64x32xf32>
    %668 = arith.mulf %665, %667 : vector<64x32xf32>
    %c0_200 = arith.constant 0 : index
    %c0_201 = arith.constant 0 : index
    %669 = vector.load %arg7[%c0_200, %c0_201] : memref<1x32xf32, #tpu.memory_space<vmem>>, vector<1x32xf32>
    %670 = vector.broadcast %669 : vector<1x32xf32> to vector<64x32xf32>
    %671 = arith.addf %668, %670 : vector<64x32xf32>
    %c0_202 = arith.constant 0 : index
    %c0_203 = arith.constant 0 : index
    %672 = vector.load %arg8[%c0_202, %c0_203] : memref<64x32xf32, #tpu.memory_space<vmem>>, vector<64x32xf32>
    tpu.vector_store %arg8[%c0_202, %c0_203], %671 {strides = array<i32>} : memref<64x32xf32, #tpu.memory_space<vmem>>, vector<64x32xf32>,
    return
  }
}

</mosaic_0001>

<bundles_post_ra>
// kernel: residual_gru_forward.2
= control target key start
LH: loop header
LB: loop body
LE: loop exit
PB: predicated region body
PF: predicated region fallthrough
CT: control target
= control target key end

     0   :  { %v1565_v0 = vmov 0.0   ;;  %vm1566_vm0 = vmmov 0   ;;  %vm39_vm1 = vcmask 261120   ;;  %s1567_s17 = smov 32   ;;  %s1568_s21 = smov 64   ;;  %vm169_vm2 = vcmask 785408   ;;  %s1960_s1 = inlined_call_operand.vmem [shape: f32[32,96], index: 1, kind: input, shape index: {}]   ;;  %s1961_s2 = inlined_call_operand.vmem [shape: f32[32,96], index: 2, kind: input, shape index: {}]   ;;  %s1962_s0 = inlined_call_operand.vmem [shape: f32[64,32], index: 0, kind: input, shape index: {}]   ;;  %s1963_s4 = inlined_call_operand.vmem [shape: f32[1,32], index: 4, kind: input, shape index: {}]   ;;  %s1964_s3 = inlined_call_operand.vmem [shape: f32[1,96], index: 3, kind: input, shape index: {}]   ;;  %s1965_s5 = inlined_call_operand.vmem [shape: f32[64,32], index: 5, kind: output, shape index: {}]  }
   0x1   :  { %1406 = vmatprep.subr.mxu1 %v1565_v0  ;;  %v31_v1 = vld [vmem:[%s1960_s1 + $0x18] sm:$0xff]  ;;  %v30_v3 = vld [vmem:[%s1960_s1 + $0x10] sm:$0xff]  ;;  %1414 = vmatprep.mubr.msk.f32.mxu1 %vm1566_vm0, %v1565_v0  ;;  %v29_v5 = vld [vmem:[%s1960_s1 + $0x8] sm:$0xff]  ;;  %s1569_s27 = smov 96   ;;  %s1571_s28 = smov 80   ;;  %vm324_vm3 = vcmask 130048  }
   0x2   :  { %v1609_v2 = vld [vmem:[%s1961_s2 + $0x18] sm:$0xff]  ;;  %1386 = vmatprep.subr.mxu0 %v31_v1  ;;  %v1620_v4 = vld [vmem:[%s1961_s2 + $0x10] sm:$0xff]  ;;  %v1629_v6 = vld [vmem:[%s1961_s2 + $0x8] sm:$0xff]  ;;  %vm331_vm4 = vcmask 261248  }
   0x3   :  { %1407 = vmatpush3.msra.mxu1 %v1609_v2  ;;  %1387 = vmatpush3.msra.mxu0 %v31_v1  ;;  %v28_v7 = vld [vmem:[%s1960_s1] sm:$0xff]  ;;  %v21_v10 = vld [vmem:[%s1962_s0 + $0x8] sm:$0xff]  ;;  %v22_v11 = vld [vmem:[%s1962_s0 + $0x10] sm:$0xff] }
   0x4   :  { %1408 = vmatprep.subr.mxu1 %v1565_v0  ;;  %1388 = vmatprep.subr.mxu0 %v30_v3  ;;  %v1639_v8 = vld [vmem:[%s1961_s2] sm:$0xff]  ;;  %v23_v13 = vld [vmem:[%s1962_s0 + $0x18] sm:$0xff]  ;;  %v25_v15 = vld [vmem:[%s1962_s0 + $0x28] sm:$0xff] }
   0x5   :  { %1409 = vmatpush3.msra.mxu1 %v1620_v4  ;;  %1389 = vmatpush3.msra.mxu0 %v30_v3  ;;  %v20_v9 = vld [vmem:[%s1962_s0] sm:$0xff]  ;;  %v26_v16 = vld [vmem:[%s1962_s0 + $0x30] sm:$0xff]  ;;  %v27_v17 = vld [vmem:[%s1962_s0 + $0x38] sm:$0xff] }
   0x6   :  { %1410 = vmatprep.subr.mxu1 %v1565_v0  ;;  %1390 = vmatprep.subr.mxu0 %v29_v5  ;;  %v1326_v12 = vld [vmem:[%s1963_s4] ss:$0 sm:$0xff] }
   0x7   :  { %1411 = vmatpush3.msra.mxu1 %v1629_v6  ;;  %1391 = vmatpush3.msra.mxu0 %v29_v5  ;;  %v24_v14 = vld [vmem:[%s1962_s0 + $0x20] sm:$0xff] }
   0x8   :  { %1412 = vmatprep.subr.mxu1 %v1565_v0  ;;  %1392 = vmatprep.subr.mxu0 %v28_v7  ;;  %v1317_v21 = vld [vmem:[%s1964_s3] ss:$0 sm:$0xff]  ;;  %s1570_s3 = smov 112  }
   0x9   :  { %1413 = vmatpush3.msra.mxu1 %v1639_v8  ;;  %1393 = vmatpush3.msra.mxu0 %v28_v7 }
   0xa   :  { %1394 = vmatprep.mubr.msk.f32.mxu0 %vm39_vm1, %v20_v9  ;;  %1415 = vmatmul.mubr.f32.vlgmr.msra.gmra.mxu1 %v1565_v0 }
   0xb   :  { %1395 = vmatmul.mubr.msk.f32.vlgmr.msra.gmra.mxu0 %vm39_vm1, %v21_v10  ;;  %269 = vrot.lane.b32.xlu0 %v1326_v12, %s1567_s17 }
   0xc   :  { %1397 = vmatprep.mubr.msk.f32.mxu0 %vm39_vm1, %v22_v11  ;;  %1417 = vmatprep.subr.mxu1 %v1565_v0 }
   0xd   :  { %1425 = vmatprep.mubr.msk.f32.mxu1 %vm1566_vm0, %v1565_v0  ;;  %1418 = vmatpush3.msra.mxu1 %v1609_v2 }
   0xe   :  { %1428 = vmatprep.subr.mxu0 %v1565_v0  ;;  %1419 = vmatprep.subr.mxu1 %v1565_v0 }
   0xf   :  { %1398 = vmatmul.mubr.msk.f32.gmra.mxu0 %vm39_vm1, %v23_v13  ;;  %297 = vrot.lane.b32.xlu0 %v1326_v12, %s1568_s21 }
  0x10   :  { %1400 = vmatprep.mubr.msk.f32.mxu0 %vm39_vm1, %v24_v14  ;;  %1420 = vmatpush3.msra.mxu1 %v1620_v4 }
  0x11   :  { %1429 = vmatpush3.msra.mxu0 %v1609_v2  ;;  %1421 = vmatprep.subr.mxu1 %v1565_v0 }
  0x12   :  { %1430 = vmatprep.subr.mxu0 %v1565_v0  ;;  %1422 = vmatpush3.msra.mxu1 %v1629_v6 }
  0x13   :  { %1401 = vmatmul.mubr.msk.f32.gmra.mxu0 %vm39_vm1, %v25_v15  ;;  %1423 = vmatprep.subr.mxu1 %v1565_v0 }
  0x14   :  { %1403 = vmatprep.mubr.msk.f32.mxu0 %vm39_vm1, %v26_v16  ;;  %1424 = vmatpush3.msra.mxu1 %v1639_v8 }
  0x15   :  { %1431 = vmatpush3.msra.mxu0 %v1620_v4  ;;  %1439 = vmatprep.subr.mxu1 %v1565_v0 }
  0x16   :  { %1432 = vmatprep.subr.mxu0 %v1565_v0 }
  0x17   :  { %1404 = vmatmul.mubr.msk.f32.gmra.mxu0 %vm39_vm1, %v27_v17 }
  0x18   :  { %1433 = vmatpush3.msra.mxu0 %v1629_v6  ;;  %1436 = vmatprep.mubr.msk.f32.mxu0 %vm1566_vm0, %v1565_v0 }
  0x19   :  { %1434 = vmatprep.subr.mxu0 %v1565_v0 }
  0x1a   :  { %1435 = vmatpush3.msra.mxu0 %v1639_v8 }
  0x1b   :  { %1450 = vmatprep.subr.mxu0 %v1565_v0 }
  0x7d   :  { %v1703_v18 = vpop.permute.xlu0 %269 }
  0x81   :  { %v1708_v22 = vpop.permute.xlu0 %297 }
  0xca   :  { %v260_v19 = vpop.f32.mrf.mxu1 }
  0xcb   :  { %v1396_v20 = vpop.f32.mrf.mxu0  ;;  %v272_v24 = vadd.f32 %v1703_v18, %v260_v19  ;;  %v300_v30 = vadd.f32 %v1708_v22, %v260_v19 }
  0xcc   :  { %v136_v23 = vadd.f32 %v1396_v20, %v1317_v21  ;;  %v1416_v25 = vpop.f32.mrf.mxu1 }
  0xcd   :  { %v130_v26 = vpop.f32.mrf.mxu0  ;;  %274 = vrot.lane.b32.xlu1 %v272_v24, %s1569_s27 }
  0xce   :  { %171 = vst.msk [vmem:[#allocation2 + $0x8] sm:$0xff] %vm169_vm2, %v136_v23  ;;  %v131_v27 = vadd.f32 %v1317_v21, %v130_v26 }
  0xcf   :  { %v1399_v28 = vpop.f32.mrf.mxu0 }
  0xd0   :  { %170 = vst.msk [vmem:[#allocation2] sm:$0xff] %vm169_vm2, %v131_v27  ;;  %v146_v29 = vadd.f32 %v1399_v28, %v1317_v21 }
  0xd1   :  { %v140_v31 = vpop.f32.mrf.mxu0  ;;  %302 = vrot.lane.b32.xlu1 %v300_v30, %s1569_s27 }
  0xd2   :  { %173 = vst.msk [vmem:[#allocation2 + $0x18] sm:$0xff] %vm169_vm2, %v146_v29  ;;  %v141_v32 = vadd.f32 %v1317_v21, %v140_v31 }
  0xd3   :  { %v1402_v33 = vpop.f32.mrf.mxu0 }
  0xd4   :  { %172 = vst.msk [vmem:[#allocation2 + $0x10] sm:$0xff] %vm169_vm2, %v141_v32  ;;  %v156_v34 = vadd.f32 %v1402_v33, %v1317_v21 }
  0xd5   :  { %v150_v35 = vpop.f32.mrf.mxu0  ;;  %v1757_v23 = vld [vmem:[#allocation2 + $0x8] sm:$0xff] }
  0xd6   :  { %175 = vst.msk [vmem:[#allocation2 + $0x28] sm:$0xff] %vm169_vm2, %v156_v34  ;;  %v151_v36 = vadd.f32 %v1317_v21, %v150_v35 }
  0xd7   :  { %v1405_v37 = vpop.f32.mrf.mxu0  ;;  %v1722_v41 = vld [vmem:[#allocation2] sm:$0xff] }
  0xd8   :  { %174 = vst.msk [vmem:[#allocation2 + $0x20] sm:$0xff] %vm169_vm2, %v151_v36  ;;  %v166_v38 = vadd.f32 %v1405_v37, %v1317_v21  ;;  %v264_v42 = vadd.f32 %v260_v19, %v1722_v41 }
  0xd9   :  { %v160_v39 = vpop.f32.mrf.mxu0 }
  0xda   :  { %177 = vst.msk [vmem:[#allocation2 + $0x38] sm:$0xff] %vm169_vm2, %v166_v38  ;;  %v161_v40 = vadd.f32 %v1317_v21, %v160_v39  ;;  %v265_v44 = vmul.f32 0.5, %v264_v42 }
  0xdc   :  { %176 = vst.msk [vmem:[#allocation2 + $0x30] sm:$0xff] %vm169_vm2, %v161_v40  ;;  %1501 = vtanh.f32 %v265_v44 }
  0xe1   :  { %v1725_v43 = vld [vmem:[#allocation2 + $0x38] sm:$0xff] }
  0xe2   :  { %v292_v45 = vadd.f32 %v260_v19, %v1725_v43 }
  0xe3   :  { %v1759_v24 = vld [vmem:[#allocation2 + $0x30] sm:$0xff] }
  0xe4   :  { %v293_v46 = vmul.f32 0.5, %v292_v45 }
  0xe6   :  { %1503 = vtanh.f32 %v293_v46 }
  0xe9   :  { %v1502_v47 = vpop.eup %1501 }
  0xea   :  { %v267_v48 = vadd.f32 1.0, %v1502_v47 }
  0xec   :  { %v268_v50 = vmul.f32 0.5, %v267_v48 }
  0xee   :  { %v284_v63 = vsub.f32 1.0, %v268_v50  ;;  %v290_v3 = vmul.f32 0.0, %v268_v50 }
  0xf3   :  { %v1504_v49 = vpop.eup %1503 }
  0xf4   :  { %v295_v51 = vadd.f32 1.0, %v1504_v49 }
  0xf6   :  { %v296_v54 = vmul.f32 0.5, %v295_v51 }
  0xf8   :  { %v312_v9 = vsub.f32 1.0, %v296_v54  ;;  %v318_v11 = vmul.f32 0.0, %v296_v54 }
 0x13f   :  { %v275_v52 = vpop.permute.xlu1 %274 }
 0x140   :  { %v277_v53 = vmul.f32 %v275_v52, %v268_v50 }
 0x142   :  { %279 = vrot.lane.b32.xlu0 %v277_v53, %s1567_s17 }
 0x143   :  { %v303_v55 = vpop.permute.xlu1 %302 }
 0x144   :  { %v305_v56 = vmul.f32 %v303_v55, %v296_v54 }
 0x146   :  { %307 = vrot.lane.b32.xlu1 %v305_v56, %s1567_s17 }
 0x1b4   :  { %v280_v57 = vpop.permute.xlu0 %279 }
 0x1b5   :  { %v282_v58 = vadd.f32 %v280_v57, %v1722_v41 }
 0x1b7   :  { %1505 = vtanh.f32 %v282_v58 }
 0x1b8   :  { %v308_v59 = vpop.permute.xlu1 %307 }
 0x1b9   :  { %v310_v60 = vadd.f32 %v308_v59, %v1725_v43 }
 0x1bb   :  { %1507 = vtanh.f32 %v310_v60 }
 0x1c4   :  { %v1506_v61 = vpop.eup %1505 }
 0x1c5   :  { %286 = vrot.lane.b32.xlu0 %v1506_v61, %s1570_s3 }
 0x1c8   :  { %v1508_v62 = vpop.eup %1507 }
 0x1c9   :  { %314 = vrot.lane.b32.xlu1 %v1508_v62, %s1570_s3 }
 0x237   :  { %v287_v1 = vpop.permute.xlu0 %286 }
 0x238   :  { %v289_v5 = vmul.f32 %v287_v1, %v284_v63  ;;  %v1790_v1 = vld [vmem:[#allocation2 + $0x10] sm:$0xff] }
 0x23a   :  { %v1734_v7 = vadd.f32 %v290_v3, %v289_v5  ;;  %v1792_v3 = vld [vmem:[#allocation2 + $0x28] sm:$0xff] }
 0x23b   :  { %v315_v10 = vpop.permute.xlu1 %314 }
 0x23c   :  { %v317_v12 = vmul.f32 %v315_v10, %v312_v9  ;;  %321 = vrot.lane.b32.xlu0 %v1734_v7, %s1570_s3 }
 0x23e   :  { %v319_v13 = vadd.f32 %v318_v11, %v317_v12 }
 0x240   :  { %327 = vrot.lane.b32.xlu1 %v319_v13, %s1571_s28 }
 0x2ae   :  { %v322_v14 = vpop.permute.xlu0 %321 }
 0x2af   :  { %325 = vst.msk [vmem:[#allocation3] sm:$0xff] %vm324_vm3, %v322_v14 }
 0x2b2   :  { %v328_v15 = vpop.permute.xlu1 %327 }
 0x2b3   :  { %332 = vst.msk [vmem:[#allocation3 + $0x38] sm:$0xff] %vm331_vm4, %v328_v15  ;;  %v337_v16 = vsel %vm324_vm3, %v322_v14, %v328_v15 }
 0x2b4   :  { %1426 = vmatmul.mubr.msk.f32.vlgmr.msra.gmra.mxu1 %vm39_vm1, %v337_v16 }
 0x2b5   :  { %1440 = vmatpush3.msra.mxu1 %v1609_v2  ;;  %1447 = vmatprep.mubr.msk.f32.mxu1 %vm1566_vm0, %v1565_v0 }
 0x2b6   :  { %1441 = vmatprep.subr.mxu1 %v1565_v0 }
 0x2b7   :  { %1442 = vmatpush3.msra.mxu1 %v1620_v4 }
 0x2b8   :  { %1443 = vmatprep.subr.mxu1 %v1565_v0 }
 0x2b9   :  { %1444 = vmatpush3.msra.mxu1 %v1629_v6 }
 0x2ba   :  { %1445 = vmatprep.subr.mxu1 %v1565_v0 }
 0x2bb   :  { %1446 = vmatpush3.msra.mxu1 %v1639_v8 }
 0x2bc   :  { %1461 = vmatprep.subr.mxu1 %v1565_v0 }
 0x374   :  { %v407_v17 = vpop.f32.mrf.mxu1 }
 0x375   :  { %v441_v19 = vadd.f32 %v407_v17, %v1708_v22  ;;  %v416_v20 = vadd.f32 %v407_v17, %v1703_v18  ;;  %v411_v25 = vadd.f32 %v407_v17, %v1757_v23  ;;  %v436_v26 = vadd.f32 %v407_v17, %v1759_v24 }
 0x376   :  { %v1427_v21 = vpop.f32.mrf.mxu1 }
 0x377   :  { %443 = vrot.lane.b32.xlu1 %v441_v19, %s1569_s27  ;;  %418 = vrot.lane.b32.xlu0 %v416_v20, %s1569_s27  ;;  %v412_v27 = vmul.f32 0.5, %v411_v25  ;;  %v437_v28 = vmul.f32 0.5, %v436_v26 }
 0x379   :  { %1509 = vtanh.f32 %v412_v27 }
 0x37a   :  { %1511 = vtanh.f32 %v437_v28 }
 0x386   :  { %v1510_v29 = vpop.eup %1509 }
 0x387   :  { %v1512_v30 = vpop.eup %1511  ;;  %v414_v32 = vadd.f32 1.0, %v1510_v29 }
 0x388   :  { %v439_v31 = vadd.f32 1.0, %v1512_v30 }
 0x389   :  { %v415_v34 = vmul.f32 0.5, %v414_v32 }
 0x38a   :  { %v440_v33 = vmul.f32 0.5, %v439_v31 }
 0x38b   :  { %v428_v49 = vsub.f32 1.0, %v415_v34  ;;  %v434_v53 = vmul.f32 %v415_v34, %v1734_v7 }
 0x38c   :  { %v453_v47 = vsub.f32 1.0, %v440_v33  ;;  %v459_v50 = vmul.f32 %v440_v33, %v319_v13 }
 0x3e9   :  { %v444_v35 = vpop.permute.xlu1 %443  ;;  %v419_v36 = vpop.permute.xlu0 %418 }
 0x3ea   :  { %v446_v37 = vmul.f32 %v444_v35, %v440_v33  ;;  %v421_v38 = vmul.f32 %v419_v36, %v415_v34 }
 0x3ec   :  { %448 = vrot.lane.b32.xlu1 %v446_v37, %s1567_s17  ;;  %423 = vrot.lane.b32.xlu0 %v421_v38, %s1567_s17 }
 0x45e   :  { %v449_v39 = vpop.permute.xlu1 %448  ;;  %v424_v40 = vpop.permute.xlu0 %423 }
 0x45f   :  { %v451_v42 = vadd.f32 %v449_v39, %v1759_v24  ;;  %v426_v44 = vadd.f32 %v424_v40, %v1757_v23 }
 0x461   :  { %1513 = vtanh.f32 %v451_v42 }
 0x462   :  { %1515 = vtanh.f32 %v426_v44 }
 0x46e   :  { %v1514_v45 = vpop.eup %1513 }
 0x46f   :  { %v1516_v46 = vpop.eup %1515  ;;  %455 = vrot.lane.b32.xlu1 %v1514_v45, %s1570_s3 }
 0x470   :  { %430 = vrot.lane.b32.xlu0 %v1516_v46, %s1570_s3 }
 0x4e1   :  { %v456_v48 = vpop.permute.xlu1 %455 }
 0x4e2   :  { %v458_v51 = vmul.f32 %v456_v48, %v453_v47  ;;  %v431_v52 = vpop.permute.xlu0 %430 }
 0x4e3   :  { %v433_v54 = vmul.f32 %v431_v52, %v428_v49 }
 0x4e4   :  { %v460_v55 = vadd.f32 %v459_v50, %v458_v51  ;;  %v1822_v50 = vld [vmem:[#allocation2 + $0x18] sm:$0xff]  ;;  %v1824_v51 = vld [vmem:[#allocation2 + $0x20] sm:$0xff] }
 0x4e5   :  { %v435_v56 = vadd.f32 %v434_v53, %v433_v54 }
 0x4e6   :  { %468 = vrot.lane.b32.xlu1 %v460_v55, %s1571_s28 }
 0x4e7   :  { %462 = vrot.lane.b32.xlu0 %v435_v56, %s1570_s3 }
 0x558   :  { %v469_v57 = vpop.permute.xlu1 %468 }
 0x559   :  { %472 = vst.msk [vmem:[#allocation3 + $0x30] sm:$0xff] %vm331_vm4, %v469_v57  ;;  %v463_v58 = vpop.permute.xlu0 %462 }
 0x55a   :  { %466 = vst.msk [vmem:[#allocation3 + $0x8] sm:$0xff] %vm324_vm3, %v463_v58  ;;  %v477_v59 = vsel %vm324_vm3, %v463_v58, %v469_v57 }
 0x55b   :  { %1437 = vmatmul.mubr.msk.f32.vlgmr.msra.gmra.mxu0 %vm39_vm1, %v477_v59 }
 0x55c   :  { %1451 = vmatpush3.msra.mxu0 %v1609_v2  ;;  %1458 = vmatprep.mubr.msk.f32.mxu0 %vm1566_vm0, %v1565_v0 }
 0x55d   :  { %1452 = vmatprep.subr.mxu0 %v1565_v0 }
 0x55e   :  { %1453 = vmatpush3.msra.mxu0 %v1620_v4 }
 0x55f   :  { %1454 = vmatprep.subr.mxu0 %v1565_v0 }
 0x560   :  { %1455 = vmatpush3.msra.mxu0 %v1629_v6 }
 0x561   :  { %1456 = vmatprep.subr.mxu0 %v1565_v0 }
 0x562   :  { %1457 = vmatpush3.msra.mxu0 %v1639_v8 }
 0x563   :  { %1472 = vmatprep.subr.mxu0 %v1565_v0 }
 0x61b   :  { %v547_v60 = vpop.f32.mrf.mxu0 }
 0x61c   :  { %v581_v61 = vadd.f32 %v547_v60, %v1708_v22  ;;  %v556_v62 = vadd.f32 %v547_v60, %v1703_v18  ;;  %v551_v5 = vadd.f32 %v547_v60, %v1790_v1  ;;  %v576_v7 = vadd.f32 %v547_v60, %v1792_v3 }
 0x61d   :  { %v1438_v63 = vpop.f32.mrf.mxu0 }
 0x61e   :  { %583 = vrot.lane.b32.xlu1 %v581_v61, %s1569_s27  ;;  %558 = vrot.lane.b32.xlu0 %v556_v62, %s1569_s27  ;;  %v552_v9 = vmul.f32 0.5, %v551_v5  ;;  %v577_v10 = vmul.f32 0.5, %v576_v7 }
 0x620   :  { %1517 = vtanh.f32 %v552_v9 }
 0x621   :  { %1519 = vtanh.f32 %v577_v10 }
 0x62d   :  { %v1518_v11 = vpop.eup %1517 }
 0x62e   :  { %v1520_v12 = vpop.eup %1519  ;;  %v554_v14 = vadd.f32 1.0, %v1518_v11 }
 0x62f   :  { %v579_v13 = vadd.f32 1.0, %v1520_v12 }
 0x630   :  { %v555_v16 = vmul.f32 0.5, %v554_v14 }
 0x631   :  { %v580_v15 = vmul.f32 0.5, %v579_v13 }
 0x632   :  { %v568_v33 = vsub.f32 1.0, %v555_v16  ;;  %v574_v37 = vmul.f32 %v555_v16, %v435_v56 }
 0x633   :  { %v593_v31 = vsub.f32 1.0, %v580_v15  ;;  %v599_v34 = vmul.f32 %v580_v15, %v460_v55 }
 0x690   :  { %v584_v17 = vpop.permute.xlu1 %583  ;;  %v559_v19 = vpop.permute.xlu0 %558 }
 0x691   :  { %v586_v20 = vmul.f32 %v584_v17, %v580_v15  ;;  %v561_v21 = vmul.f32 %v559_v19, %v555_v16 }
 0x693   :  { %588 = vrot.lane.b32.xlu1 %v586_v20, %s1567_s17  ;;  %563 = vrot.lane.b32.xlu0 %v561_v21, %s1567_s17 }
 0x705   :  { %v589_v25 = vpop.permute.xlu1 %588  ;;  %v564_v26 = vpop.permute.xlu0 %563 }
 0x706   :  { %v591_v27 = vadd.f32 %v589_v25, %v1792_v3  ;;  %v566_v28 = vadd.f32 %v564_v26, %v1790_v1 }
 0x708   :  { %1521 = vtanh.f32 %v591_v27 }
 0x709   :  { %1523 = vtanh.f32 %v566_v28 }
 0x715   :  { %v1522_v29 = vpop.eup %1521 }
 0x716   :  { %v1524_v30 = vpop.eup %1523  ;;  %595 = vrot.lane.b32.xlu1 %v1522_v29, %s1570_s3 }
 0x717   :  { %570 = vrot.lane.b32.xlu0 %v1524_v30, %s1570_s3 }
 0x788   :  { %v596_v32 = vpop.permute.xlu1 %595 }
 0x789   :  { %v598_v35 = vmul.f32 %v596_v32, %v593_v31  ;;  %v571_v36 = vpop.permute.xlu0 %570 }
 0x78a   :  { %v573_v38 = vmul.f32 %v571_v36, %v568_v33 }
 0x78b   :  { %v600_v39 = vadd.f32 %v599_v34, %v598_v35 }
 0x78c   :  { %v575_v40 = vadd.f32 %v574_v37, %v573_v38 }
 0x78d   :  { %608 = vrot.lane.b32.xlu1 %v600_v39, %s1571_s28 }
 0x78e   :  { %602 = vrot.lane.b32.xlu0 %v575_v40, %s1570_s3 }
 0x7ff   :  { %v609_v42 = vpop.permute.xlu1 %608 }
 0x800   :  { %612 = vst.msk [vmem:[#allocation3 + $0x28] sm:$0xff] %vm331_vm4, %v609_v42  ;;  %v603_v44 = vpop.permute.xlu0 %602 }
 0x801   :  { %606 = vst.msk [vmem:[#allocation3 + $0x10] sm:$0xff] %vm324_vm3, %v603_v44  ;;  %v617_v45 = vsel %vm324_vm3, %v603_v44, %v609_v42 }
 0x802   :  { %1448 = vmatmul.mubr.msk.f32.vlgmr.msra.gmra.mxu1 %vm39_vm1, %v617_v45 }
 0x803   :  { %1462 = vmatpush3.msra.mxu1 %v1609_v2  ;;  %1469 = vmatprep.mubr.msk.f32.mxu1 %vm1566_vm0, %v1565_v0 }
 0x804   :  { %1463 = vmatprep.subr.mxu1 %v1565_v0 }
 0x805   :  { %1464 = vmatpush3.msra.mxu1 %v1620_v4 }
 0x806   :  { %1465 = vmatprep.subr.mxu1 %v1565_v0 }
 0x807   :  { %1466 = vmatpush3.msra.mxu1 %v1629_v6 }
 0x808   :  { %1467 = vmatprep.subr.mxu1 %v1565_v0 }
 0x809   :  { %1468 = vmatpush3.msra.mxu1 %v1639_v8 }
 0x80a   :  { %1483 = vmatprep.subr.mxu1 %v1565_v0 }
 0x8c2   :  { %v687_v46 = vpop.f32.mrf.mxu1 }
 0x8c3   :  { %v721_v47 = vadd.f32 %v687_v46, %v1708_v22  ;;  %v696_v48 = vadd.f32 %v687_v46, %v1703_v18  ;;  %v691_v52 = vadd.f32 %v687_v46, %v1822_v50  ;;  %v716_v53 = vadd.f32 %v687_v46, %v1824_v51 }
 0x8c4   :  { %v1449_v49 = vpop.f32.mrf.mxu1 }
 0x8c5   :  { %723 = vrot.lane.b32.xlu1 %v721_v47, %s1569_s27  ;;  %698 = vrot.lane.b32.xlu0 %v696_v48, %s1569_s27  ;;  %v692_v54 = vmul.f32 0.5, %v691_v52  ;;  %v717_v55 = vmul.f32 0.5, %v716_v53 }
 0x8c7   :  { %1525 = vtanh.f32 %v692_v54 }
 0x8c8   :  { %1527 = vtanh.f32 %v717_v55 }
 0x8d4   :  { %v1526_v56 = vpop.eup %1525 }
 0x8d5   :  { %v1528_v57 = vpop.eup %1527  ;;  %v694_v59 = vadd.f32 1.0, %v1526_v56 }
 0x8d6   :  { %v719_v58 = vadd.f32 1.0, %v1528_v57 }
 0x8d7   :  { %v695_v61 = vmul.f32 0.5, %v694_v59 }
 0x8d8   :  { %v720_v60 = vmul.f32 0.5, %v719_v58 }
 0x8d9   :  { %v708_v17 = vsub.f32 1.0, %v695_v61  ;;  %v714_v25 = vmul.f32 %v695_v61, %v575_v40 }
 0x8da   :  { %v733_v15 = vsub.f32 1.0, %v720_v60  ;;  %v739_v19 = vmul.f32 %v720_v60, %v600_v39 }
 0x937   :  { %v724_v62 = vpop.permute.xlu1 %723  ;;  %v699_v63 = vpop.permute.xlu0 %698 }
 0x938   :  { %v726_v5 = vmul.f32 %v724_v62, %v720_v60  ;;  %v701_v7 = vmul.f32 %v699_v63, %v695_v61 }
 0x93a   :  { %728 = vrot.lane.b32.xlu1 %v726_v5, %s1567_s17  ;;  %703 = vrot.lane.b32.xlu0 %v701_v7, %s1567_s17 }
 0x9ac   :  { %v729_v9 = vpop.permute.xlu1 %728  ;;  %v704_v10 = vpop.permute.xlu0 %703 }
 0x9ad   :  { %v731_v11 = vadd.f32 %v729_v9, %v1824_v51  ;;  %v706_v12 = vadd.f32 %v704_v10, %v1822_v50 }
 0x9af   :  { %1529 = vtanh.f32 %v731_v11 }
 0x9b0   :  { %1531 = vtanh.f32 %v706_v12 }
 0x9bc   :  { %v1530_v13 = vpop.eup %1529 }
 0x9bd   :  { %v1532_v14 = vpop.eup %1531  ;;  %735 = vrot.lane.b32.xlu1 %v1530_v13, %s1570_s3 }
 0x9be   :  { %710 = vrot.lane.b32.xlu0 %v1532_v14, %s1570_s3 }
 0xa2f   :  { %v736_v16 = vpop.permute.xlu1 %735 }
 0xa30   :  { %v738_v20 = vmul.f32 %v736_v16, %v733_v15  ;;  %v711_v21 = vpop.permute.xlu0 %710 }
 0xa31   :  { %v713_v26 = vmul.f32 %v711_v21, %v708_v17 }
 0xa32   :  { %v740_v27 = vadd.f32 %v739_v19, %v738_v20 }
 0xa33   :  { %v715_v28 = vadd.f32 %v714_v25, %v713_v26 }
 0xa34   :  { %748 = vrot.lane.b32.xlu1 %v740_v27, %s1571_s28 }
 0xa35   :  { %742 = vrot.lane.b32.xlu0 %v715_v28, %s1570_s3 }
 0xaa6   :  { %v749_v29 = vpop.permute.xlu1 %748 }
 0xaa7   :  { %752 = vst.msk [vmem:[#allocation3 + $0x20] sm:$0xff] %vm331_vm4, %v749_v29  ;;  %v743_v30 = vpop.permute.xlu0 %742 }
 0xaa8   :  { %746 = vst.msk [vmem:[#allocation3 + $0x18] sm:$0xff] %vm324_vm3, %v743_v30  ;;  %v755_v31 = vsel %vm324_vm3, %v743_v30, %v749_v29 }
 0xaa9   :  { %1459 = vmatmul.mubr.msk.f32.vlgmr.msra.gmra.mxu0 %vm39_vm1, %v755_v31 }
 0xaaa   :  { %1473 = vmatpush3.msra.mxu0 %v1609_v2  ;;  %1480 = vmatprep.mubr.msk.f32.mxu0 %vm1566_vm0, %v1565_v0 }
 0xaab   :  { %1474 = vmatprep.subr.mxu0 %v1565_v0 }
 0xaac   :  { %1475 = vmatpush3.msra.mxu0 %v1620_v4 }
 0xaad   :  { %1476 = vmatprep.subr.mxu0 %v1565_v0 }
 0xaae   :  { %1477 = vmatpush3.msra.mxu0 %v1629_v6 }
 0xaaf   :  { %1478 = vmatprep.subr.mxu0 %v1565_v0 }
 0xab0   :  { %1479 = vmatpush3.msra.mxu0 %v1639_v8 }
 0xb69   :  { %v825_v32 = vpop.f32.mrf.mxu0 }
 0xb6a   :  { %v859_v33 = vadd.f32 %v825_v32, %v1708_v22  ;;  %v834_v34 = vadd.f32 %v825_v32, %v1703_v18  ;;  %v829_v36 = vadd.f32 %v825_v32, %v1824_v51  ;;  %v854_v37 = vadd.f32 %v825_v32, %v1822_v50 }
 0xb6b   :  { %v1460_v35 = vpop.f32.mrf.mxu0 }
 0xb6c   :  { %861 = vrot.lane.b32.xlu1 %v859_v33, %s1569_s27  ;;  %836 = vrot.lane.b32.xlu0 %v834_v34, %s1569_s27  ;;  %v830_v38 = vmul.f32 0.5, %v829_v36  ;;  %v855_v39 = vmul.f32 0.5, %v854_v37 }
 0xb6e   :  { %1533 = vtanh.f32 %v830_v38 }
 0xb6f   :  { %1535 = vtanh.f32 %v855_v39 }
 0xb7b   :  { %v1534_v40 = vpop.eup %1533 }
 0xb7c   :  { %v1536_v42 = vpop.eup %1535  ;;  %v832_v45 = vadd.f32 1.0, %v1534_v40 }
 0xb7d   :  { %v857_v44 = vadd.f32 1.0, %v1536_v42 }
 0xb7e   :  { %v833_v47 = vmul.f32 0.5, %v832_v45 }
 0xb7f   :  { %v858_v46 = vmul.f32 0.5, %v857_v44 }
 0xb80   :  { %v846_v62 = vsub.f32 1.0, %v833_v47  ;;  %v852_v9 = vmul.f32 %v833_v47, %v715_v28 }
 0xb81   :  { %v871_v60 = vsub.f32 1.0, %v858_v46  ;;  %v877_v63 = vmul.f32 %v858_v46, %v740_v27 }
 0xbde   :  { %v862_v48 = vpop.permute.xlu1 %861  ;;  %v837_v49 = vpop.permute.xlu0 %836 }
 0xbdf   :  { %v864_v52 = vmul.f32 %v862_v48, %v858_v46  ;;  %v839_v53 = vmul.f32 %v837_v49, %v833_v47 }
 0xbe1   :  { %866 = vrot.lane.b32.xlu1 %v864_v52, %s1567_s17  ;;  %841 = vrot.lane.b32.xlu0 %v839_v53, %s1567_s17 }
 0xc53   :  { %v867_v54 = vpop.permute.xlu1 %866  ;;  %v842_v55 = vpop.permute.xlu0 %841 }
 0xc54   :  { %v869_v56 = vadd.f32 %v867_v54, %v1822_v50  ;;  %v844_v57 = vadd.f32 %v842_v55, %v1824_v51 }
 0xc56   :  { %1537 = vtanh.f32 %v869_v56 }
 0xc57   :  { %1539 = vtanh.f32 %v844_v57 }
 0xc63   :  { %v1538_v58 = vpop.eup %1537 }
 0xc64   :  { %v1540_v59 = vpop.eup %1539  ;;  %873 = vrot.lane.b32.xlu1 %v1538_v58, %s1570_s3 }
 0xc65   :  { %848 = vrot.lane.b32.xlu0 %v1540_v59, %s1570_s3 }
 0xcd6   :  { %v874_v61 = vpop.permute.xlu1 %873 }
 0xcd7   :  { %v876_v5 = vmul.f32 %v874_v61, %v871_v60  ;;  %v849_v7 = vpop.permute.xlu0 %848 }
 0xcd8   :  { %v851_v10 = vmul.f32 %v849_v7, %v846_v62 }
 0xcd9   :  { %v878_v11 = vadd.f32 %v877_v63, %v876_v5 }
 0xcda   :  { %v853_v50 = vadd.f32 %v852_v9, %v851_v10 }
 0xcdb   :  { %885 = vrot.lane.b32.xlu1 %v878_v11, %s1571_s28 }
 0xcdc   :  { %880 = vrot.lane.b32.xlu0 %v853_v50, %s1570_s3 }
 0xd4d   :  { %v886_v51 = vpop.permute.xlu1 %885 }
 0xd4e   :  { %888 = vst.msk [vmem:[#allocation3 + $0x18] sm:$0xff] %vm331_vm4, %v886_v51  ;;  %v881_v12 = vpop.permute.xlu0 %880 }
 0xd4f   :  { %883 = vst.msk [vmem:[#allocation3 + $0x20] sm:$0xff] %vm324_vm3, %v881_v12  ;;  %v891_v13 = vsel %vm324_vm3, %v881_v12, %v886_v51 }
 0xd50   :  { %1470 = vmatmul.mubr.msk.f32.vlgmr.msra.gmra.mxu1 %vm39_vm1, %v891_v13 }
 0xd51   :  { %1484 = vmatpush3.msra.mxu1 %v1609_v2  ;;  %1491 = vmatprep.mubr.msk.f32.mxu1 %vm1566_vm0, %v1565_v0 }
 0xd52   :  { %1485 = vmatprep.subr.mxu1 %v1565_v0 }
 0xd53   :  { %1486 = vmatpush3.msra.mxu1 %v1620_v4 }
 0xd54   :  { %1487 = vmatprep.subr.mxu1 %v1565_v0 }
 0xd55   :  { %v1300_v14 = vld [vmem:[#allocation3 + $0x18] sm:$0xff]  ;;  %1488 = vmatpush3.msra.mxu1 %v1629_v6 }
 0xd56   :  { %1308 = vst.msk [vmem:[%s1965_s5 + $0x18] sm:$0xff] %vm39_vm1, %v1300_v14  ;;  %v1301_v15 = vld [vmem:[#allocation3 + $0x20] sm:$0xff]  ;;  %1489 = vmatprep.subr.mxu1 %v1565_v0 }
 0xd57   :  { %1309 = vst.msk [vmem:[%s1965_s5 + $0x20] sm:$0xff] %vm39_vm1, %v1301_v15  ;;  %1490 = vmatpush3.msra.mxu1 %v1639_v8 }
 0xe10   :  { %v961_v2 = vpop.f32.mrf.mxu1 }
 0xe11   :  { %v995_v4 = vadd.f32 %v961_v2, %v1708_v22  ;;  %v970_v6 = vadd.f32 %v961_v2, %v1703_v18  ;;  %v965_v17 = vadd.f32 %v961_v2, %v1792_v3  ;;  %v990_v0 = vadd.f32 %v961_v2, %v1790_v1 }
 0xe12   :  { %v1471_v16 = vpop.f32.mrf.mxu1 }
 0xe13   :  { %997 = vrot.lane.b32.xlu1 %v995_v4, %s1569_s27  ;;  %972 = vrot.lane.b32.xlu0 %v970_v6, %s1569_s27  ;;  %v966_v19 = vmul.f32 0.5, %v965_v17  ;;  %v991_v20 = vmul.f32 0.5, %v990_v0 }
 0xe15   :  { %1541 = vtanh.f32 %v966_v19 }
 0xe16   :  { %1543 = vtanh.f32 %v991_v20 }
 0xe22   :  { %v1542_v21 = vpop.eup %1541 }
 0xe23   :  { %v1544_v8 = vpop.eup %1543  ;;  %v968_v26 = vadd.f32 1.0, %v1542_v21 }
 0xe24   :  { %v993_v25 = vadd.f32 1.0, %v1544_v8 }
 0xe25   :  { %v969_v28 = vmul.f32 0.5, %v968_v26 }
 0xe26   :  { %v994_v27 = vmul.f32 0.5, %v993_v25 }
 0xe27   :  { %v982_v42 = vsub.f32 1.0, %v969_v28  ;;  %v988_v47 = vmul.f32 %v969_v28, %v853_v50 }
 0xe28   :  { %v1007_v39 = vsub.f32 1.0, %v994_v27  ;;  %v1013_v44 = vmul.f32 %v994_v27, %v878_v11 }
 0xe85   :  { %v998_v29 = vpop.permute.xlu1 %997  ;;  %v973_v30 = vpop.permute.xlu0 %972 }
 0xe86   :  { %v1000_v31 = vmul.f32 %v998_v29, %v994_v27  ;;  %v975_v32 = vmul.f32 %v973_v30, %v969_v28 }
 0xe88   :  { %1002 = vrot.lane.b32.xlu1 %v1000_v31, %s1567_s17  ;;  %977 = vrot.lane.b32.xlu0 %v975_v32, %s1567_s17 }
 0xefa   :  { %v1003_v33 = vpop.permute.xlu1 %1002  ;;  %v978_v34 = vpop.permute.xlu0 %977 }
 0xefb   :  { %v1005_v35 = vadd.f32 %v1003_v33, %v1790_v1  ;;  %v980_v36 = vadd.f32 %v978_v34, %v1792_v3 }
 0xefd   :  { %1545 = vtanh.f32 %v1005_v35 }
 0xefe   :  { %1547 = vtanh.f32 %v980_v36 }
 0xf0a   :  { %v1546_v37 = vpop.eup %1545 }
 0xf0b   :  { %v1548_v38 = vpop.eup %1547  ;;  %1009 = vrot.lane.b32.xlu1 %v1546_v37, %s1570_s3 }
 0xf0c   :  { %984 = vrot.lane.b32.xlu0 %v1548_v38, %s1570_s3 }
 0xf7d   :  { %v1010_v40 = vpop.permute.xlu1 %1009 }
 0xf7e   :  { %v1012_v45 = vmul.f32 %v1010_v40, %v1007_v39  ;;  %v985_v46 = vpop.permute.xlu0 %984 }
 0xf7f   :  { %v987_v48 = vmul.f32 %v985_v46, %v982_v42 }
 0xf80   :  { %v1014_v49 = vadd.f32 %v1013_v44, %v1012_v45 }
 0xf81   :  { %v989_v1 = vadd.f32 %v988_v47, %v987_v48 }
 0xf82   :  { %1021 = vrot.lane.b32.xlu1 %v1014_v49, %s1571_s28 }
 0xf83   :  { %1016 = vrot.lane.b32.xlu0 %v989_v1, %s1570_s3 }
 0xff4   :  { %v1022_v3 = vpop.permute.xlu1 %1021 }
 0xff5   :  { %1024 = vst.msk [vmem:[#allocation3 + $0x10] sm:$0xff] %vm331_vm4, %v1022_v3  ;;  %v1017_v52 = vpop.permute.xlu0 %1016 }
 0xff6   :  { %1019 = vst.msk [vmem:[#allocation3 + $0x28] sm:$0xff] %vm324_vm3, %v1017_v52  ;;  %v1027_v53 = vsel %vm324_vm3, %v1017_v52, %v1022_v3 }
 0xff7   :  { %1481 = vmatmul.mubr.msk.f32.vlgmr.msra.gmra.mxu0 %vm39_vm1, %v1027_v53 }
 0xffc   :  { %v1299_v54 = vld [vmem:[#allocation3 + $0x10] sm:$0xff] }
 0xffd   :  { %1307 = vst.msk [vmem:[%s1965_s5 + $0x10] sm:$0xff] %vm39_vm1, %v1299_v54  ;;  %v1302_v55 = vld [vmem:[#allocation3 + $0x28] sm:$0xff] }
 0xffe   :  { %1310 = vst.msk [vmem:[%s1965_s5 + $0x28] sm:$0xff] %vm39_vm1, %v1302_v55 }
0x10b7   :  { %v1097_v56 = vpop.f32.mrf.mxu0 }
0x10b8   :  { %v1131_v57 = vadd.f32 %v1097_v56, %v1708_v22  ;;  %v1106_v58 = vadd.f32 %v1097_v56, %v1703_v18  ;;  %v1101_v60 = vadd.f32 %v1097_v56, %v1759_v24  ;;  %v1126_v61 = vadd.f32 %v1097_v56, %v1757_v23 }
0x10b9   :  { %v1482_v59 = vpop.f32.mrf.mxu0 }
0x10ba   :  { %1133 = vrot.lane.b32.xlu1 %v1131_v57, %s1569_s27  ;;  %1108 = vrot.lane.b32.xlu0 %v1106_v58, %s1569_s27  ;;  %v1102_v62 = vmul.f32 0.5, %v1101_v60  ;;  %v1127_v63 = vmul.f32 0.5, %v1126_v61 }
0x10bc   :  { %1549 = vtanh.f32 %v1102_v62 }
0x10bd   :  { %1551 = vtanh.f32 %v1127_v63 }
0x10c9   :  { %v1550_v5 = vpop.eup %1549 }
0x10ca   :  { %v1552_v7 = vpop.eup %1551  ;;  %v1104_v10 = vadd.f32 1.0, %v1550_v5 }
0x10cb   :  { %v1129_v9 = vadd.f32 1.0, %v1552_v7 }
0x10cc   :  { %v1105_v50 = vmul.f32 0.5, %v1104_v10 }
0x10cd   :  { %v1130_v11 = vmul.f32 0.5, %v1129_v9 }
0x10ce   :  { %v1118_v20 = vsub.f32 1.0, %v1105_v50  ;;  %v1124_v26 = vmul.f32 %v1105_v50, %v989_v1 }
0x10cf   :  { %v1143_v0 = vsub.f32 1.0, %v1130_v11  ;;  %v1149_v21 = vmul.f32 %v1130_v11, %v1014_v49 }
0x112c   :  { %v1134_v51 = vpop.permute.xlu1 %1133  ;;  %v1109_v12 = vpop.permute.xlu0 %1108 }
0x112d   :  { %v1136_v13 = vmul.f32 %v1134_v51, %v1130_v11  ;;  %v1111_v14 = vmul.f32 %v1109_v12, %v1105_v50 }
0x112f   :  { %1138 = vrot.lane.b32.xlu1 %v1136_v13, %s1567_s17  ;;  %1113 = vrot.lane.b32.xlu0 %v1111_v14, %s1567_s17 }
0x11a1   :  { %v1139_v15 = vpop.permute.xlu1 %1138  ;;  %v1114_v2 = vpop.permute.xlu0 %1113 }
0x11a2   :  { %v1141_v4 = vadd.f32 %v1139_v15, %v1757_v23  ;;  %v1116_v6 = vadd.f32 %v1114_v2, %v1759_v24 }
0x11a4   :  { %1553 = vtanh.f32 %v1141_v4 }
0x11a5   :  { %1555 = vtanh.f32 %v1116_v6 }
0x11b1   :  { %v1554_v16 = vpop.eup %1553 }
0x11b2   :  { %v1556_v17 = vpop.eup %1555  ;;  %1145 = vrot.lane.b32.xlu1 %v1554_v16, %s1570_s3 }
0x11b3   :  { %1120 = vrot.lane.b32.xlu0 %v1556_v17, %s1570_s3 }
0x1224   :  { %v1146_v19 = vpop.permute.xlu1 %1145 }
0x1225   :  { %v1148_v8 = vmul.f32 %v1146_v19, %v1143_v0  ;;  %v1121_v25 = vpop.permute.xlu0 %1120 }
0x1226   :  { %v1123_v27 = vmul.f32 %v1121_v25, %v1118_v20 }
0x1227   :  { %v1150_v28 = vadd.f32 %v1149_v21, %v1148_v8 }
0x1228   :  { %v1125_v23 = vadd.f32 %v1124_v26, %v1123_v27 }
0x1229   :  { %1157 = vrot.lane.b32.xlu1 %v1150_v28, %s1571_s28 }
0x122a   :  { %1152 = vrot.lane.b32.xlu0 %v1125_v23, %s1570_s3 }
0x129b   :  { %v1158_v24 = vpop.permute.xlu1 %1157 }
0x129c   :  { %1160 = vst.msk [vmem:[#allocation3 + $0x8] sm:$0xff] %vm331_vm4, %v1158_v24  ;;  %v1153_v29 = vpop.permute.xlu0 %1152 }
0x129d   :  { %1155 = vst.msk [vmem:[#allocation3 + $0x30] sm:$0xff] %vm324_vm3, %v1153_v29  ;;  %v1163_v30 = vsel %vm324_vm3, %v1153_v29, %v1158_v24 }
0x129e   :  { %1492 = vmatmul.mubr.msk.f32.vlgmr.msra.gmra.mxu1 %vm39_vm1, %v1163_v30 }
0x12a3   :  { %v1298_v31 = vld [vmem:[#allocation3 + $0x8] sm:$0xff] }
0x12a4   :  { %1306 = vst.msk [vmem:[%s1965_s5 + $0x8] sm:$0xff] %vm39_vm1, %v1298_v31  ;;  %v1303_v32 = vld [vmem:[#allocation3 + $0x30] sm:$0xff] }
0x12a5   :  { %1311 = vst.msk [vmem:[%s1965_s5 + $0x30] sm:$0xff] %vm39_vm1, %v1303_v32 }
0x135e   :  { %v1233_v33 = vpop.f32.mrf.mxu1 }
0x135f   :  { %v1267_v34 = vadd.f32 %v1233_v33, %v1708_v22  ;;  %v1242_v35 = vadd.f32 %v1233_v33, %v1703_v18  ;;  %v1237_v37 = vadd.f32 %v1233_v33, %v1725_v43  ;;  %v1262_v38 = vadd.f32 %v1233_v33, %v1722_v41 }
0x1360   :  { %v1493_v36 = vpop.f32.mrf.mxu1 }
0x1361   :  { %1269 = vrot.lane.b32.xlu1 %v1267_v34, %s1569_s27  ;;  %1244 = vrot.lane.b32.xlu0 %v1242_v35, %s1569_s27  ;;  %v1238_v39 = vmul.f32 0.5, %v1237_v37  ;;  %v1263_v40 = vmul.f32 0.5, %v1262_v38 }
0x1363   :  { %1557 = vtanh.f32 %v1238_v39 }
0x1364   :  { %1559 = vtanh.f32 %v1263_v40 }
0x1370   :  { %v1558_v42 = vpop.eup %1557 }
0x1371   :  { %v1560_v44 = vpop.eup %1559  ;;  %v1240_v46 = vadd.f32 1.0, %v1558_v42 }
0x1372   :  { %v1265_v45 = vadd.f32 1.0, %v1560_v44 }
0x1373   :  { %v1241_v47 = vmul.f32 0.5, %v1240_v46 }
0x1374   :  { %v1266_v22 = vmul.f32 0.5, %v1265_v45 }
0x1375   :  { %v1254_v59 = vsub.f32 1.0, %v1241_v47  ;;  %v1260_v63 = vmul.f32 %v1241_v47, %v1125_v23 }
0x1376   :  { %v1279_v57 = vsub.f32 1.0, %v1266_v22  ;;  %v1285_v60 = vmul.f32 %v1266_v22, %v1150_v28 }
0x13d3   :  { %v1270_v18 = vpop.permute.xlu1 %1269  ;;  %v1245_v48 = vpop.permute.xlu0 %1244 }
0x13d4   :  { %v1272_v49 = vmul.f32 %v1270_v18, %v1266_v22  ;;  %v1247_v1 = vmul.f32 %v1245_v48, %v1241_v47 }
0x13d6   :  { %1274 = vrot.lane.b32.xlu1 %v1272_v49, %s1567_s17  ;;  %1249 = vrot.lane.b32.xlu0 %v1247_v1, %s1567_s17 }
0x1448   :  { %v1275_v3 = vpop.permute.xlu1 %1274  ;;  %v1250_v52 = vpop.permute.xlu0 %1249 }
0x1449   :  { %v1277_v53 = vadd.f32 %v1275_v3, %v1722_v41  ;;  %v1252_v54 = vadd.f32 %v1250_v52, %v1725_v43 }
0x144b   :  { %1561 = vtanh.f32 %v1277_v53 }
0x144c   :  { %1563 = vtanh.f32 %v1252_v54 }
0x1458   :  { %v1562_v55 = vpop.eup %1561 }
0x1459   :  { %v1564_v56 = vpop.eup %1563  ;;  %1281 = vrot.lane.b32.xlu1 %v1562_v55, %s1570_s3 }
0x145a   :  { %1256 = vrot.lane.b32.xlu0 %v1564_v56, %s1570_s3 }
0x14cb   :  { %v1282_v58 = vpop.permute.xlu1 %1281 }
0x14cc   :  { %v1284_v61 = vmul.f32 %v1282_v58, %v1279_v57  ;;  %v1257_v62 = vpop.permute.xlu0 %1256 }
0x14cd   :  { %v1259_v5 = vmul.f32 %v1257_v62, %v1254_v59 }
0x14ce   :  { %v1286_v7 = vadd.f32 %v1285_v60, %v1284_v61 }
0x14cf   :  { %v1261_v41 = vadd.f32 %v1260_v63, %v1259_v5 }
0x14d0   :  { %1293 = vrot.lane.b32.xlu1 %v1286_v7, %s1571_s28 }
0x14d1   :  { %1288 = vrot.lane.b32.xlu0 %v1261_v41, %s1570_s3 }
0x1542   :  { %v1294_v43 = vpop.permute.xlu1 %1293 }
0x1543   :  { %1296 = vst.msk [vmem:[#allocation3] sm:$0xff] %vm331_vm4, %v1294_v43  ;;  %v1289_v9 = vpop.permute.xlu0 %1288 }
0x1544   :  { %1291 = vst.msk [vmem:[#allocation3 + $0x38] sm:$0xff] %vm324_vm3, %v1289_v9 }
0x154a   :  { %v1297_v10 = vld [vmem:[#allocation3] sm:$0xff] }
0x154b   :  { %1305 = vst.msk [vmem:[%s1965_s5] sm:$0xff] %vm39_vm1, %v1297_v10  ;;  %v1304_v11 = vld [vmem:[#allocation3 + $0x38] sm:$0xff] }
0x154c   :  { %1312 = vst.msk [vmem:[%s1965_s5 + $0x38] sm:$0xff] %vm39_vm1, %v1304_v11 }

// kernel: residual_gru_forward.3
= control target key start
LH: loop header
LB: loop body
LE: loop exit
PB: predicated region body
PF: predicated region fallthrough
CT: control target
= control target key end

     0   :  { %v1743_v0 = vmov 0.0   ;;  %vm1744_vm0 = vmmov 0   ;;  %vm48_vm1 = vcmask 261120   ;;  %s1745_s29 = smov 32   ;;  %s1746_s11 = smov 64   ;;  %vm178_vm2 = vcmask 785408   ;;  %s2239_s1 = inlined_call_operand.vmem [shape: f32[32,96], index: 1, kind: input, shape index: {}]   ;;  %s2240_s2 = inlined_call_operand.vmem [shape: f32[32,96], index: 2, kind: input, shape index: {}]   ;;  %s2241_s0 = inlined_call_operand.vmem [shape: f32[64,32], index: 0, kind: input, shape index: {}]   ;;  %s2242_s4 = inlined_call_operand.vmem [shape: f32[1,32], index: 4, kind: input, shape index: {}]   ;;  %s2243_s3 = inlined_call_operand.vmem [shape: f32[1,96], index: 3, kind: input, shape index: {}]   ;;  %s2244_s5 = inlined_call_operand.vmem [shape: f32[64,32], index: 5, kind: input, shape index: {}]   ;;  %s2245_s6 = inlined_call_operand.vmem [shape: f32[1,32], index: 6, kind: input, shape index: {}]   ;;  %s2246_s7 = inlined_call_operand.vmem [shape: f32[1,32], index: 7, kind: input, shape index: {}]   ;;  %s2247_s8 = inlined_call_operand.vmem [shape: f32[64,32], index: 8, kind: output, shape index: {}]  }
   0x1   :  { %1568 = vmatprep.subr.mxu1 %v1743_v0  ;;  %v40_v1 = vld [vmem:[%s2239_s1 + $0x18] sm:$0xff]  ;;  %v39_v3 = vld [vmem:[%s2239_s1 + $0x10] sm:$0xff]  ;;  %1576 = vmatprep.mubr.msk.f32.mxu1 %vm1744_vm0, %v1743_v0  ;;  %v38_v5 = vld [vmem:[%s2239_s1 + $0x8] sm:$0xff]  ;;  %s1747_s17 = smov 96   ;;  %s1749_s18 = smov 80   ;;  %vm333_vm3 = vcmask 130048  }
   0x2   :  { %v1802_v2 = vld [vmem:[%s2240_s2 + $0x18] sm:$0xff]  ;;  %1548 = vmatprep.subr.mxu0 %v40_v1  ;;  %v1813_v4 = vld [vmem:[%s2240_s2 + $0x10] sm:$0xff]  ;;  %v1822_v6 = vld [vmem:[%s2240_s2 + $0x8] sm:$0xff]  ;;  %vm340_vm4 = vcmask 261248  }
   0x3   :  { %1569 = vmatpush3.msra.mxu1 %v1802_v2  ;;  %1549 = vmatpush3.msra.mxu0 %v40_v1  ;;  %v37_v7 = vld [vmem:[%s2239_s1] sm:$0xff]  ;;  %v30_v10 = vld [vmem:[%s2241_s0 + $0x8] sm:$0xff]  ;;  %v31_v11 = vld [vmem:[%s2241_s0 + $0x10] sm:$0xff] }
   0x4   :  { %1570 = vmatprep.subr.mxu1 %v1743_v0  ;;  %1550 = vmatprep.subr.mxu0 %v39_v3  ;;  %v1832_v8 = vld [vmem:[%s2240_s2] sm:$0xff]  ;;  %v32_v13 = vld [vmem:[%s2241_s0 + $0x18] sm:$0xff]  ;;  %v34_v15 = vld [vmem:[%s2241_s0 + $0x28] sm:$0xff] }
   0x5   :  { %1571 = vmatpush3.msra.mxu1 %v1813_v4  ;;  %1551 = vmatpush3.msra.mxu0 %v39_v3  ;;  %v29_v9 = vld [vmem:[%s2241_s0] sm:$0xff]  ;;  %v35_v16 = vld [vmem:[%s2241_s0 + $0x30] sm:$0xff]  ;;  %v36_v17 = vld [vmem:[%s2241_s0 + $0x38] sm:$0xff] }
   0x6   :  { %1572 = vmatprep.subr.mxu1 %v1743_v0  ;;  %1552 = vmatprep.subr.mxu0 %v38_v5  ;;  %v1486_v12 = vld [vmem:[%s2242_s4] ss:$0 sm:$0xff] }
   0x7   :  { %1573 = vmatpush3.msra.mxu1 %v1822_v6  ;;  %1553 = vmatpush3.msra.mxu0 %v38_v5  ;;  %v33_v14 = vld [vmem:[%s2241_s0 + $0x20] sm:$0xff] }
   0x8   :  { %1574 = vmatprep.subr.mxu1 %v1743_v0  ;;  %1554 = vmatprep.subr.mxu0 %v37_v7  ;;  %v1477_v21 = vld [vmem:[%s2243_s3] ss:$0 sm:$0xff]  ;;  %s1748_s3 = smov 112  }
   0x9   :  { %1575 = vmatpush3.msra.mxu1 %v1832_v8  ;;  %1555 = vmatpush3.msra.mxu0 %v37_v7 }
   0xa   :  { %1556 = vmatprep.mubr.msk.f32.mxu0 %vm48_vm1, %v29_v9  ;;  %1577 = vmatmul.mubr.f32.vlgmr.msra.gmra.mxu1 %v1743_v0 }
   0xb   :  { %1557 = vmatmul.mubr.msk.f32.vlgmr.msra.gmra.mxu0 %vm48_vm1, %v30_v10  ;;  %278 = vrot.lane.b32.xlu0 %v1486_v12, %s1745_s29 }
   0xc   :  { %1559 = vmatprep.mubr.msk.f32.mxu0 %vm48_vm1, %v31_v11  ;;  %1579 = vmatprep.subr.mxu1 %v1743_v0 }
   0xd   :  { %1587 = vmatprep.mubr.msk.f32.mxu1 %vm1744_vm0, %v1743_v0  ;;  %1580 = vmatpush3.msra.mxu1 %v1802_v2 }
   0xe   :  { %1590 = vmatprep.subr.mxu0 %v1743_v0  ;;  %1581 = vmatprep.subr.mxu1 %v1743_v0 }
   0xf   :  { %1560 = vmatmul.mubr.msk.f32.gmra.mxu0 %vm48_vm1, %v32_v13  ;;  %306 = vrot.lane.b32.xlu0 %v1486_v12, %s1746_s11 }
  0x10   :  { %1562 = vmatprep.mubr.msk.f32.mxu0 %vm48_vm1, %v33_v14  ;;  %1582 = vmatpush3.msra.mxu1 %v1813_v4 }
  0x11   :  { %1591 = vmatpush3.msra.mxu0 %v1802_v2  ;;  %1583 = vmatprep.subr.mxu1 %v1743_v0 }
  0x12   :  { %1592 = vmatprep.subr.mxu0 %v1743_v0  ;;  %1584 = vmatpush3.msra.mxu1 %v1822_v6 }
  0x13   :  { %1563 = vmatmul.mubr.msk.f32.gmra.mxu0 %vm48_vm1, %v34_v15  ;;  %1585 = vmatprep.subr.mxu1 %v1743_v0 }
  0x14   :  { %1565 = vmatprep.mubr.msk.f32.mxu0 %vm48_vm1, %v35_v16  ;;  %1586 = vmatpush3.msra.mxu1 %v1832_v8 }
  0x15   :  { %1593 = vmatpush3.msra.mxu0 %v1813_v4  ;;  %1601 = vmatprep.subr.mxu1 %v1743_v0 }
  0x16   :  { %1594 = vmatprep.subr.mxu0 %v1743_v0 }
  0x17   :  { %1566 = vmatmul.mubr.msk.f32.gmra.mxu0 %vm48_vm1, %v36_v17 }
  0x18   :  { %1595 = vmatpush3.msra.mxu0 %v1822_v6  ;;  %1598 = vmatprep.mubr.msk.f32.mxu0 %vm1744_vm0, %v1743_v0 }
  0x19   :  { %1596 = vmatprep.subr.mxu0 %v1743_v0 }
  0x1a   :  { %1597 = vmatpush3.msra.mxu0 %v1832_v8 }
  0x1b   :  { %1612 = vmatprep.subr.mxu0 %v1743_v0 }
  0x7d   :  { %v1896_v18 = vpop.permute.xlu0 %278 }
  0x81   :  { %v1901_v22 = vpop.permute.xlu0 %306 }
  0xca   :  { %v269_v19 = vpop.f32.mrf.mxu1 }
  0xcb   :  { %v1558_v20 = vpop.f32.mrf.mxu0  ;;  %v281_v24 = vadd.f32 %v1896_v18, %v269_v19  ;;  %v309_v30 = vadd.f32 %v1901_v22, %v269_v19 }
  0xcc   :  { %v145_v23 = vadd.f32 %v1558_v20, %v1477_v21  ;;  %v1578_v25 = vpop.f32.mrf.mxu1 }
  0xcd   :  { %v139_v26 = vpop.f32.mrf.mxu0  ;;  %283 = vrot.lane.b32.xlu1 %v281_v24, %s1747_s17 }
  0xce   :  { %180 = vst.msk [vmem:[#allocation2 + $0x8] sm:$0xff] %vm178_vm2, %v145_v23  ;;  %v140_v27 = vadd.f32 %v1477_v21, %v139_v26 }
  0xcf   :  { %v1561_v28 = vpop.f32.mrf.mxu0 }
  0xd0   :  { %179 = vst.msk [vmem:[#allocation2] sm:$0xff] %vm178_vm2, %v140_v27  ;;  %v155_v29 = vadd.f32 %v1561_v28, %v1477_v21 }
  0xd1   :  { %v149_v31 = vpop.f32.mrf.mxu0  ;;  %311 = vrot.lane.b32.xlu1 %v309_v30, %s1747_s17 }
  0xd2   :  { %182 = vst.msk [vmem:[#allocation2 + $0x18] sm:$0xff] %vm178_vm2, %v155_v29  ;;  %v150_v32 = vadd.f32 %v1477_v21, %v149_v31 }
  0xd3   :  { %v1564_v33 = vpop.f32.mrf.mxu0 }
  0xd4   :  { %181 = vst.msk [vmem:[#allocation2 + $0x10] sm:$0xff] %vm178_vm2, %v150_v32  ;;  %v165_v34 = vadd.f32 %v1564_v33, %v1477_v21 }
  0xd5   :  { %v159_v35 = vpop.f32.mrf.mxu0  ;;  %v1950_v23 = vld [vmem:[#allocation2 + $0x8] sm:$0xff] }
  0xd6   :  { %184 = vst.msk [vmem:[#allocation2 + $0x28] sm:$0xff] %vm178_vm2, %v165_v34  ;;  %v160_v36 = vadd.f32 %v1477_v21, %v159_v35 }
  0xd7   :  { %v1567_v37 = vpop.f32.mrf.mxu0  ;;  %v1915_v41 = vld [vmem:[#allocation2] sm:$0xff] }
  0xd8   :  { %183 = vst.msk [vmem:[#allocation2 + $0x20] sm:$0xff] %vm178_vm2, %v160_v36  ;;  %v175_v38 = vadd.f32 %v1567_v37, %v1477_v21  ;;  %v273_v42 = vadd.f32 %v269_v19, %v1915_v41 }
  0xd9   :  { %v169_v39 = vpop.f32.mrf.mxu0 }
  0xda   :  { %186 = vst.msk [vmem:[#allocation2 + $0x38] sm:$0xff] %vm178_vm2, %v175_v38  ;;  %v170_v40 = vadd.f32 %v1477_v21, %v169_v39  ;;  %v274_v44 = vmul.f32 0.5, %v273_v42 }
  0xdc   :  { %185 = vst.msk [vmem:[#allocation2 + $0x30] sm:$0xff] %vm178_vm2, %v170_v40  ;;  %1663 = vtanh.f32 %v274_v44 }
  0xe1   :  { %v1918_v43 = vld [vmem:[#allocation2 + $0x38] sm:$0xff] }
  0xe2   :  { %v301_v45 = vadd.f32 %v269_v19, %v1918_v43 }
  0xe3   :  { %v1952_v24 = vld [vmem:[#allocation2 + $0x30] sm:$0xff] }
  0xe4   :  { %v302_v46 = vmul.f32 0.5, %v301_v45 }
  0xe6   :  { %1665 = vtanh.f32 %v302_v46 }
  0xe9   :  { %v1664_v47 = vpop.eup %1663 }
  0xea   :  { %v276_v48 = vadd.f32 1.0, %v1664_v47 }
  0xec   :  { %v277_v50 = vmul.f32 0.5, %v276_v48 }
  0xee   :  { %v293_v63 = vsub.f32 1.0, %v277_v50  ;;  %v299_v3 = vmul.f32 0.0, %v277_v50 }
  0xf3   :  { %v1666_v49 = vpop.eup %1665 }
  0xf4   :  { %v304_v51 = vadd.f32 1.0, %v1666_v49 }
  0xf6   :  { %v305_v54 = vmul.f32 0.5, %v304_v51 }
  0xf8   :  { %v321_v9 = vsub.f32 1.0, %v305_v54  ;;  %v327_v11 = vmul.f32 0.0, %v305_v54 }
 0x13f   :  { %v284_v52 = vpop.permute.xlu1 %283 }
 0x140   :  { %v286_v53 = vmul.f32 %v284_v52, %v277_v50 }
 0x142   :  { %288 = vrot.lane.b32.xlu0 %v286_v53, %s1745_s29 }
 0x143   :  { %v312_v55 = vpop.permute.xlu1 %311 }
 0x144   :  { %v314_v56 = vmul.f32 %v312_v55, %v305_v54 }
 0x146   :  { %316 = vrot.lane.b32.xlu1 %v314_v56, %s1745_s29 }
 0x1b4   :  { %v289_v57 = vpop.permute.xlu0 %288 }
 0x1b5   :  { %v291_v58 = vadd.f32 %v289_v57, %v1915_v41 }
 0x1b7   :  { %1667 = vtanh.f32 %v291_v58 }
 0x1b8   :  { %v317_v59 = vpop.permute.xlu1 %316 }
 0x1b9   :  { %v319_v60 = vadd.f32 %v317_v59, %v1918_v43 }
 0x1bb   :  { %1669 = vtanh.f32 %v319_v60 }
 0x1c4   :  { %v1668_v61 = vpop.eup %1667 }
 0x1c5   :  { %295 = vrot.lane.b32.xlu0 %v1668_v61, %s1748_s3 }
 0x1c8   :  { %v1670_v62 = vpop.eup %1669 }
 0x1c9   :  { %323 = vrot.lane.b32.xlu1 %v1670_v62, %s1748_s3 }
 0x237   :  { %v296_v1 = vpop.permute.xlu0 %295 }
 0x238   :  { %v298_v5 = vmul.f32 %v296_v1, %v293_v63  ;;  %v1983_v1 = vld [vmem:[#allocation2 + $0x10] sm:$0xff] }
 0x23a   :  { %v1927_v7 = vadd.f32 %v299_v3, %v298_v5  ;;  %v1985_v3 = vld [vmem:[#allocation2 + $0x28] sm:$0xff] }
 0x23b   :  { %v324_v10 = vpop.permute.xlu1 %323 }
 0x23c   :  { %v326_v12 = vmul.f32 %v324_v10, %v321_v9  ;;  %330 = vrot.lane.b32.xlu0 %v1927_v7, %s1748_s3 }
 0x23e   :  { %v328_v13 = vadd.f32 %v327_v11, %v326_v12 }
 0x240   :  { %336 = vrot.lane.b32.xlu1 %v328_v13, %s1749_s18 }
 0x2ae   :  { %v331_v14 = vpop.permute.xlu0 %330 }
 0x2af   :  { %334 = vst.msk [vmem:[#allocation3] sm:$0xff] %vm333_vm3, %v331_v14 }
 0x2b2   :  { %v337_v15 = vpop.permute.xlu1 %336 }
 0x2b3   :  { %341 = vst.msk [vmem:[#allocation3 + $0x38] sm:$0xff] %vm340_vm4, %v337_v15  ;;  %v346_v16 = vsel %vm333_vm3, %v331_v14, %v337_v15 }
 0x2b4   :  { %1588 = vmatmul.mubr.msk.f32.vlgmr.msra.gmra.mxu1 %vm48_vm1, %v346_v16 }
 0x2b5   :  { %1602 = vmatpush3.msra.mxu1 %v1802_v2  ;;  %1609 = vmatprep.mubr.msk.f32.mxu1 %vm1744_vm0, %v1743_v0 }
 0x2b6   :  { %1603 = vmatprep.subr.mxu1 %v1743_v0 }
 0x2b7   :  { %1604 = vmatpush3.msra.mxu1 %v1813_v4 }
 0x2b8   :  { %1605 = vmatprep.subr.mxu1 %v1743_v0 }
 0x2b9   :  { %1606 = vmatpush3.msra.mxu1 %v1822_v6 }
 0x2ba   :  { %1607 = vmatprep.subr.mxu1 %v1743_v0 }
 0x2bb   :  { %1608 = vmatpush3.msra.mxu1 %v1832_v8 }
 0x2bc   :  { %1623 = vmatprep.subr.mxu1 %v1743_v0 }
 0x374   :  { %v416_v17 = vpop.f32.mrf.mxu1 }
 0x375   :  { %v450_v19 = vadd.f32 %v416_v17, %v1901_v22  ;;  %v425_v20 = vadd.f32 %v416_v17, %v1896_v18  ;;  %v420_v25 = vadd.f32 %v416_v17, %v1950_v23  ;;  %v445_v26 = vadd.f32 %v416_v17, %v1952_v24 }
 0x376   :  { %v1589_v21 = vpop.f32.mrf.mxu1 }
 0x377   :  { %452 = vrot.lane.b32.xlu1 %v450_v19, %s1747_s17  ;;  %427 = vrot.lane.b32.xlu0 %v425_v20, %s1747_s17  ;;  %v421_v27 = vmul.f32 0.5, %v420_v25  ;;  %v446_v28 = vmul.f32 0.5, %v445_v26 }
 0x379   :  { %1671 = vtanh.f32 %v421_v27 }
 0x37a   :  { %1673 = vtanh.f32 %v446_v28 }
 0x386   :  { %v1672_v29 = vpop.eup %1671 }
 0x387   :  { %v1674_v30 = vpop.eup %1673  ;;  %v423_v32 = vadd.f32 1.0, %v1672_v29 }
 0x388   :  { %v448_v31 = vadd.f32 1.0, %v1674_v30 }
 0x389   :  { %v424_v34 = vmul.f32 0.5, %v423_v32 }
 0x38a   :  { %v449_v33 = vmul.f32 0.5, %v448_v31 }
 0x38b   :  { %v437_v49 = vsub.f32 1.0, %v424_v34  ;;  %v443_v53 = vmul.f32 %v424_v34, %v1927_v7 }
 0x38c   :  { %v462_v47 = vsub.f32 1.0, %v449_v33  ;;  %v468_v50 = vmul.f32 %v449_v33, %v328_v13 }
 0x3e9   :  { %v453_v35 = vpop.permute.xlu1 %452  ;;  %v428_v36 = vpop.permute.xlu0 %427 }
 0x3ea   :  { %v455_v37 = vmul.f32 %v453_v35, %v449_v33  ;;  %v430_v38 = vmul.f32 %v428_v36, %v424_v34 }
 0x3ec   :  { %457 = vrot.lane.b32.xlu1 %v455_v37, %s1745_s29  ;;  %432 = vrot.lane.b32.xlu0 %v430_v38, %s1745_s29 }
 0x45e   :  { %v458_v39 = vpop.permute.xlu1 %457  ;;  %v433_v40 = vpop.permute.xlu0 %432 }
 0x45f   :  { %v460_v42 = vadd.f32 %v458_v39, %v1952_v24  ;;  %v435_v44 = vadd.f32 %v433_v40, %v1950_v23 }
 0x461   :  { %1675 = vtanh.f32 %v460_v42 }
 0x462   :  { %1677 = vtanh.f32 %v435_v44 }
 0x46e   :  { %v1676_v45 = vpop.eup %1675 }
 0x46f   :  { %v1678_v46 = vpop.eup %1677  ;;  %464 = vrot.lane.b32.xlu1 %v1676_v45, %s1748_s3 }
 0x470   :  { %439 = vrot.lane.b32.xlu0 %v1678_v46, %s1748_s3 }
 0x4e1   :  { %v465_v48 = vpop.permute.xlu1 %464 }
 0x4e2   :  { %v467_v51 = vmul.f32 %v465_v48, %v462_v47  ;;  %v440_v52 = vpop.permute.xlu0 %439 }
 0x4e3   :  { %v442_v54 = vmul.f32 %v440_v52, %v437_v49 }
 0x4e4   :  { %v469_v55 = vadd.f32 %v468_v50, %v467_v51  ;;  %v2015_v50 = vld [vmem:[#allocation2 + $0x18] sm:$0xff]  ;;  %v2017_v51 = vld [vmem:[#allocation2 + $0x20] sm:$0xff] }
 0x4e5   :  { %v444_v56 = vadd.f32 %v443_v53, %v442_v54 }
 0x4e6   :  { %477 = vrot.lane.b32.xlu1 %v469_v55, %s1749_s18 }
 0x4e7   :  { %471 = vrot.lane.b32.xlu0 %v444_v56, %s1748_s3 }
 0x558   :  { %v478_v57 = vpop.permute.xlu1 %477 }
 0x559   :  { %481 = vst.msk [vmem:[#allocation3 + $0x30] sm:$0xff] %vm340_vm4, %v478_v57  ;;  %v472_v58 = vpop.permute.xlu0 %471 }
 0x55a   :  { %475 = vst.msk [vmem:[#allocation3 + $0x8] sm:$0xff] %vm333_vm3, %v472_v58  ;;  %v486_v59 = vsel %vm333_vm3, %v472_v58, %v478_v57 }
 0x55b   :  { %1599 = vmatmul.mubr.msk.f32.vlgmr.msra.gmra.mxu0 %vm48_vm1, %v486_v59 }
 0x55c   :  { %1613 = vmatpush3.msra.mxu0 %v1802_v2  ;;  %1620 = vmatprep.mubr.msk.f32.mxu0 %vm1744_vm0, %v1743_v0 }
 0x55d   :  { %1614 = vmatprep.subr.mxu0 %v1743_v0 }
 0x55e   :  { %1615 = vmatpush3.msra.mxu0 %v1813_v4 }
 0x55f   :  { %1616 = vmatprep.subr.mxu0 %v1743_v0 }
 0x560   :  { %1617 = vmatpush3.msra.mxu0 %v1822_v6 }
 0x561   :  { %1618 = vmatprep.subr.mxu0 %v1743_v0 }
 0x562   :  { %1619 = vmatpush3.msra.mxu0 %v1832_v8 }
 0x563   :  { %1634 = vmatprep.subr.mxu0 %v1743_v0 }
 0x61b   :  { %v556_v60 = vpop.f32.mrf.mxu0 }
 0x61c   :  { %v590_v61 = vadd.f32 %v556_v60, %v1901_v22  ;;  %v565_v62 = vadd.f32 %v556_v60, %v1896_v18  ;;  %v560_v5 = vadd.f32 %v556_v60, %v1983_v1  ;;  %v585_v7 = vadd.f32 %v556_v60, %v1985_v3 }
 0x61d   :  { %v1600_v63 = vpop.f32.mrf.mxu0 }
 0x61e   :  { %592 = vrot.lane.b32.xlu1 %v590_v61, %s1747_s17  ;;  %567 = vrot.lane.b32.xlu0 %v565_v62, %s1747_s17  ;;  %v561_v9 = vmul.f32 0.5, %v560_v5  ;;  %v586_v10 = vmul.f32 0.5, %v585_v7 }
 0x620   :  { %1679 = vtanh.f32 %v561_v9 }
 0x621   :  { %1681 = vtanh.f32 %v586_v10 }
 0x62d   :  { %v1680_v11 = vpop.eup %1679 }
 0x62e   :  { %v1682_v12 = vpop.eup %1681  ;;  %v563_v14 = vadd.f32 1.0, %v1680_v11 }
 0x62f   :  { %v588_v13 = vadd.f32 1.0, %v1682_v12 }
 0x630   :  { %v564_v16 = vmul.f32 0.5, %v563_v14 }
 0x631   :  { %v589_v15 = vmul.f32 0.5, %v588_v13 }
 0x632   :  { %v577_v33 = vsub.f32 1.0, %v564_v16  ;;  %v583_v37 = vmul.f32 %v564_v16, %v444_v56 }
 0x633   :  { %v602_v31 = vsub.f32 1.0, %v589_v15  ;;  %v608_v34 = vmul.f32 %v589_v15, %v469_v55 }
 0x690   :  { %v593_v17 = vpop.permute.xlu1 %592  ;;  %v568_v19 = vpop.permute.xlu0 %567 }
 0x691   :  { %v595_v20 = vmul.f32 %v593_v17, %v589_v15  ;;  %v570_v21 = vmul.f32 %v568_v19, %v564_v16 }
 0x693   :  { %597 = vrot.lane.b32.xlu1 %v595_v20, %s1745_s29  ;;  %572 = vrot.lane.b32.xlu0 %v570_v21, %s1745_s29 }
 0x705   :  { %v598_v25 = vpop.permute.xlu1 %597  ;;  %v573_v26 = vpop.permute.xlu0 %572 }
 0x706   :  { %v600_v27 = vadd.f32 %v598_v25, %v1985_v3  ;;  %v575_v28 = vadd.f32 %v573_v26, %v1983_v1 }
 0x708   :  { %1683 = vtanh.f32 %v600_v27 }
 0x709   :  { %1685 = vtanh.f32 %v575_v28 }
 0x715   :  { %v1684_v29 = vpop.eup %1683 }
 0x716   :  { %v1686_v30 = vpop.eup %1685  ;;  %604 = vrot.lane.b32.xlu1 %v1684_v29, %s1748_s3 }
 0x717   :  { %579 = vrot.lane.b32.xlu0 %v1686_v30, %s1748_s3 }
 0x788   :  { %v605_v32 = vpop.permute.xlu1 %604 }
 0x789   :  { %v607_v35 = vmul.f32 %v605_v32, %v602_v31  ;;  %v580_v36 = vpop.permute.xlu0 %579 }
 0x78a   :  { %v582_v38 = vmul.f32 %v580_v36, %v577_v33 }
 0x78b   :  { %v609_v39 = vadd.f32 %v608_v34, %v607_v35 }
 0x78c   :  { %v584_v40 = vadd.f32 %v583_v37, %v582_v38 }
 0x78d   :  { %617 = vrot.lane.b32.xlu1 %v609_v39, %s1749_s18 }
 0x78e   :  { %611 = vrot.lane.b32.xlu0 %v584_v40, %s1748_s3 }
 0x7ff   :  { %v618_v42 = vpop.permute.xlu1 %617 }
 0x800   :  { %621 = vst.msk [vmem:[#allocation3 + $0x28] sm:$0xff] %vm340_vm4, %v618_v42  ;;  %v612_v44 = vpop.permute.xlu0 %611 }
 0x801   :  { %615 = vst.msk [vmem:[#allocation3 + $0x10] sm:$0xff] %vm333_vm3, %v612_v44  ;;  %v626_v45 = vsel %vm333_vm3, %v612_v44, %v618_v42 }
 0x802   :  { %1610 = vmatmul.mubr.msk.f32.vlgmr.msra.gmra.mxu1 %vm48_vm1, %v626_v45 }
 0x803   :  { %1624 = vmatpush3.msra.mxu1 %v1802_v2  ;;  %1631 = vmatprep.mubr.msk.f32.mxu1 %vm1744_vm0, %v1743_v0 }
 0x804   :  { %1625 = vmatprep.subr.mxu1 %v1743_v0 }
 0x805   :  { %1626 = vmatpush3.msra.mxu1 %v1813_v4 }
 0x806   :  { %1627 = vmatprep.subr.mxu1 %v1743_v0 }
 0x807   :  { %1628 = vmatpush3.msra.mxu1 %v1822_v6 }
 0x808   :  { %1629 = vmatprep.subr.mxu1 %v1743_v0 }
 0x809   :  { %1630 = vmatpush3.msra.mxu1 %v1832_v8 }
 0x80a   :  { %1645 = vmatprep.subr.mxu1 %v1743_v0 }
 0x8c2   :  { %v696_v46 = vpop.f32.mrf.mxu1 }
 0x8c3   :  { %v730_v47 = vadd.f32 %v696_v46, %v1901_v22  ;;  %v705_v48 = vadd.f32 %v696_v46, %v1896_v18  ;;  %v700_v52 = vadd.f32 %v696_v46, %v2015_v50  ;;  %v725_v53 = vadd.f32 %v696_v46, %v2017_v51 }
 0x8c4   :  { %v1611_v49 = vpop.f32.mrf.mxu1 }
 0x8c5   :  { %732 = vrot.lane.b32.xlu1 %v730_v47, %s1747_s17  ;;  %707 = vrot.lane.b32.xlu0 %v705_v48, %s1747_s17  ;;  %v701_v54 = vmul.f32 0.5, %v700_v52  ;;  %v726_v55 = vmul.f32 0.5, %v725_v53 }
 0x8c7   :  { %1687 = vtanh.f32 %v701_v54 }
 0x8c8   :  { %1689 = vtanh.f32 %v726_v55 }
 0x8d4   :  { %v1688_v56 = vpop.eup %1687 }
 0x8d5   :  { %v1690_v57 = vpop.eup %1689  ;;  %v703_v59 = vadd.f32 1.0, %v1688_v56 }
 0x8d6   :  { %v728_v58 = vadd.f32 1.0, %v1690_v57 }
 0x8d7   :  { %v704_v61 = vmul.f32 0.5, %v703_v59 }
 0x8d8   :  { %v729_v60 = vmul.f32 0.5, %v728_v58 }
 0x8d9   :  { %v717_v17 = vsub.f32 1.0, %v704_v61  ;;  %v723_v25 = vmul.f32 %v704_v61, %v584_v40 }
 0x8da   :  { %v742_v15 = vsub.f32 1.0, %v729_v60  ;;  %v748_v19 = vmul.f32 %v729_v60, %v609_v39 }
 0x937   :  { %v733_v62 = vpop.permute.xlu1 %732  ;;  %v708_v63 = vpop.permute.xlu0 %707 }
 0x938   :  { %v735_v5 = vmul.f32 %v733_v62, %v729_v60  ;;  %v710_v7 = vmul.f32 %v708_v63, %v704_v61 }
 0x93a   :  { %737 = vrot.lane.b32.xlu1 %v735_v5, %s1745_s29  ;;  %712 = vrot.lane.b32.xlu0 %v710_v7, %s1745_s29 }
 0x9ac   :  { %v738_v9 = vpop.permute.xlu1 %737  ;;  %v713_v10 = vpop.permute.xlu0 %712 }
 0x9ad   :  { %v740_v11 = vadd.f32 %v738_v9, %v2017_v51  ;;  %v715_v12 = vadd.f32 %v713_v10, %v2015_v50 }
 0x9af   :  { %1691 = vtanh.f32 %v740_v11 }
 0x9b0   :  { %1693 = vtanh.f32 %v715_v12 }
 0x9bc   :  { %v1692_v13 = vpop.eup %1691 }
 0x9bd   :  { %v1694_v14 = vpop.eup %1693  ;;  %744 = vrot.lane.b32.xlu1 %v1692_v13, %s1748_s3 }
 0x9be   :  { %719 = vrot.lane.b32.xlu0 %v1694_v14, %s1748_s3 }
 0xa2f   :  { %v745_v16 = vpop.permute.xlu1 %744 }
 0xa30   :  { %v747_v20 = vmul.f32 %v745_v16, %v742_v15  ;;  %v720_v21 = vpop.permute.xlu0 %719 }
 0xa31   :  { %v722_v26 = vmul.f32 %v720_v21, %v717_v17 }
 0xa32   :  { %v749_v27 = vadd.f32 %v748_v19, %v747_v20 }
 0xa33   :  { %v724_v28 = vadd.f32 %v723_v25, %v722_v26 }
 0xa34   :  { %757 = vrot.lane.b32.xlu1 %v749_v27, %s1749_s18 }
 0xa35   :  { %751 = vrot.lane.b32.xlu0 %v724_v28, %s1748_s3 }
 0xaa6   :  { %v758_v29 = vpop.permute.xlu1 %757 }
 0xaa7   :  { %761 = vst.msk [vmem:[#allocation3 + $0x20] sm:$0xff] %vm340_vm4, %v758_v29  ;;  %v752_v30 = vpop.permute.xlu0 %751 }
 0xaa8   :  { %755 = vst.msk [vmem:[#allocation3 + $0x18] sm:$0xff] %vm333_vm3, %v752_v30  ;;  %v764_v31 = vsel %vm333_vm3, %v752_v30, %v758_v29 }
 0xaa9   :  { %1621 = vmatmul.mubr.msk.f32.vlgmr.msra.gmra.mxu0 %vm48_vm1, %v764_v31 }
 0xaaa   :  { %1635 = vmatpush3.msra.mxu0 %v1802_v2  ;;  %1642 = vmatprep.mubr.msk.f32.mxu0 %vm1744_vm0, %v1743_v0 }
 0xaab   :  { %1636 = vmatprep.subr.mxu0 %v1743_v0 }
 0xaac   :  { %1637 = vmatpush3.msra.mxu0 %v1813_v4 }
 0xaad   :  { %1638 = vmatprep.subr.mxu0 %v1743_v0 }
 0xaae   :  { %1639 = vmatpush3.msra.mxu0 %v1822_v6 }
 0xaaf   :  { %1640 = vmatprep.subr.mxu0 %v1743_v0 }
 0xab0   :  { %1641 = vmatpush3.msra.mxu0 %v1832_v8 }
 0xb69   :  { %v834_v32 = vpop.f32.mrf.mxu0 }
 0xb6a   :  { %v868_v33 = vadd.f32 %v834_v32, %v1901_v22  ;;  %v843_v34 = vadd.f32 %v834_v32, %v1896_v18  ;;  %v838_v36 = vadd.f32 %v834_v32, %v2017_v51  ;;  %v863_v37 = vadd.f32 %v834_v32, %v2015_v50 }
 0xb6b   :  { %v1622_v35 = vpop.f32.mrf.mxu0 }
 0xb6c   :  { %870 = vrot.lane.b32.xlu1 %v868_v33, %s1747_s17  ;;  %845 = vrot.lane.b32.xlu0 %v843_v34, %s1747_s17  ;;  %v839_v38 = vmul.f32 0.5, %v838_v36  ;;  %v864_v39 = vmul.f32 0.5, %v863_v37 }
 0xb6e   :  { %1695 = vtanh.f32 %v839_v38 }
 0xb6f   :  { %1697 = vtanh.f32 %v864_v39 }
 0xb7b   :  { %v1696_v40 = vpop.eup %1695 }
 0xb7c   :  { %v1698_v42 = vpop.eup %1697  ;;  %v841_v45 = vadd.f32 1.0, %v1696_v40 }
 0xb7d   :  { %v866_v44 = vadd.f32 1.0, %v1698_v42 }
 0xb7e   :  { %v842_v47 = vmul.f32 0.5, %v841_v45 }
 0xb7f   :  { %v867_v46 = vmul.f32 0.5, %v866_v44 }
 0xb80   :  { %v855_v62 = vsub.f32 1.0, %v842_v47  ;;  %v861_v9 = vmul.f32 %v842_v47, %v724_v28 }
 0xb81   :  { %v880_v60 = vsub.f32 1.0, %v867_v46  ;;  %v886_v63 = vmul.f32 %v867_v46, %v749_v27 }
 0xbde   :  { %v871_v48 = vpop.permute.xlu1 %870  ;;  %v846_v49 = vpop.permute.xlu0 %845 }
 0xbdf   :  { %v873_v52 = vmul.f32 %v871_v48, %v867_v46  ;;  %v848_v53 = vmul.f32 %v846_v49, %v842_v47 }
 0xbe1   :  { %875 = vrot.lane.b32.xlu1 %v873_v52, %s1745_s29  ;;  %850 = vrot.lane.b32.xlu0 %v848_v53, %s1745_s29 }
 0xc53   :  { %v876_v54 = vpop.permute.xlu1 %875  ;;  %v851_v55 = vpop.permute.xlu0 %850 }
 0xc54   :  { %v878_v56 = vadd.f32 %v876_v54, %v2015_v50  ;;  %v853_v57 = vadd.f32 %v851_v55, %v2017_v51 }
 0xc56   :  { %1699 = vtanh.f32 %v878_v56 }
 0xc57   :  { %1701 = vtanh.f32 %v853_v57 }
 0xc63   :  { %v1700_v58 = vpop.eup %1699 }
 0xc64   :  { %v1702_v59 = vpop.eup %1701  ;;  %882 = vrot.lane.b32.xlu1 %v1700_v58, %s1748_s3 }
 0xc65   :  { %857 = vrot.lane.b32.xlu0 %v1702_v59, %s1748_s3 }
 0xcd6   :  { %v883_v61 = vpop.permute.xlu1 %882 }
 0xcd7   :  { %v885_v5 = vmul.f32 %v883_v61, %v880_v60  ;;  %v858_v7 = vpop.permute.xlu0 %857 }
 0xcd8   :  { %v860_v10 = vmul.f32 %v858_v7, %v855_v62 }
 0xcd9   :  { %v887_v11 = vadd.f32 %v886_v63, %v885_v5 }
 0xcda   :  { %v862_v50 = vadd.f32 %v861_v9, %v860_v10 }
 0xcdb   :  { %894 = vrot.lane.b32.xlu1 %v887_v11, %s1749_s18 }
 0xcdc   :  { %889 = vrot.lane.b32.xlu0 %v862_v50, %s1748_s3 }
 0xd4d   :  { %v895_v51 = vpop.permute.xlu1 %894 }
 0xd4e   :  { %897 = vst.msk [vmem:[#allocation3 + $0x18] sm:$0xff] %vm340_vm4, %v895_v51  ;;  %v890_v12 = vpop.permute.xlu0 %889 }
 0xd4f   :  { %892 = vst.msk [vmem:[#allocation3 + $0x20] sm:$0xff] %vm333_vm3, %v890_v12  ;;  %v900_v13 = vsel %vm333_vm3, %v890_v12, %v895_v51 }
 0xd50   :  { %1632 = vmatmul.mubr.msk.f32.vlgmr.msra.gmra.mxu1 %vm48_vm1, %v900_v13 }
 0xd51   :  { %1646 = vmatpush3.msra.mxu1 %v1802_v2  ;;  %1653 = vmatprep.mubr.msk.f32.mxu1 %vm1744_vm0, %v1743_v0 }
 0xd52   :  { %1647 = vmatprep.subr.mxu1 %v1743_v0 }
 0xd53   :  { %1648 = vmatpush3.msra.mxu1 %v1813_v4 }
 0xd54   :  { %1649 = vmatprep.subr.mxu1 %v1743_v0 }
 0xd55   :  { %1650 = vmatpush3.msra.mxu1 %v1822_v6 }
 0xd56   :  { %1651 = vmatprep.subr.mxu1 %v1743_v0 }
 0xd57   :  { %1652 = vmatpush3.msra.mxu1 %v1832_v8 }
 0xe10   :  { %v970_v14 = vpop.f32.mrf.mxu1 }
 0xe11   :  { %v1004_v15 = vadd.f32 %v970_v14, %v1901_v22  ;;  %v979_v2 = vadd.f32 %v970_v14, %v1896_v18  ;;  %v974_v4 = vadd.f32 %v970_v14, %v1985_v3  ;;  %v999_v17 = vadd.f32 %v970_v14, %v1983_v1 }
 0xe12   :  { %v1633_v16 = vpop.f32.mrf.mxu1 }
 0xe13   :  { %1006 = vrot.lane.b32.xlu1 %v1004_v15, %s1747_s17  ;;  %981 = vrot.lane.b32.xlu0 %v979_v2, %s1747_s17  ;;  %v975_v19 = vmul.f32 0.5, %v974_v4  ;;  %v1000_v6 = vmul.f32 0.5, %v999_v17 }
 0xe15   :  { %1703 = vtanh.f32 %v975_v19 }
 0xe16   :  { %1705 = vtanh.f32 %v1000_v6 }
 0xe22   :  { %v1704_v0 = vpop.eup %1703 }
 0xe23   :  { %v1706_v8 = vpop.eup %1705  ;;  %v977_v21 = vadd.f32 1.0, %v1704_v0 }
 0xe24   :  { %v1002_v20 = vadd.f32 1.0, %v1706_v8 }
 0xe25   :  { %v978_v26 = vmul.f32 0.5, %v977_v21 }
 0xe26   :  { %v1003_v25 = vmul.f32 0.5, %v1002_v20 }
 0xe27   :  { %v991_v39 = vsub.f32 1.0, %v978_v26  ;;  %v997_v45 = vmul.f32 %v978_v26, %v862_v50 }
 0xe28   :  { %v1016_v37 = vsub.f32 1.0, %v1003_v25  ;;  %v1022_v40 = vmul.f32 %v1003_v25, %v887_v11 }
 0xe85   :  { %v1007_v27 = vpop.permute.xlu1 %1006  ;;  %v982_v28 = vpop.permute.xlu0 %981 }
 0xe86   :  { %v1009_v29 = vmul.f32 %v1007_v27, %v1003_v25  ;;  %v984_v30 = vmul.f32 %v982_v28, %v978_v26 }
 0xe88   :  { %1011 = vrot.lane.b32.xlu1 %v1009_v29, %s1745_s29  ;;  %986 = vrot.lane.b32.xlu0 %v984_v30, %s1745_s29 }
 0xefa   :  { %v1012_v31 = vpop.permute.xlu1 %1011  ;;  %v987_v32 = vpop.permute.xlu0 %986 }
 0xefb   :  { %v1014_v33 = vadd.f32 %v1012_v31, %v1983_v1  ;;  %v989_v34 = vadd.f32 %v987_v32, %v1985_v3 }
 0xefd   :  { %1707 = vtanh.f32 %v1014_v33 }
 0xefe   :  { %1709 = vtanh.f32 %v989_v34 }
 0xf0a   :  { %v1708_v35 = vpop.eup %1707 }
 0xf0b   :  { %v1710_v36 = vpop.eup %1709  ;;  %1018 = vrot.lane.b32.xlu1 %v1708_v35, %s1748_s3 }
 0xf0c   :  { %993 = vrot.lane.b32.xlu0 %v1710_v36, %s1748_s3 }
 0xf7d   :  { %v1019_v38 = vpop.permute.xlu1 %1018 }
 0xf7e   :  { %v1021_v42 = vmul.f32 %v1019_v38, %v1016_v37  ;;  %v994_v44 = vpop.permute.xlu0 %993 }
 0xf7f   :  { %v996_v46 = vmul.f32 %v994_v44, %v991_v39 }
 0xf80   :  { %v1023_v47 = vadd.f32 %v1022_v40, %v1021_v42 }
 0xf81   :  { %v998_v1 = vadd.f32 %v997_v45, %v996_v46 }
 0xf82   :  { %1030 = vrot.lane.b32.xlu1 %v1023_v47, %s1749_s18 }
 0xf83   :  { %1025 = vrot.lane.b32.xlu0 %v998_v1, %s1748_s3 }
 0xff4   :  { %v1031_v3 = vpop.permute.xlu1 %1030 }
 0xff5   :  { %1033 = vst.msk [vmem:[#allocation3 + $0x10] sm:$0xff] %vm340_vm4, %v1031_v3  ;;  %v1026_v48 = vpop.permute.xlu0 %1025 }
 0xff6   :  { %1028 = vst.msk [vmem:[#allocation3 + $0x28] sm:$0xff] %vm333_vm3, %v1026_v48  ;;  %v1036_v49 = vsel %vm333_vm3, %v1026_v48, %v1031_v3 }
 0xff7   :  { %1643 = vmatmul.mubr.msk.f32.vlgmr.msra.gmra.mxu0 %vm48_vm1, %v1036_v49 }
0x10b7   :  { %v1106_v52 = vpop.f32.mrf.mxu0 }
0x10b8   :  { %v1140_v53 = vadd.f32 %v1106_v52, %v1901_v22  ;;  %v1115_v54 = vadd.f32 %v1106_v52, %v1896_v18  ;;  %v1110_v56 = vadd.f32 %v1106_v52, %v1952_v24  ;;  %v1135_v57 = vadd.f32 %v1106_v52, %v1950_v23 }
0x10b9   :  { %v1644_v55 = vpop.f32.mrf.mxu0 }
0x10ba   :  { %1142 = vrot.lane.b32.xlu1 %v1140_v53, %s1747_s17  ;;  %1117 = vrot.lane.b32.xlu0 %v1115_v54, %s1747_s17  ;;  %v1111_v58 = vmul.f32 0.5, %v1110_v56  ;;  %v1136_v59 = vmul.f32 0.5, %v1135_v57 }
0x10bc   :  { %1711 = vtanh.f32 %v1111_v58 }
0x10bd   :  { %1713 = vtanh.f32 %v1136_v59 }
0x10c9   :  { %v1712_v60 = vpop.eup %1711 }
0x10ca   :  { %v1714_v61 = vpop.eup %1713  ;;  %v1113_v63 = vadd.f32 1.0, %v1712_v60  ;;  %v1316_v60 = vld [vmem:[%s2244_s5 + $0x10] sm:$0xff] }
0x10cb   :  { %v1138_v62 = vadd.f32 1.0, %v1714_v61 }
0x10cc   :  { %v1114_v7 = vmul.f32 0.5, %v1113_v63  ;;  %v1309_v63 = vld [vmem:[#allocation3 + $0x18] sm:$0xff] }
0x10cd   :  { %v1139_v5 = vmul.f32 0.5, %v1138_v62  ;;  %v1317_v62 = vld [vmem:[%s2244_s5 + $0x18] sm:$0xff] }
0x10ce   :  { %v1127_v17 = vsub.f32 1.0, %v1114_v7  ;;  %v1133_v8 = vmul.f32 %v1114_v7, %v998_v1 }
0x10cf   :  { %v1152_v16 = vsub.f32 1.0, %v1139_v5  ;;  %v1158_v19 = vmul.f32 %v1139_v5, %v1023_v47 }
0x112c   :  { %v1143_v9 = vpop.permute.xlu1 %1142  ;;  %v1118_v10 = vpop.permute.xlu0 %1117 }
0x112d   :  { %v1145_v11 = vmul.f32 %v1143_v9, %v1139_v5  ;;  %v1120_v50 = vmul.f32 %v1118_v10, %v1114_v7  ;;  %v1315_v7 = vld [vmem:[%s2244_s5 + $0x8] sm:$0xff]  ;;  %v1325_v10 = vadd.f32 %v1317_v62, %v1309_v63 }
0x112f   :  { %1147 = vrot.lane.b32.xlu1 %v1145_v11, %s1745_s29  ;;  %1122 = vrot.lane.b32.xlu0 %v1120_v50, %s1745_s29  ;;  %v1318_v50 = vld [vmem:[%s2244_s5 + $0x20] sm:$0xff] }
0x11a1   :  { %v1148_v51 = vpop.permute.xlu1 %1147  ;;  %v1123_v12 = vpop.permute.xlu0 %1122 }
0x11a2   :  { %v1150_v13 = vadd.f32 %v1148_v51, %v1950_v23  ;;  %v1125_v14 = vadd.f32 %v1123_v12, %v1952_v24  ;;  %v1311_v51 = vld [vmem:[#allocation3 + $0x28] sm:$0xff] }
0x11a3   :  { %v1319_v12 = vld [vmem:[%s2244_s5 + $0x28] sm:$0xff] }
0x11a4   :  { %1715 = vtanh.f32 %v1150_v13  ;;  %v1310_v13 = vld [vmem:[#allocation3 + $0x20] sm:$0xff] }
0x11a5   :  { %1717 = vtanh.f32 %v1125_v14  ;;  %v1339_v14 = vsel %vm48_vm1, %v1325_v10, 0.0 }
0x11b1   :  { %v1716_v15 = vpop.eup %1715 }
0x11b2   :  { %v1718_v2 = vpop.eup %1717  ;;  %1154 = vrot.lane.b32.xlu1 %v1716_v15, %s1748_s3 }
0x11b3   :  { %1129 = vrot.lane.b32.xlu0 %v1718_v2, %s1748_s3  ;;  %v1327_v2 = vadd.f32 %v1319_v12, %v1311_v51 }
0x1224   :  { %v1155_v4 = vpop.permute.xlu1 %1154 }
0x1225   :  { %v1157_v6 = vmul.f32 %v1155_v4, %v1152_v16  ;;  %v1130_v0 = vpop.permute.xlu0 %1129  ;;  %v1326_v16 = vadd.f32 %v1318_v50, %v1310_v13 }
0x1226   :  { %v1132_v20 = vmul.f32 %v1130_v0, %v1127_v17  ;;  %v1320_v17 = vld [vmem:[%s2244_s5 + $0x30] sm:$0xff] }
0x1227   :  { %v1159_v21 = vadd.f32 %v1158_v19, %v1157_v6  ;;  %v1345_v19 = vsel %vm48_vm1, %v1327_v2, 0.0  ;;  %v1342_v6 = vsel %vm48_vm1, %v1326_v16, 0.0 }
0x1228   :  { %v1134_v23 = vadd.f32 %v1133_v8, %v1132_v20 }
0x1229   :  { %1166 = vrot.lane.b32.xlu1 %v1159_v21, %s1749_s18 }
0x122a   :  { %1161 = vrot.lane.b32.xlu0 %v1134_v23, %s1748_s3 }
0x129b   :  { %v1167_v24 = vpop.permute.xlu1 %1166 }
0x129c   :  { %1169 = vst.msk [vmem:[#allocation3 + $0x8] sm:$0xff] %vm340_vm4, %v1167_v24  ;;  %v1162_v25 = vpop.permute.xlu0 %1161 }
0x129d   :  { %1164 = vst.msk [vmem:[#allocation3 + $0x30] sm:$0xff] %vm333_vm3, %v1162_v25  ;;  %v1172_v26 = vsel %vm333_vm3, %v1162_v25, %v1167_v24  ;;  %v1321_v25 = vld [vmem:[%s2244_s5 + $0x38] sm:$0xff] }
0x129e   :  { %1654 = vmatmul.mubr.msk.f32.vlgmr.msra.gmra.mxu1 %vm48_vm1, %v1172_v26 }
0x12a3   :  { %v1307_v5 = vld [vmem:[#allocation3 + $0x8] sm:$0xff] }
0x12a4   :  { %v1323_v11 = vadd.f32 %v1315_v7, %v1307_v5  ;;  %v1312_v4 = vld [vmem:[#allocation3 + $0x30] sm:$0xff] }
0x12a5   :  { %v1328_v0 = vadd.f32 %v1320_v17, %v1312_v4 }
0x12a6   :  { %v1333_v15 = vsel %vm48_vm1, %v1323_v11, 0.0 }
0x12a7   :  { %v1348_v8 = vsel %vm48_vm1, %v1328_v0, 0.0 }
0x135e   :  { %v1242_v27 = vpop.f32.mrf.mxu1 }
0x135f   :  { %v1276_v28 = vadd.f32 %v1242_v27, %v1901_v22  ;;  %v1251_v29 = vadd.f32 %v1242_v27, %v1896_v18  ;;  %v1246_v31 = vadd.f32 %v1242_v27, %v1918_v43  ;;  %v1271_v32 = vadd.f32 %v1242_v27, %v1915_v41 }
0x1360   :  { %v1655_v30 = vpop.f32.mrf.mxu1 }
0x1361   :  { %1278 = vrot.lane.b32.xlu1 %v1276_v28, %s1747_s17  ;;  %1253 = vrot.lane.b32.xlu0 %v1251_v29, %s1747_s17  ;;  %v1247_v33 = vmul.f32 0.5, %v1246_v31  ;;  %v1272_v34 = vmul.f32 0.5, %v1271_v32 }
0x1363   :  { %1719 = vtanh.f32 %v1247_v33 }
0x1364   :  { %1721 = vtanh.f32 %v1272_v34 }
0x1370   :  { %v1720_v35 = vpop.eup %1719 }
0x1371   :  { %v1722_v36 = vpop.eup %1721  ;;  %v1249_v38 = vadd.f32 1.0, %v1720_v35 }
0x1372   :  { %v1274_v37 = vadd.f32 1.0, %v1722_v36 }
0x1373   :  { %v1250_v39 = vmul.f32 0.5, %v1249_v38 }
0x1374   :  { %v1275_v22 = vmul.f32 0.5, %v1274_v37 }
0x1375   :  { %v1263_v53 = vsub.f32 1.0, %v1250_v39  ;;  %v1269_v57 = vmul.f32 %v1250_v39, %v1134_v23  ;;  %v1314_v23 = vld [vmem:[%s2244_s5] sm:$0xff] }
0x1376   :  { %v1288_v49 = vsub.f32 1.0, %v1275_v22  ;;  %v1294_v54 = vmul.f32 %v1275_v22, %v1159_v21 }
0x13d3   :  { %v1279_v18 = vpop.permute.xlu1 %1278  ;;  %v1254_v40 = vpop.permute.xlu0 %1253 }
0x13d4   :  { %v1281_v42 = vmul.f32 %v1279_v18, %v1275_v22  ;;  %v1256_v44 = vmul.f32 %v1254_v40, %v1250_v39 }
0x13d6   :  { %1283 = vrot.lane.b32.xlu1 %v1281_v42, %s1745_s29  ;;  %1258 = vrot.lane.b32.xlu0 %v1256_v44, %s1745_s29 }
0x1448   :  { %v1284_v45 = vpop.permute.xlu1 %1283  ;;  %v1259_v46 = vpop.permute.xlu0 %1258 }
0x1449   :  { %v1286_v47 = vadd.f32 %v1284_v45, %v1915_v41  ;;  %v1261_v1 = vadd.f32 %v1259_v46, %v1918_v43  ;;  %v1308_v43 = vld [vmem:[#allocation3 + $0x10] sm:$0xff] }
0x144a   :  { %v1324_v61 = vadd.f32 %v1316_v60, %v1308_v43 }
0x144b   :  { %1723 = vtanh.f32 %v1286_v47 }
0x144c   :  { %1725 = vtanh.f32 %v1261_v1  ;;  %v1336_v9 = vsel %vm48_vm1, %v1324_v61, 0.0 }
0x1458   :  { %v1724_v3 = vpop.eup %1723 }
0x1459   :  { %v1726_v48 = vpop.eup %1725  ;;  %1290 = vrot.lane.b32.xlu1 %v1724_v3, %s1748_s3 }
0x145a   :  { %1265 = vrot.lane.b32.xlu0 %v1726_v48, %s1748_s3 }
0x14cb   :  { %v1291_v52 = vpop.permute.xlu1 %1290 }
0x14cc   :  { %v1293_v55 = vmul.f32 %v1291_v52, %v1288_v49  ;;  %v1266_v56 = vpop.permute.xlu0 %1265 }
0x14cd   :  { %v1268_v58 = vmul.f32 %v1266_v56, %v1263_v53 }
0x14ce   :  { %v1295_v59 = vadd.f32 %v1294_v54, %v1293_v55 }
0x14cf   :  { %v1270_v41 = vadd.f32 %v1269_v57, %v1268_v58 }
0x14d0   :  { %1302 = vrot.lane.b32.xlu1 %v1295_v59, %s1749_s18 }
0x14d1   :  { %1297 = vrot.lane.b32.xlu0 %v1270_v41, %s1748_s3 }
0x14f0   :  { %1337 = vadd.xlane.f32.xlu0 %v1336_v9 }
0x14f4   :  { %1340 = vadd.xlane.f32.xlu0 %v1339_v14  ;;  %1334 = vadd.xlane.f32.xlu1 %v1333_v15 }
0x14f8   :  { %1346 = vadd.xlane.f32.xlu0 %v1345_v19  ;;  %1343 = vadd.xlane.f32.xlu1 %v1342_v6 }
0x14fc   :  { %1349 = vadd.xlane.f32.xlu1 %v1348_v8 }
0x1542   :  { %v1303_v20 = vpop.permute.xlu1 %1302 }
0x1543   :  { %1305 = vst.msk [vmem:[#allocation3] sm:$0xff] %vm340_vm4, %v1303_v20  ;;  %v1298_v21 = vpop.permute.xlu0 %1297 }
0x1544   :  { %1300 = vst.msk [vmem:[#allocation3 + $0x38] sm:$0xff] %vm333_vm3, %v1298_v21 }
0x154a   :  { %v1306_v24 = vld [vmem:[#allocation3] sm:$0xff] }
0x154b   :  { %v1322_v26 = vadd.f32 %v1314_v23, %v1306_v24  ;;  %v1313_v27 = vld [vmem:[#allocation3 + $0x38] sm:$0xff]  ;;  %v1494_v23 = vld [vmem:[%s2245_s6] ss:$0 sm:$0xff] }
0x154c   :  { %v1329_v29 = vadd.f32 %v1321_v25, %v1313_v27  ;;  %v1495_v25 = vld [vmem:[%s2246_s7] ss:$0 sm:$0xff] }
0x154d   :  { %v1330_v28 = vsel %vm48_vm1, %v1322_v26, 0.0 }
0x154e   :  { %1331 = vadd.xlane.f32.xlu0 %v1330_v28  ;;  %v1351_v30 = vsel %vm48_vm1, %v1329_v29, 0.0 }
0x1552   :  { %1352 = vadd.xlane.f32.xlu0 %v1351_v30 }
0x1579   :  { %v1338_v31 = vpop.xlane.xlu0 %1337 }
0x157a   :  { %v1357_v32 = vmul.f32 0.03125, %v1338_v31 }
0x157c   :  { %v2153_v33 = vsub.f32 %v1324_v61, %v1357_v32 }
0x157d   :  { %v1341_v34 = vpop.xlane.xlu0 %1340  ;;  %v1335_v35 = vpop.xlane.xlu1 %1334 }
0x157e   :  { %v1358_v36 = vmul.f32 0.03125, %v1341_v34  ;;  %v1356_v37 = vmul.f32 0.03125, %v1335_v35  ;;  %v1373_v38 = vmul.f32 %v2153_v33, %v2153_v33 }
0x1580   :  { %v2157_v22 = vsub.f32 %v1325_v10, %v1358_v36  ;;  %v2159_v39 = vsub.f32 %v1323_v11, %v1356_v37  ;;  %v1385_v18 = vsel %vm48_vm1, %v1373_v38, 0.0 }
0x1581   :  { %1386 = vadd.xlane.f32.xlu1 %v1385_v18  ;;  %v1347_v40 = vpop.xlane.xlu0 %1346  ;;  %v1344_v42 = vpop.xlane.xlu1 %1343 }
0x1582   :  { %v1360_v44 = vmul.f32 0.03125, %v1347_v40  ;;  %v1359_v45 = vmul.f32 0.03125, %v1344_v42  ;;  %v1372_v46 = vmul.f32 %v2159_v39, %v2159_v39  ;;  %v1374_v48 = vmul.f32 %v2157_v22, %v2157_v22 }
0x1584   :  { %v2164_v47 = vsub.f32 %v1327_v2, %v1360_v44  ;;  %v2166_v1 = vsub.f32 %v1326_v16, %v1359_v45  ;;  %v1382_v3 = vsel %vm48_vm1, %v1372_v46, 0.0  ;;  %v1388_v53 = vsel %vm48_vm1, %v1374_v48, 0.0 }
0x1585   :  { %1383 = vadd.xlane.f32.xlu0 %v1382_v3  ;;  %v1350_v56 = vpop.xlane.xlu1 %1349 }
0x1586   :  { %v1375_v49 = vmul.f32 %v2166_v1, %v2166_v1  ;;  %v1376_v54 = vmul.f32 %v2164_v47, %v2164_v47  ;;  %v1361_v57 = vmul.f32 0.03125, %v1350_v56 }
0x1588   :  { %v1391_v52 = vsel %vm48_vm1, %v1375_v49, 0.0  ;;  %v1394_v55 = vsel %vm48_vm1, %v1376_v54, 0.0  ;;  %v2178_v41 = vsub.f32 %v1328_v0, %v1361_v57 }
0x1589   :  { %1392 = vadd.xlane.f32.xlu1 %v1391_v52  ;;  %1389 = vadd.xlane.f32.xlu0 %v1388_v53 }
0x158a   :  { %v1377_v7 = vmul.f32 %v2178_v41, %v2178_v41 }
0x158c   :  { %v1397_v10 = vsel %vm48_vm1, %v1377_v7, 0.0 }
0x158d   :  { %1395 = vadd.xlane.f32.xlu0 %v1394_v55 }
0x15d7   :  { %v1332_v58 = vpop.xlane.xlu0 %1331 }
0x15d8   :  { %v1355_v59 = vmul.f32 0.03125, %v1332_v58 }
0x15da   :  { %v2180_v43 = vsub.f32 %v1322_v26, %v1355_v59 }
0x15db   :  { %v1353_v60 = vpop.xlane.xlu0 %1352 }
0x15dc   :  { %v1362_v61 = vmul.f32 0.03125, %v1353_v60  ;;  %v1371_v62 = vmul.f32 %v2180_v43, %v2180_v43 }
0x15de   :  { %v2184_v63 = vsub.f32 %v1329_v29, %v1362_v61  ;;  %v1379_v5 = vsel %vm48_vm1, %v1371_v62, 0.0 }
0x15df   :  { %1380 = vadd.xlane.f32.xlu1 %v1379_v5 }
0x15e0   :  { %v1378_v9 = vmul.f32 %v2184_v63, %v2184_v63 }
0x15e2   :  { %v1400_v11 = vsel %vm48_vm1, %v1378_v9, 0.0 }
0x15e3   :  { %1398 = vadd.xlane.f32.xlu1 %v1397_v10  ;;  %1401 = vadd.xlane.f32.xlu0 %v1400_v11 }
0x160a   :  { %v1387_v50 = vpop.xlane.xlu1 %1386 }
0x160b   :  { %v1405_v51 = vmul.f32 0.03125, %v1387_v50 }
0x160d   :  { %v1413_v12 = vadd.f32 1e-05, %v1405_v51 }
0x160e   :  { %v1384_v13 = vpop.xlane.xlu0 %1383 }
0x160f   :  { %1727 = vrsqrt.f32 %v1413_v12  ;;  %v1404_v14 = vmul.f32 0.03125, %v1384_v13 }
0x1611   :  { %v1412_v15 = vadd.f32 1e-05, %v1404_v14 }
0x1612   :  { %v1393_v2 = vpop.xlane.xlu1 %1392  ;;  %v1390_v16 = vpop.xlane.xlu0 %1389 }
0x1613   :  { %1729 = vrsqrt.f32 %v1412_v15  ;;  %v1407_v4 = vmul.f32 0.03125, %v1393_v2  ;;  %v1406_v17 = vmul.f32 0.03125, %v1390_v16 }
0x1615   :  { %v1415_v19 = vadd.f32 1e-05, %v1407_v4  ;;  %v1414_v6 = vadd.f32 1e-05, %v1406_v17 }
0x1616   :  { %v1396_v0 = vpop.xlane.xlu0 %1395 }
0x1617   :  { %1731 = vrsqrt.f32 %v1415_v19  ;;  %v1408_v8 = vmul.f32 0.03125, %v1396_v0 }
0x1618   :  { %1733 = vrsqrt.f32 %v1414_v6 }
0x1619   :  { %v1416_v20 = vadd.f32 1e-05, %v1408_v8 }
0x161b   :  { %1735 = vrsqrt.f32 %v1416_v20 }
0x161c   :  { %v1728_v21 = vpop.eup %1727 }
0x161d   :  { %v1429_v24 = vmul.f32 %v1728_v21, %v2153_v33 }
0x161f   :  { %v1444_v26 = vmul.f32 %v1494_v23, %v1429_v24 }
0x1620   :  { %v1730_v27 = vpop.eup %1729 }
0x1621   :  { %v1459_v28 = vadd.f32 %v1495_v25, %v1444_v26  ;;  %v1428_v29 = vmul.f32 %v1730_v27, %v2159_v39 }
0x1623   :  { %1467 = vst.msk [vmem:[%s2247_s8 + $0x10] sm:$0xff] %vm48_vm1, %v1459_v28  ;;  %v1443_v30 = vmul.f32 %v1494_v23, %v1428_v29 }
0x1624   :  { %v1732_v31 = vpop.eup %1731 }
0x1625   :  { %v1734_v32 = vpop.eup %1733  ;;  %v1458_v34 = vadd.f32 %v1495_v25, %v1443_v30  ;;  %v1431_v33 = vmul.f32 %v1732_v31, %v2166_v1 }
0x1626   :  { %v1430_v35 = vmul.f32 %v1734_v32, %v2157_v22 }
0x1627   :  { %1466 = vst.msk [vmem:[%s2247_s8 + $0x8] sm:$0xff] %vm48_vm1, %v1458_v34  ;;  %v1446_v36 = vmul.f32 %v1494_v23, %v1431_v33 }
0x1628   :  { %v1736_v37 = vpop.eup %1735  ;;  %v1445_v38 = vmul.f32 %v1494_v23, %v1430_v35 }
0x1629   :  { %v1461_v39 = vadd.f32 %v1495_v25, %v1446_v36  ;;  %v1432_v18 = vmul.f32 %v1736_v37, %v2164_v47 }
0x162a   :  { %v1460_v40 = vadd.f32 %v1495_v25, %v1445_v38 }
0x162b   :  { %1469 = vst.msk [vmem:[%s2247_s8 + $0x20] sm:$0xff] %vm48_vm1, %v1461_v39  ;;  %v1447_v42 = vmul.f32 %v1494_v23, %v1432_v18 }
0x162c   :  { %1468 = vst.msk [vmem:[%s2247_s8 + $0x18] sm:$0xff] %vm48_vm1, %v1460_v40 }
0x162d   :  { %v1462_v22 = vadd.f32 %v1495_v25, %v1447_v42 }
0x162f   :  { %1470 = vst.msk [vmem:[%s2247_s8 + $0x28] sm:$0xff] %vm48_vm1, %v1462_v22 }
0x1668   :  { %v1381_v44 = vpop.xlane.xlu1 %1380 }
0x1669   :  { %v1403_v45 = vmul.f32 0.03125, %v1381_v44 }
0x166b   :  { %v1411_v46 = vadd.f32 1e-05, %v1403_v45 }
0x166c   :  { %v1399_v47 = vpop.xlane.xlu1 %1398  ;;  %v1402_v1 = vpop.xlane.xlu0 %1401 }
0x166d   :  { %1737 = vrsqrt.f32 %v1411_v46  ;;  %v1409_v3 = vmul.f32 0.03125, %v1399_v47  ;;  %v1410_v48 = vmul.f32 0.03125, %v1402_v1 }
0x166f   :  { %v1417_v49 = vadd.f32 1e-05, %v1409_v3  ;;  %v1418_v52 = vadd.f32 1e-05, %v1410_v48 }
0x1671   :  { %1739 = vrsqrt.f32 %v1417_v49 }
0x1672   :  { %1741 = vrsqrt.f32 %v1418_v52 }
0x167a   :  { %v1738_v53 = vpop.eup %1737 }
0x167b   :  { %v1427_v54 = vmul.f32 %v1738_v53, %v2180_v43 }
0x167d   :  { %v1442_v55 = vmul.f32 %v1494_v23, %v1427_v54 }
0x167e   :  { %v1740_v56 = vpop.eup %1739 }
0x167f   :  { %v1742_v57 = vpop.eup %1741  ;;  %v1457_v58 = vadd.f32 %v1495_v25, %v1442_v55  ;;  %v1433_v59 = vmul.f32 %v1740_v56, %v2178_v41 }
0x1680   :  { %v1434_v60 = vmul.f32 %v1742_v57, %v2184_v63 }
0x1681   :  { %1465 = vst.msk [vmem:[%s2247_s8] sm:$0xff] %vm48_vm1, %v1457_v58  ;;  %v1448_v61 = vmul.f32 %v1494_v23, %v1433_v59 }
0x1682   :  { %v1449_v62 = vmul.f32 %v1494_v23, %v1434_v60 }
0x1683   :  { %v1463_v5 = vadd.f32 %v1495_v25, %v1448_v61 }
0x1684   :  { %v1464_v7 = vadd.f32 %v1495_v25, %v1449_v62 }
0x1685   :  { %1471 = vst.msk [vmem:[%s2247_s8 + $0x30] sm:$0xff] %vm48_vm1, %v1463_v5 }
0x1686   :  { %1472 = vst.msk [vmem:[%s2247_s8 + $0x38] sm:$0xff] %vm48_vm1, %v1464_v7 }

</bundles_post_ra>
